<compile_context>
chip_gen: v5e
topology: v5e:2x2
jax: 0.10.0
libtpu: 0.0.40
codegen_flags: <defaults>
</compile_context>

<pallas_src>
import jax
import jax.numpy as jnp
import numpy as np
from jax.experimental import pallas as pl
from jax.experimental.pallas import tpu as pltpu


# ---------------------------------------------------------------------------
# Fused whole-network kernel (one image per grid step)
# ---------------------------------------------------------------------------
def _convmnist_kernel(x1_ref, w1_ref, b1_ref, s1_ref, w2_ref, b2_ref, s2_ref,
                      w3_ref, b3_ref, wl_ref, bl_ref, out_ref):
    f32 = jnp.float32

    def corner_max(cs):
        return jnp.maximum(jnp.maximum(cs[0], cs[1]), jnp.maximum(cs[2], cs[3]))

    # ---- layer 1: Conv(1->32, 3x3, pad 1) + ReLU + MaxPool2 ----------------
    # x1_ref[0, c] is the prebuilt (196, 9) corner-c patch matrix (rows = hp*14+wp).
    w1 = w1_ref[...]                                                  # (9, 32)
    a1 = [jnp.dot(x1_ref[0, c], w1, preferred_element_type=f32) for c in range(4)]
    z1 = jnp.maximum(corner_max(a1) + b1_ref[...], 0.0)               # (196, 32)

    # ---- generic phase-based conv+pool for layers 2 / 3 --------------------
    def conv_pool(p_all, w_ref, b_row, grid_w, phase_rows, out_rows, cout):
        # p_all: (4*phase_rows, Cin) phase grids; rows of phase (ph,pw) start at
        #        (ph*2+pw)*phase_rows, flattened as i*grid_w + j.
        wk = [w_ref[k] for k in range(9)]                             # 9 x (Cin, Cout)
        corners = []
        for dh in (0, 1):
            for dw in (0, 1):
                acc = jnp.zeros((out_rows, cout), f32)
                for kh in range(3):
                    for kw in range(3):
                        sh, sw = dh + kh, dw + kw
                        phase = (sh % 2) * 2 + (sw % 2)
                        off = (sh // 2) * grid_w + (sw // 2)
                        base = phase * phase_rows + off
                        slab = p_all[base:base + out_rows, :]         # contiguous rows
                        acc = acc + jnp.dot(slab, wk[kh * 3 + kw],
                                            preferred_element_type=f32)
                corners.append(acc)
        m = corner_max(corners)
        return jnp.maximum(m + b_row, 0.0)                            # (out_rows, Cout)

    # ---- re-phase (zero-pad ring applied by the 0/1 selection matmul) ------
    p2 = jnp.dot(s1_ref[...], z1, preferred_element_type=f32)         # (288, 32)
    # ---- layer 2: Conv(32->64) + ReLU + MaxPool2 ---------------------------
    z2 = conv_pool(p2, w2_ref, b2_ref[...], grid_w=8, phase_rows=72,
                   out_rows=56, cout=64)                              # rows = hp*8+wp

    p3 = jnp.dot(s2_ref[...], z2, preferred_element_type=f32)         # (96, 64)
    # ---- layer 3: Conv(64->128) + ReLU + MaxPool2 --------------------------
    z3 = conv_pool(p3, w3_ref, b3_ref[...], grid_w=4, phase_rows=24,
                   out_rows=16, cout=128)                             # rows = h*4+w

    # ---- Linear (nn.Flatten NCHW order folded into wl_ref layout) ----------
    acc = bl_ref[...].astype(f32)                                     # (1, 128)
    for p in range(9):                                                # p = h*3 + w
        r = (p // 3) * 4 + (p % 3)                                    # z3 row = h*4 + w
        acc = acc + jnp.dot(z3[r:r + 1, :], wl_ref[p],
                            preferred_element_type=f32)
    out_ref[0, :, :] = jnp.broadcast_to(acc, (8, 128))


# ---------------------------------------------------------------------------
# pallas_call wrapper + XLA glue (layer-1 patches only)
# ---------------------------------------------------------------------------
def _layer1_patches(x_nchw):
    """(N,1,28,28) -> (N, 4, 196, 9) corner-patch tensor (tiny: 28 KB/img)."""
    n = x_nchw.shape[0]
    x = x_nchw[:, 0, :, :]
    xp = jnp.pad(x, ((0, 0), (1, 1), (1, 1)))                         # (N, 30, 30)
    corners = []
    for dh in (0, 1):
        for dw in (0, 1):
            taps = []
            for kh in range(3):
                for kw in range(3):
                    h0, w0 = dh + kh, dw + kw
                    taps.append(xp[:, h0:h0 + 27:2, w0:w0 + 27:2].reshape(n, 196))
            corners.append(jnp.stack(taps, axis=-1))                  # (N, 196, 9)
    return jnp.stack(corners, axis=1)                                 # (N, 4, 196, 9)


def conv_mnist_forward(x_nchw, packed):
    assert x_nchw.shape[1:] == (1, 28, 28)
    n = x_nchw.shape[0]
    x1 = _layer1_patches(x_nchw.astype(jnp.float32))

    const2 = lambda i: (0, 0)
    const3 = lambda i: (0, 0, 0)
    out = pl.pallas_call(
        _convmnist_kernel,
        out_shape=jax.ShapeDtypeStruct((n, 8, 128), jnp.float32),
        grid=(n,),
        in_specs=[
            pl.BlockSpec((1, 4, 196, 9), lambda i: (i, 0, 0, 0)),     # per-image patches
            pl.BlockSpec((9, 32), const2),                            # resident weights
            pl.BlockSpec((1, 32), const2),
            pl.BlockSpec((288, 196), const2),
            pl.BlockSpec((9, 32, 64), const3),
            pl.BlockSpec((1, 64), const2),
            pl.BlockSpec((96, 56), const2),
            pl.BlockSpec((9, 64, 128), const3),
            pl.BlockSpec((1, 128), const2),
            pl.BlockSpec((9, 128, 128), const3),
            pl.BlockSpec((1, 128), const2),
        ],
        out_specs=pl.BlockSpec((1, 8, 128), lambda i: (i, 0, 0)),
        compiler_params=pltpu.CompilerParams(dimension_semantics=("parallel",)),
    )(x1, packed["w1"], packed["b1"], packed["s1"], packed["w2"], packed["b2"],
      packed["s2"], packed["w3"], packed["b3"], packed["wl"], packed["bl"])
    return out[:, 0, :10]                                             # (N, 10) f32


# ---------------------------------------------------------------------------
# One-time host-side parameter repacking (hoisted out of the traced forward)
# ---------------------------------------------------------------------------
def _make_phase_select(h_valid, w_valid, row_stride, n_cols, out_grid, phase_rows):
    """0/1 matrix mapping a layer's pooled-output rows to the next layer's 4
    zero-padded phase grids (rows i*out_grid+j per phase block of phase_rows)."""
    s = np.zeros((4 * phase_rows, n_cols), np.float32)
    for ph in (0, 1):
        for pw in (0, 1):
            base = (ph * 2 + pw) * phase_rows
            for i in range(out_grid):
                for j in range(out_grid):
                    h, w = 2 * i + ph - 1, 2 * j + pw - 1
                    if 0 <= h < h_valid and 0 <= w < w_valid:
                        s[base + i * out_grid + j, h * row_stride + w] = 1.0
    return s


def prepare_params(params):
    (w1, b1), (w2, b2), (w3, b3) = params["convs"]
    wl, bl = params["linear"]
    w1 = np.asarray(w1); w2 = np.asarray(w2); w3 = np.asarray(w3)
    wl = np.asarray(wl); bl = np.asarray(bl)

    w1m = np.transpose(w1, (2, 3, 1, 0)).reshape(9, 32)               # (k, co)
    w2m = np.transpose(w2, (2, 3, 1, 0)).reshape(9, 32, 64)           # (k, ci, co)
    w3m = np.transpose(w3, (2, 3, 1, 0)).reshape(9, 64, 128)

    s1 = _make_phase_select(14, 14, 14, 196, 8, 72)                   # (288, 196)
    s2 = _make_phase_select(7, 7, 8, 56, 4, 24)                       # (96, 56)

    wl3 = np.zeros((9, 128, 128), np.float32)                         # (p, c, o_pad)
    wl3[:, :, :10] = np.transpose(wl.reshape(10, 128, 9), (2, 1, 0))
    blr = np.zeros((1, 128), np.float32)
    blr[0, :10] = bl

    f = lambda a: jnp.asarray(a, jnp.float32)
    return {
        "w1": f(w1m), "b1": f(np.asarray(b1).reshape(1, 32)), "s1": f(s1),
        "w2": f(w2m), "b2": f(np.asarray(b2).reshape(1, 64)), "s2": f(s2),
        "w3": f(w3m), "b3": f(np.asarray(b3).reshape(1, 128)),
        "wl": f(wl3), "bl": f(blr),
    }


# ---------------------------------------------------------------------------
# Pure-JAX f32 reference (mirrors PyTorch semantics) for the sanity check
# ---------------------------------------------------------------------------
def reference_forward(x_nchw, params):
    y = x_nchw
    for (w, b) in params["convs"]:
        y = jax.lax.conv_general_dilated(
            y, w, window_strides=(1, 1), padding=((1, 1), (1, 1)),
            dimension_numbers=("NCHW", "OIHW", "NCHW"))
        y = jnp.maximum(y + b[None, :, None, None], 0.0)
        y = jax.lax.reduce_window(y, -jnp.inf, jax.lax.max,
                                  (1, 1, 2, 2), (1, 1, 2, 2), "VALID")
    feat = y.reshape(y.shape[0], -1)
    wl, bl = params["linear"]
    return feat @ wl.T + bl[None, :]


# ---------------------------------------------------------------------------
# Deterministic parameter init (shapes from the nn.Module __init__)
# ---------------------------------------------------------------------------
def init_params(key):
    keys = jax.random.split(key, 8)
    conv_specs = [(1, 32), (32, 64), (64, 128)]
    convs = []
    for i, (cin, cout) in enumerate(conv_specs):
        fan_in = cin * 9
        w = jax.random.normal(keys[2 * i], (cout, cin, 3, 3), jnp.float32) * jnp.sqrt(2.0 / fan_in)
        b = jax.random.normal(keys[2 * i + 1], (cout,), jnp.float32) * 0.01
        convs.append((w, b))
    wl = jax.random.normal(keys[6], (10, 128 * 3 * 3), jnp.float32) * jnp.sqrt(2.0 / (128 * 3 * 3))
    bl = jax.random.normal(keys[7], (10,), jnp.float32) * 0.01
    return {"convs": convs, "linear": (wl, bl)}


if __name__ == "__main__":
    key = jax.random.PRNGKey(0)
    pkey, xkey = jax.random.split(key)
    params = init_params(pkey)
    packed = prepare_params(params)     # one-time host-side repacking

    # MNIST-shaped input: spatial must be 28 so Flatten -> 128*3*3 matches Linear.
    x = jax.random.normal(xkey, (2, 1, 28, 28), jnp.float32)

    fwd = jax.jit(conv_mnist_forward)
    out = jax.block_until_ready(fwd(x, packed))
    assert out.shape == (2, 10) and out.dtype == jnp.float32

    ref = jax.block_until_ready(jax.jit(reference_forward)(x, params))
    np.testing.assert_allclose(np.asarray(out), np.asarray(ref), rtol=5e-2, atol=5e-2)

    print("KERNEL_OK")
</pallas_src>

<mosaic_0001>
module attributes {stable_mosaic.version = 11 : i64} {
  func.func @_convmnist_kernel(%arg0: i32, %arg1: memref<1x4x196x9xf32, #tpu.memory_space<vmem>>, %arg2: memref<9x32xf32, #tpu.memory_space<vmem>>, %arg3: memref<1x32xf32, #tpu.memory_space<vmem>>, %arg4: memref<288x196xf32, #tpu.memory_space<vmem>>, %arg5: memref<9x32x64xf32, #tpu.memory_space<vmem>>, %arg6: memref<1x64xf32, #tpu.memory_space<vmem>>, %arg7: memref<96x56xf32, #tpu.memory_space<vmem>>, %arg8: memref<9x64x128xf32, #tpu.memory_space<vmem>>, %arg9: memref<1x128xf32, #tpu.memory_space<vmem>>, %arg10: memref<9x128x128xf32, #tpu.memory_space<vmem>>, %arg11: memref<1x128xf32, #tpu.memory_space<vmem>>, %arg12: memref<1x8x128xf32, #tpu.memory_space<vmem>>) attributes {dimension_semantics = [#tpu.dimension_semantics<parallel>], iteration_bounds = array<i64: 2>, scalar_prefetch = 0 : i64, scratch_operands = 0 : i64, tpu.core_type = #tpu.core_type<tc>, window_params = [{transform_indices = @transform_0, window_bounds = array<i64: 1, 4, 196, 9>}, {pipeline_mode = #tpu.pipeline_mode<synchronous>, transform_indices = @transform_1, window_bounds = array<i64: 9, 32>}, {pipeline_mode = #tpu.pipeline_mode<synchronous>, transform_indices = @transform_2, window_bounds = array<i64: 1, 32>}, {pipeline_mode = #tpu.pipeline_mode<synchronous>, transform_indices = @transform_3, window_bounds = array<i64: 288, 196>}, {pipeline_mode = #tpu.pipeline_mode<synchronous>, transform_indices = @transform_4, window_bounds = array<i64: 9, 32, 64>}, {pipeline_mode = #tpu.pipeline_mode<synchronous>, transform_indices = @transform_5, window_bounds = array<i64: 1, 64>}, {pipeline_mode = #tpu.pipeline_mode<synchronous>, transform_indices = @transform_6, window_bounds = array<i64: 96, 56>}, {pipeline_mode = #tpu.pipeline_mode<synchronous>, transform_indices = @transform_7, window_bounds = array<i64: 9, 64, 128>}, {pipeline_mode = #tpu.pipeline_mode<synchronous>, transform_indices = @transform_8, window_bounds = array<i64: 1, 128>}, {pipeline_mode = #tpu.pipeline_mode<synchronous>, transform_indices = @transform_9, window_bounds = array<i64: 9, 128, 128>}, {pipeline_mode = #tpu.pipeline_mode<synchronous>, transform_indices = @transform_10, window_bounds = array<i64: 1, 128>}, {transform_indices = @transform_11, window_bounds = array<i64: 1, 8, 128>}]} {
    %c0 = arith.constant 0 : index
    %c0_0 = arith.constant 0 : index
    %0 = vector.load %arg2[%c0, %c0_0] : memref<9x32xf32, #tpu.memory_space<vmem>>, vector<9x32xf32>
    %c0_1 = arith.constant 0 : index
    %c0_2 = arith.constant 0 : index
    %c0_3 = arith.constant 0 : index
    %c0_4 = arith.constant 0 : index
    %1 = vector.load %arg1[%c0_1, %c0_2, %c0_3, %c0_4] : memref<1x4x196x9xf32, #tpu.memory_space<vmem>>, vector<1x1x196x9xf32>
    %2 = vector.shape_cast %1 : vector<1x1x196x9xf32> to vector<196x9xf32>
    %cst = arith.constant dense<0.000000e+00> : vector<196x32xf32>
    %3 = tpu.matmul %2, %0, %cst {dimension_numbers = #tpu.dot_dimension_numbers<[1], [0], [0], [1], [0, 0, 1, 1], [], []>} : vector<196x9xf32>, vector<9x32xf32>, vector<196x32xf32> -> vector<196x32xf32>
    %c0_5 = arith.constant 0 : index
    %c1 = arith.constant 1 : index
    %c0_6 = arith.constant 0 : index
    %c0_7 = arith.constant 0 : index
    %4 = vector.load %arg1[%c0_5, %c1, %c0_6, %c0_7] : memref<1x4x196x9xf32, #tpu.memory_space<vmem>>, vector<1x1x196x9xf32>
    %5 = vector.shape_cast %4 : vector<1x1x196x9xf32> to vector<196x9xf32>
    %cst_8 = arith.constant dense<0.000000e+00> : vector<196x32xf32>
    %6 = tpu.matmul %5, %0, %cst_8 {dimension_numbers = #tpu.dot_dimension_numbers<[1], [0], [0], [1], [0, 0, 1, 1], [], []>} : vector<196x9xf32>, vector<9x32xf32>, vector<196x32xf32> -> vector<196x32xf32>
    %c0_9 = arith.constant 0 : index
    %c2 = arith.constant 2 : index
    %c0_10 = arith.constant 0 : index
    %c0_11 = arith.constant 0 : index
    %7 = vector.load %arg1[%c0_9, %c2, %c0_10, %c0_11] : memref<1x4x196x9xf32, #tpu.memory_space<vmem>>, vector<1x1x196x9xf32>
    %8 = vector.shape_cast %7 : vector<1x1x196x9xf32> to vector<196x9xf32>
    %cst_12 = arith.constant dense<0.000000e+00> : vector<196x32xf32>
    %9 = tpu.matmul %8, %0, %cst_12 {dimension_numbers = #tpu.dot_dimension_numbers<[1], [0], [0], [1], [0, 0, 1, 1], [], []>} : vector<196x9xf32>, vector<9x32xf32>, vector<196x32xf32> -> vector<196x32xf32>
    %c0_13 = arith.constant 0 : index
    %c3 = arith.constant 3 : index
    %c0_14 = arith.constant 0 : index
    %c0_15 = arith.constant 0 : index
    %10 = vector.load %arg1[%c0_13, %c3, %c0_14, %c0_15] : memref<1x4x196x9xf32, #tpu.memory_space<vmem>>, vector<1x1x196x9xf32>
    %11 = vector.shape_cast %10 : vector<1x1x196x9xf32> to vector<196x9xf32>
    %cst_16 = arith.constant dense<0.000000e+00> : vector<196x32xf32>
    %12 = tpu.matmul %11, %0, %cst_16 {dimension_numbers = #tpu.dot_dimension_numbers<[1], [0], [0], [1], [0, 0, 1, 1], [], []>} : vector<196x9xf32>, vector<9x32xf32>, vector<196x32xf32> -> vector<196x32xf32>
    %13 = arith.maximumf %3, %6 : vector<196x32xf32>
    %14 = arith.maximumf %9, %12 : vector<196x32xf32>
    %15 = arith.maximumf %13, %14 : vector<196x32xf32>
    %c0_17 = arith.constant 0 : index
    %c0_18 = arith.constant 0 : index
    %16 = vector.load %arg3[%c0_17, %c0_18] : memref<1x32xf32, #tpu.memory_space<vmem>>, vector<1x32xf32>
    %17 = vector.broadcast %16 : vector<1x32xf32> to vector<196x32xf32>
    %18 = arith.addf %15, %17 : vector<196x32xf32>
    %cst_19 = arith.constant 0.000000e+00 : f32
    %19 = vector.broadcast %cst_19 : f32 to vector<196x32xf32>
    %20 = arith.maximumf %18, %19 : vector<196x32xf32>
    %c0_20 = arith.constant 0 : index
    %c0_21 = arith.constant 0 : index
    %21 = vector.load %arg4[%c0_20, %c0_21] : memref<288x196xf32, #tpu.memory_space<vmem>>, vector<288x196xf32>
    %cst_22 = arith.constant dense<0.000000e+00> : vector<288x32xf32>
    %22 = tpu.matmul %21, %20, %cst_22 {dimension_numbers = #tpu.dot_dimension_numbers<[1], [0], [0], [1], [0, 0, 1, 1], [], []>} : vector<288x196xf32>, vector<196x32xf32>, vector<288x32xf32> -> vector<288x32xf32>
    %c0_23 = arith.constant 0 : index
    %c0_24 = arith.constant 0 : index
    %23 = vector.load %arg6[%c0_23, %c0_24] : memref<1x64xf32, #tpu.memory_space<vmem>>, vector<1x64xf32>
    %c0_25 = arith.constant 0 : index
    %c0_26 = arith.constant 0 : index
    %c0_27 = arith.constant 0 : index
    %24 = vector.load %arg5[%c0_25, %c0_26, %c0_27] : memref<9x32x64xf32, #tpu.memory_space<vmem>>, vector<1x32x64xf32>
    %25 = vector.shape_cast %24 : vector<1x32x64xf32> to vector<32x64xf32>
    %c1_28 = arith.constant 1 : index
    %c0_29 = arith.constant 0 : index
    %c0_30 = arith.constant 0 : index
    %26 = vector.load %arg5[%c1_28, %c0_29, %c0_30] : memref<9x32x64xf32, #tpu.memory_space<vmem>>, vector<1x32x64xf32>
    %27 = vector.shape_cast %26 : vector<1x32x64xf32> to vector<32x64xf32>
    %c2_31 = arith.constant 2 : index
    %c0_32 = arith.constant 0 : index
    %c0_33 = arith.constant 0 : index
    %28 = vector.load %arg5[%c2_31, %c0_32, %c0_33] : memref<9x32x64xf32, #tpu.memory_space<vmem>>, vector<1x32x64xf32>
    %29 = vector.shape_cast %28 : vector<1x32x64xf32> to vector<32x64xf32>
    %c3_34 = arith.constant 3 : index
    %c0_35 = arith.constant 0 : index
    %c0_36 = arith.constant 0 : index
    %30 = vector.load %arg5[%c3_34, %c0_35, %c0_36] : memref<9x32x64xf32, #tpu.memory_space<vmem>>, vector<1x32x64xf32>
    %31 = vector.shape_cast %30 : vector<1x32x64xf32> to vector<32x64xf32>
    %c4 = arith.constant 4 : index
    %c0_37 = arith.constant 0 : index
    %c0_38 = arith.constant 0 : index
    %32 = vector.load %arg5[%c4, %c0_37, %c0_38] : memref<9x32x64xf32, #tpu.memory_space<vmem>>, vector<1x32x64xf32>
    %33 = vector.shape_cast %32 : vector<1x32x64xf32> to vector<32x64xf32>
    %c5 = arith.constant 5 : index
    %c0_39 = arith.constant 0 : index
    %c0_40 = arith.constant 0 : index
    %34 = vector.load %arg5[%c5, %c0_39, %c0_40] : memref<9x32x64xf32, #tpu.memory_space<vmem>>, vector<1x32x64xf32>
    %35 = vector.shape_cast %34 : vector<1x32x64xf32> to vector<32x64xf32>
    %c6 = arith.constant 6 : index
    %c0_41 = arith.constant 0 : index
    %c0_42 = arith.constant 0 : index
    %36 = vector.load %arg5[%c6, %c0_41, %c0_42] : memref<9x32x64xf32, #tpu.memory_space<vmem>>, vector<1x32x64xf32>
    %37 = vector.shape_cast %36 : vector<1x32x64xf32> to vector<32x64xf32>
    %c7 = arith.constant 7 : index
    %c0_43 = arith.constant 0 : index
    %c0_44 = arith.constant 0 : index
    %38 = vector.load %arg5[%c7, %c0_43, %c0_44] : memref<9x32x64xf32, #tpu.memory_space<vmem>>, vector<1x32x64xf32>
    %39 = vector.shape_cast %38 : vector<1x32x64xf32> to vector<32x64xf32>
    %c8 = arith.constant 8 : index
    %c0_45 = arith.constant 0 : index
    %c0_46 = arith.constant 0 : index
    %40 = vector.load %arg5[%c8, %c0_45, %c0_46] : memref<9x32x64xf32, #tpu.memory_space<vmem>>, vector<1x32x64xf32>
    %41 = vector.shape_cast %40 : vector<1x32x64xf32> to vector<32x64xf32>
    %cst_47 = arith.constant 0.000000e+00 : f32
    %42 = vector.broadcast %cst_47 : f32 to vector<56x64xf32>
    %43 = vector.extract_strided_slice %22 {offsets = [0, 0], sizes = [56, 32], strides = [1, 1]} : vector<288x32xf32> to vector<56x32xf32>
    %cst_48 = arith.constant dense<0.000000e+00> : vector<56x64xf32>
    %44 = tpu.matmul %43, %25, %cst_48 {dimension_numbers = #tpu.dot_dimension_numbers<[1], [0], [0], [1], [0, 0, 1, 1], [], []>} : vector<56x32xf32>, vector<32x64xf32>, vector<56x64xf32> -> vector<56x64xf32>
    %45 = arith.addf %42, %44 : vector<56x64xf32>
    %46 = vector.extract_strided_slice %22 {offsets = [72, 0], sizes = [56, 32], strides = [1, 1]} : vector<288x32xf32> to vector<56x32xf32>
    %cst_49 = arith.constant dense<0.000000e+00> : vector<56x64xf32>
    %47 = tpu.matmul %46, %27, %cst_49 {dimension_numbers = #tpu.dot_dimension_numbers<[1], [0], [0], [1], [0, 0, 1, 1], [], []>} : vector<56x32xf32>, vector<32x64xf32>, vector<56x64xf32> -> vector<56x64xf32>
    %48 = arith.addf %45, %47 : vector<56x64xf32>
    %49 = vector.extract_strided_slice %22 {offsets = [1, 0], sizes = [56, 32], strides = [1, 1]} : vector<288x32xf32> to vector<56x32xf32>
    %cst_50 = arith.constant dense<0.000000e+00> : vector<56x64xf32>
    %50 = tpu.matmul %49, %29, %cst_50 {dimension_numbers = #tpu.dot_dimension_numbers<[1], [0], [0], [1], [0, 0, 1, 1], [], []>} : vector<56x32xf32>, vector<32x64xf32>, vector<56x64xf32> -> vector<56x64xf32>
    %51 = arith.addf %48, %50 : vector<56x64xf32>
    %52 = vector.extract_strided_slice %22 {offsets = [144, 0], sizes = [56, 32], strides = [1, 1]} : vector<288x32xf32> to vector<56x32xf32>
    %cst_51 = arith.constant dense<0.000000e+00> : vector<56x64xf32>
    %53 = tpu.matmul %52, %31, %cst_51 {dimension_numbers = #tpu.dot_dimension_numbers<[1], [0], [0], [1], [0, 0, 1, 1], [], []>} : vector<56x32xf32>, vector<32x64xf32>, vector<56x64xf32> -> vector<56x64xf32>
    %54 = arith.addf %51, %53 : vector<56x64xf32>
    %55 = vector.extract_strided_slice %22 {offsets = [216, 0], sizes = [56, 32], strides = [1, 1]} : vector<288x32xf32> to vector<56x32xf32>
    %cst_52 = arith.constant dense<0.000000e+00> : vector<56x64xf32>
    %56 = tpu.matmul %55, %33, %cst_52 {dimension_numbers = #tpu.dot_dimension_numbers<[1], [0], [0], [1], [0, 0, 1, 1], [], []>} : vector<56x32xf32>, vector<32x64xf32>, vector<56x64xf32> -> vector<56x64xf32>
    %57 = arith.addf %54, %56 : vector<56x64xf32>
    %58 = vector.extract_strided_slice %22 {offsets = [145, 0], sizes = [56, 32], strides = [1, 1]} : vector<288x32xf32> to vector<56x32xf32>
    %cst_53 = arith.constant dense<0.000000e+00> : vector<56x64xf32>
    %59 = tpu.matmul %58, %35, %cst_53 {dimension_numbers = #tpu.dot_dimension_numbers<[1], [0], [0], [1], [0, 0, 1, 1], [], []>} : vector<56x32xf32>, vector<32x64xf32>, vector<56x64xf32> -> vector<56x64xf32>
    %60 = arith.addf %57, %59 : vector<56x64xf32>
    %61 = vector.extract_strided_slice %22 {offsets = [8, 0], sizes = [56, 32], strides = [1, 1]} : vector<288x32xf32> to vector<56x32xf32>
    %cst_54 = arith.constant dense<0.000000e+00> : vector<56x64xf32>
    %62 = tpu.matmul %61, %37, %cst_54 {dimension_numbers = #tpu.dot_dimension_numbers<[1], [0], [0], [1], [0, 0, 1, 1], [], []>} : vector<56x32xf32>, vector<32x64xf32>, vector<56x64xf32> -> vector<56x64xf32>
    %63 = arith.addf %60, %62 : vector<56x64xf32>
    %64 = vector.extract_strided_slice %22 {offsets = [80, 0], sizes = [56, 32], strides = [1, 1]} : vector<288x32xf32> to vector<56x32xf32>
    %cst_55 = arith.constant dense<0.000000e+00> : vector<56x64xf32>
    %65 = tpu.matmul %64, %39, %cst_55 {dimension_numbers = #tpu.dot_dimension_numbers<[1], [0], [0], [1], [0, 0, 1, 1], [], []>} : vector<56x32xf32>, vector<32x64xf32>, vector<56x64xf32> -> vector<56x64xf32>
    %66 = arith.addf %63, %65 : vector<56x64xf32>
    %67 = vector.extract_strided_slice %22 {offsets = [9, 0], sizes = [56, 32], strides = [1, 1]} : vector<288x32xf32> to vector<56x32xf32>
    %cst_56 = arith.constant dense<0.000000e+00> : vector<56x64xf32>
    %68 = tpu.matmul %67, %41, %cst_56 {dimension_numbers = #tpu.dot_dimension_numbers<[1], [0], [0], [1], [0, 0, 1, 1], [], []>} : vector<56x32xf32>, vector<32x64xf32>, vector<56x64xf32> -> vector<56x64xf32>
    %69 = arith.addf %66, %68 : vector<56x64xf32>
    %cst_57 = arith.constant 0.000000e+00 : f32
    %70 = vector.broadcast %cst_57 : f32 to vector<56x64xf32>
    %71 = vector.extract_strided_slice %22 {offsets = [72, 0], sizes = [56, 32], strides = [1, 1]} : vector<288x32xf32> to vector<56x32xf32>
    %cst_58 = arith.constant dense<0.000000e+00> : vector<56x64xf32>
    %72 = tpu.matmul %71, %25, %cst_58 {dimension_numbers = #tpu.dot_dimension_numbers<[1], [0], [0], [1], [0, 0, 1, 1], [], []>} : vector<56x32xf32>, vector<32x64xf32>, vector<56x64xf32> -> vector<56x64xf32>
    %73 = arith.addf %70, %72 : vector<56x64xf32>
    %74 = vector.extract_strided_slice %22 {offsets = [1, 0], sizes = [56, 32], strides = [1, 1]} : vector<288x32xf32> to vector<56x32xf32>
    %cst_59 = arith.constant dense<0.000000e+00> : vector<56x64xf32>
    %75 = tpu.matmul %74, %27, %cst_59 {dimension_numbers = #tpu.dot_dimension_numbers<[1], [0], [0], [1], [0, 0, 1, 1], [], []>} : vector<56x32xf32>, vector<32x64xf32>, vector<56x64xf32> -> vector<56x64xf32>
    %76 = arith.addf %73, %75 : vector<56x64xf32>
    %77 = vector.extract_strided_slice %22 {offsets = [73, 0], sizes = [56, 32], strides = [1, 1]} : vector<288x32xf32> to vector<56x32xf32>
    %cst_60 = arith.constant dense<0.000000e+00> : vector<56x64xf32>
    %78 = tpu.matmul %77, %29, %cst_60 {dimension_numbers = #tpu.dot_dimension_numbers<[1], [0], [0], [1], [0, 0, 1, 1], [], []>} : vector<56x32xf32>, vector<32x64xf32>, vector<56x64xf32> -> vector<56x64xf32>
    %79 = arith.addf %76, %78 : vector<56x64xf32>
    %80 = vector.extract_strided_slice %22 {offsets = [216, 0], sizes = [56, 32], strides = [1, 1]} : vector<288x32xf32> to vector<56x32xf32>
    %cst_61 = arith.constant dense<0.000000e+00> : vector<56x64xf32>
    %81 = tpu.matmul %80, %31, %cst_61 {dimension_numbers = #tpu.dot_dimension_numbers<[1], [0], [0], [1], [0, 0, 1, 1], [], []>} : vector<56x32xf32>, vector<32x64xf32>, vector<56x64xf32> -> vector<56x64xf32>
    %82 = arith.addf %79, %81 : vector<56x64xf32>
    %83 = vector.extract_strided_slice %22 {offsets = [145, 0], sizes = [56, 32], strides = [1, 1]} : vector<288x32xf32> to vector<56x32xf32>
    %cst_62 = arith.constant dense<0.000000e+00> : vector<56x64xf32>
    %84 = tpu.matmul %83, %33, %cst_62 {dimension_numbers = #tpu.dot_dimension_numbers<[1], [0], [0], [1], [0, 0, 1, 1], [], []>} : vector<56x32xf32>, vector<32x64xf32>, vector<56x64xf32> -> vector<56x64xf32>
    %85 = arith.addf %82, %84 : vector<56x64xf32>
    %86 = vector.extract_strided_slice %22 {offsets = [217, 0], sizes = [56, 32], strides = [1, 1]} : vector<288x32xf32> to vector<56x32xf32>
    %cst_63 = arith.constant dense<0.000000e+00> : vector<56x64xf32>
    %87 = tpu.matmul %86, %35, %cst_63 {dimension_numbers = #tpu.dot_dimension_numbers<[1], [0], [0], [1], [0, 0, 1, 1], [], []>} : vector<56x32xf32>, vector<32x64xf32>, vector<56x64xf32> -> vector<56x64xf32>
    %88 = arith.addf %85, %87 : vector<56x64xf32>
    %89 = vector.extract_strided_slice %22 {offsets = [80, 0], sizes = [56, 32], strides = [1, 1]} : vector<288x32xf32> to vector<56x32xf32>
    %cst_64 = arith.constant dense<0.000000e+00> : vector<56x64xf32>
    %90 = tpu.matmul %89, %37, %cst_64 {dimension_numbers = #tpu.dot_dimension_numbers<[1], [0], [0], [1], [0, 0, 1, 1], [], []>} : vector<56x32xf32>, vector<32x64xf32>, vector<56x64xf32> -> vector<56x64xf32>
    %91 = arith.addf %88, %90 : vector<56x64xf32>
    %92 = vector.extract_strided_slice %22 {offsets = [9, 0], sizes = [56, 32], strides = [1, 1]} : vector<288x32xf32> to vector<56x32xf32>
    %cst_65 = arith.constant dense<0.000000e+00> : vector<56x64xf32>
    %93 = tpu.matmul %92, %39, %cst_65 {dimension_numbers = #tpu.dot_dimension_numbers<[1], [0], [0], [1], [0, 0, 1, 1], [], []>} : vector<56x32xf32>, vector<32x64xf32>, vector<56x64xf32> -> vector<56x64xf32>
    %94 = arith.addf %91, %93 : vector<56x64xf32>
    %95 = vector.extract_strided_slice %22 {offsets = [81, 0], sizes = [56, 32], strides = [1, 1]} : vector<288x32xf32> to vector<56x32xf32>
    %cst_66 = arith.constant dense<0.000000e+00> : vector<56x64xf32>
    %96 = tpu.matmul %95, %41, %cst_66 {dimension_numbers = #tpu.dot_dimension_numbers<[1], [0], [0], [1], [0, 0, 1, 1], [], []>} : vector<56x32xf32>, vector<32x64xf32>, vector<56x64xf32> -> vector<56x64xf32>
    %97 = arith.addf %94, %96 : vector<56x64xf32>
    %cst_67 = arith.constant 0.000000e+00 : f32
    %98 = vector.broadcast %cst_67 : f32 to vector<56x64xf32>
    %99 = vector.extract_strided_slice %22 {offsets = [144, 0], sizes = [56, 32], strides = [1, 1]} : vector<288x32xf32> to vector<56x32xf32>
    %cst_68 = arith.constant dense<0.000000e+00> : vector<56x64xf32>
    %100 = tpu.matmul %99, %25, %cst_68 {dimension_numbers = #tpu.dot_dimension_numbers<[1], [0], [0], [1], [0, 0, 1, 1], [], []>} : vector<56x32xf32>, vector<32x64xf32>, vector<56x64xf32> -> vector<56x64xf32>
    %101 = arith.addf %98, %100 : vector<56x64xf32>
    %102 = vector.extract_strided_slice %22 {offsets = [216, 0], sizes = [56, 32], strides = [1, 1]} : vector<288x32xf32> to vector<56x32xf32>
    %cst_69 = arith.constant dense<0.000000e+00> : vector<56x64xf32>
    %103 = tpu.matmul %102, %27, %cst_69 {dimension_numbers = #tpu.dot_dimension_numbers<[1], [0], [0], [1], [0, 0, 1, 1], [], []>} : vector<56x32xf32>, vector<32x64xf32>, vector<56x64xf32> -> vector<56x64xf32>
    %104 = arith.addf %101, %103 : vector<56x64xf32>
    %105 = vector.extract_strided_slice %22 {offsets = [145, 0], sizes = [56, 32], strides = [1, 1]} : vector<288x32xf32> to vector<56x32xf32>
    %cst_70 = arith.constant dense<0.000000e+00> : vector<56x64xf32>
    %106 = tpu.matmul %105, %29, %cst_70 {dimension_numbers = #tpu.dot_dimension_numbers<[1], [0], [0], [1], [0, 0, 1, 1], [], []>} : vector<56x32xf32>, vector<32x64xf32>, vector<56x64xf32> -> vector<56x64xf32>
    %107 = arith.addf %104, %106 : vector<56x64xf32>
    %108 = vector.extract_strided_slice %22 {offsets = [8, 0], sizes = [56, 32], strides = [1, 1]} : vector<288x32xf32> to vector<56x32xf32>
    %cst_71 = arith.constant dense<0.000000e+00> : vector<56x64xf32>
    %109 = tpu.matmul %108, %31, %cst_71 {dimension_numbers = #tpu.dot_dimension_numbers<[1], [0], [0], [1], [0, 0, 1, 1], [], []>} : vector<56x32xf32>, vector<32x64xf32>, vector<56x64xf32> -> vector<56x64xf32>
    %110 = arith.addf %107, %109 : vector<56x64xf32>
    %111 = vector.extract_strided_slice %22 {offsets = [80, 0], sizes = [56, 32], strides = [1, 1]} : vector<288x32xf32> to vector<56x32xf32>
    %cst_72 = arith.constant dense<0.000000e+00> : vector<56x64xf32>
    %112 = tpu.matmul %111, %33, %cst_72 {dimension_numbers = #tpu.dot_dimension_numbers<[1], [0], [0], [1], [0, 0, 1, 1], [], []>} : vector<56x32xf32>, vector<32x64xf32>, vector<56x64xf32> -> vector<56x64xf32>
    %113 = arith.addf %110, %112 : vector<56x64xf32>
    %114 = vector.extract_strided_slice %22 {offsets = [9, 0], sizes = [56, 32], strides = [1, 1]} : vector<288x32xf32> to vector<56x32xf32>
    %cst_73 = arith.constant dense<0.000000e+00> : vector<56x64xf32>
    %115 = tpu.matmul %114, %35, %cst_73 {dimension_numbers = #tpu.dot_dimension_numbers<[1], [0], [0], [1], [0, 0, 1, 1], [], []>} : vector<56x32xf32>, vector<32x64xf32>, vector<56x64xf32> -> vector<56x64xf32>
    %116 = arith.addf %113, %115 : vector<56x64xf32>
    %117 = vector.extract_strided_slice %22 {offsets = [152, 0], sizes = [56, 32], strides = [1, 1]} : vector<288x32xf32> to vector<56x32xf32>
    %cst_74 = arith.constant dense<0.000000e+00> : vector<56x64xf32>
    %118 = tpu.matmul %117, %37, %cst_74 {dimension_numbers = #tpu.dot_dimension_numbers<[1], [0], [0], [1], [0, 0, 1, 1], [], []>} : vector<56x32xf32>, vector<32x64xf32>, vector<56x64xf32> -> vector<56x64xf32>
    %119 = arith.addf %116, %118 : vector<56x64xf32>
    %120 = vector.extract_strided_slice %22 {offsets = [224, 0], sizes = [56, 32], strides = [1, 1]} : vector<288x32xf32> to vector<56x32xf32>
    %cst_75 = arith.constant dense<0.000000e+00> : vector<56x64xf32>
    %121 = tpu.matmul %120, %39, %cst_75 {dimension_numbers = #tpu.dot_dimension_numbers<[1], [0], [0], [1], [0, 0, 1, 1], [], []>} : vector<56x32xf32>, vector<32x64xf32>, vector<56x64xf32> -> vector<56x64xf32>
    %122 = arith.addf %119, %121 : vector<56x64xf32>
    %123 = vector.extract_strided_slice %22 {offsets = [153, 0], sizes = [56, 32], strides = [1, 1]} : vector<288x32xf32> to vector<56x32xf32>
    %cst_76 = arith.constant dense<0.000000e+00> : vector<56x64xf32>
    %124 = tpu.matmul %123, %41, %cst_76 {dimension_numbers = #tpu.dot_dimension_numbers<[1], [0], [0], [1], [0, 0, 1, 1], [], []>} : vector<56x32xf32>, vector<32x64xf32>, vector<56x64xf32> -> vector<56x64xf32>
    %125 = arith.addf %122, %124 : vector<56x64xf32>
    %cst_77 = arith.constant 0.000000e+00 : f32
    %126 = vector.broadcast %cst_77 : f32 to vector<56x64xf32>
    %127 = vector.extract_strided_slice %22 {offsets = [216, 0], sizes = [56, 32], strides = [1, 1]} : vector<288x32xf32> to vector<56x32xf32>
    %cst_78 = arith.constant dense<0.000000e+00> : vector<56x64xf32>
    %128 = tpu.matmul %127, %25, %cst_78 {dimension_numbers = #tpu.dot_dimension_numbers<[1], [0], [0], [1], [0, 0, 1, 1], [], []>} : vector<56x32xf32>, vector<32x64xf32>, vector<56x64xf32> -> vector<56x64xf32>
    %129 = arith.addf %126, %128 : vector<56x64xf32>
    %130 = vector.extract_strided_slice %22 {offsets = [145, 0], sizes = [56, 32], strides = [1, 1]} : vector<288x32xf32> to vector<56x32xf32>
    %cst_79 = arith.constant dense<0.000000e+00> : vector<56x64xf32>
    %131 = tpu.matmul %130, %27, %cst_79 {dimension_numbers = #tpu.dot_dimension_numbers<[1], [0], [0], [1], [0, 0, 1, 1], [], []>} : vector<56x32xf32>, vector<32x64xf32>, vector<56x64xf32> -> vector<56x64xf32>
    %132 = arith.addf %129, %131 : vector<56x64xf32>
    %133 = vector.extract_strided_slice %22 {offsets = [217, 0], sizes = [56, 32], strides = [1, 1]} : vector<288x32xf32> to vector<56x32xf32>
    %cst_80 = arith.constant dense<0.000000e+00> : vector<56x64xf32>
    %134 = tpu.matmul %133, %29, %cst_80 {dimension_numbers = #tpu.dot_dimension_numbers<[1], [0], [0], [1], [0, 0, 1, 1], [], []>} : vector<56x32xf32>, vector<32x64xf32>, vector<56x64xf32> -> vector<56x64xf32>
    %135 = arith.addf %132, %134 : vector<56x64xf32>
    %136 = vector.extract_strided_slice %22 {offsets = [80, 0], sizes = [56, 32], strides = [1, 1]} : vector<288x32xf32> to vector<56x32xf32>
    %cst_81 = arith.constant dense<0.000000e+00> : vector<56x64xf32>
    %137 = tpu.matmul %136, %31, %cst_81 {dimension_numbers = #tpu.dot_dimension_numbers<[1], [0], [0], [1], [0, 0, 1, 1], [], []>} : vector<56x32xf32>, vector<32x64xf32>, vector<56x64xf32> -> vector<56x64xf32>
    %138 = arith.addf %135, %137 : vector<56x64xf32>
    %139 = vector.extract_strided_slice %22 {offsets = [9, 0], sizes = [56, 32], strides = [1, 1]} : vector<288x32xf32> to vector<56x32xf32>
    %cst_82 = arith.constant dense<0.000000e+00> : vector<56x64xf32>
    %140 = tpu.matmul %139, %33, %cst_82 {dimension_numbers = #tpu.dot_dimension_numbers<[1], [0], [0], [1], [0, 0, 1, 1], [], []>} : vector<56x32xf32>, vector<32x64xf32>, vector<56x64xf32> -> vector<56x64xf32>
    %141 = arith.addf %138, %140 : vector<56x64xf32>
    %142 = vector.extract_strided_slice %22 {offsets = [81, 0], sizes = [56, 32], strides = [1, 1]} : vector<288x32xf32> to vector<56x32xf32>
    %cst_83 = arith.constant dense<0.000000e+00> : vector<56x64xf32>
    %143 = tpu.matmul %142, %35, %cst_83 {dimension_numbers = #tpu.dot_dimension_numbers<[1], [0], [0], [1], [0, 0, 1, 1], [], []>} : vector<56x32xf32>, vector<32x64xf32>, vector<56x64xf32> -> vector<56x64xf32>
    %144 = arith.addf %141, %143 : vector<56x64xf32>
    %145 = vector.extract_strided_slice %22 {offsets = [224, 0], sizes = [56, 32], strides = [1, 1]} : vector<288x32xf32> to vector<56x32xf32>
    %cst_84 = arith.constant dense<0.000000e+00> : vector<56x64xf32>
    %146 = tpu.matmul %145, %37, %cst_84 {dimension_numbers = #tpu.dot_dimension_numbers<[1], [0], [0], [1], [0, 0, 1, 1], [], []>} : vector<56x32xf32>, vector<32x64xf32>, vector<56x64xf32> -> vector<56x64xf32>
    %147 = arith.addf %144, %146 : vector<56x64xf32>
    %148 = vector.extract_strided_slice %22 {offsets = [153, 0], sizes = [56, 32], strides = [1, 1]} : vector<288x32xf32> to vector<56x32xf32>
    %cst_85 = arith.constant dense<0.000000e+00> : vector<56x64xf32>
    %149 = tpu.matmul %148, %39, %cst_85 {dimension_numbers = #tpu.dot_dimension_numbers<[1], [0], [0], [1], [0, 0, 1, 1], [], []>} : vector<56x32xf32>, vector<32x64xf32>, vector<56x64xf32> -> vector<56x64xf32>
    %150 = arith.addf %147, %149 : vector<56x64xf32>
    %151 = vector.extract_strided_slice %22 {offsets = [225, 0], sizes = [56, 32], strides = [1, 1]} : vector<288x32xf32> to vector<56x32xf32>
    %cst_86 = arith.constant dense<0.000000e+00> : vector<56x64xf32>
    %152 = tpu.matmul %151, %41, %cst_86 {dimension_numbers = #tpu.dot_dimension_numbers<[1], [0], [0], [1], [0, 0, 1, 1], [], []>} : vector<56x32xf32>, vector<32x64xf32>, vector<56x64xf32> -> vector<56x64xf32>
    %153 = arith.addf %150, %152 : vector<56x64xf32>
    %154 = arith.maximumf %69, %97 : vector<56x64xf32>
    %155 = arith.maximumf %125, %153 : vector<56x64xf32>
    %156 = arith.maximumf %154, %155 : vector<56x64xf32>
    %157 = vector.broadcast %23 : vector<1x64xf32> to vector<56x64xf32>
    %158 = arith.addf %156, %157 : vector<56x64xf32>
    %cst_87 = arith.constant 0.000000e+00 : f32
    %159 = vector.broadcast %cst_87 : f32 to vector<56x64xf32>
    %160 = arith.maximumf %158, %159 : vector<56x64xf32>
    %c0_88 = arith.constant 0 : index
    %c0_89 = arith.constant 0 : index
    %161 = vector.load %arg7[%c0_88, %c0_89] : memref<96x56xf32, #tpu.memory_space<vmem>>, vector<96x56xf32>
    %cst_90 = arith.constant dense<0.000000e+00> : vector<96x64xf32>
    %162 = tpu.matmul %161, %160, %cst_90 {dimension_numbers = #tpu.dot_dimension_numbers<[1], [0], [0], [1], [0, 0, 1, 1], [], []>} : vector<96x56xf32>, vector<56x64xf32>, vector<96x64xf32> -> vector<96x64xf32>
    %c0_91 = arith.constant 0 : index
    %c0_92 = arith.constant 0 : index
    %163 = vector.load %arg9[%c0_91, %c0_92] : memref<1x128xf32, #tpu.memory_space<vmem>>, vector<1x128xf32>
    %c0_93 = arith.constant 0 : index
    %c0_94 = arith.constant 0 : index
    %c0_95 = arith.constant 0 : index
    %164 = vector.load %arg8[%c0_93, %c0_94, %c0_95] : memref<9x64x128xf32, #tpu.memory_space<vmem>>, vector<1x64x128xf32>
    %165 = vector.shape_cast %164 : vector<1x64x128xf32> to vector<64x128xf32>
    %c1_96 = arith.constant 1 : index
    %c0_97 = arith.constant 0 : index
    %c0_98 = arith.constant 0 : index
    %166 = vector.load %arg8[%c1_96, %c0_97, %c0_98] : memref<9x64x128xf32, #tpu.memory_space<vmem>>, vector<1x64x128xf32>
    %167 = vector.shape_cast %166 : vector<1x64x128xf32> to vector<64x128xf32>
    %c2_99 = arith.constant 2 : index
    %c0_100 = arith.constant 0 : index
    %c0_101 = arith.constant 0 : index
    %168 = vector.load %arg8[%c2_99, %c0_100, %c0_101] : memref<9x64x128xf32, #tpu.memory_space<vmem>>, vector<1x64x128xf32>
    %169 = vector.shape_cast %168 : vector<1x64x128xf32> to vector<64x128xf32>
    %c3_102 = arith.constant 3 : index
    %c0_103 = arith.constant 0 : index
    %c0_104 = arith.constant 0 : index
    %170 = vector.load %arg8[%c3_102, %c0_103, %c0_104] : memref<9x64x128xf32, #tpu.memory_space<vmem>>, vector<1x64x128xf32>
    %171 = vector.shape_cast %170 : vector<1x64x128xf32> to vector<64x128xf32>
    %c4_105 = arith.constant 4 : index
    %c0_106 = arith.constant 0 : index
    %c0_107 = arith.constant 0 : index
    %172 = vector.load %arg8[%c4_105, %c0_106, %c0_107] : memref<9x64x128xf32, #tpu.memory_space<vmem>>, vector<1x64x128xf32>
    %173 = vector.shape_cast %172 : vector<1x64x128xf32> to vector<64x128xf32>
    %c5_108 = arith.constant 5 : index
    %c0_109 = arith.constant 0 : index
    %c0_110 = arith.constant 0 : index
    %174 = vector.load %arg8[%c5_108, %c0_109, %c0_110] : memref<9x64x128xf32, #tpu.memory_space<vmem>>, vector<1x64x128xf32>
    %175 = vector.shape_cast %174 : vector<1x64x128xf32> to vector<64x128xf32>
    %c6_111 = arith.constant 6 : index
    %c0_112 = arith.constant 0 : index
    %c0_113 = arith.constant 0 : index
    %176 = vector.load %arg8[%c6_111, %c0_112, %c0_113] : memref<9x64x128xf32, #tpu.memory_space<vmem>>, vector<1x64x128xf32>
    %177 = vector.shape_cast %176 : vector<1x64x128xf32> to vector<64x128xf32>
    %c7_114 = arith.constant 7 : index
    %c0_115 = arith.constant 0 : index
    %c0_116 = arith.constant 0 : index
    %178 = vector.load %arg8[%c7_114, %c0_115, %c0_116] : memref<9x64x128xf32, #tpu.memory_space<vmem>>, vector<1x64x128xf32>
    %179 = vector.shape_cast %178 : vector<1x64x128xf32> to vector<64x128xf32>
    %c8_117 = arith.constant 8 : index
    %c0_118 = arith.constant 0 : index
    %c0_119 = arith.constant 0 : index
    %180 = vector.load %arg8[%c8_117, %c0_118, %c0_119] : memref<9x64x128xf32, #tpu.memory_space<vmem>>, vector<1x64x128xf32>
    %181 = vector.shape_cast %180 : vector<1x64x128xf32> to vector<64x128xf32>
    %cst_120 = arith.constant 0.000000e+00 : f32
    %182 = vector.broadcast %cst_120 : f32 to vector<16x128xf32>
    %183 = vector.extract_strided_slice %162 {offsets = [0, 0], sizes = [16, 64], strides = [1, 1]} : vector<96x64xf32> to vector<16x64xf32>
    %cst_121 = arith.constant dense<0.000000e+00> : vector<16x128xf32>
    %184 = tpu.matmul %183, %165, %cst_121 {dimension_numbers = #tpu.dot_dimension_numbers<[1], [0], [0], [1], [0, 0, 1, 1], [], []>} : vector<16x64xf32>, vector<64x128xf32>, vector<16x128xf32> -> vector<16x128xf32>
    %185 = arith.addf %182, %184 : vector<16x128xf32>
    %186 = vector.extract_strided_slice %162 {offsets = [24, 0], sizes = [16, 64], strides = [1, 1]} : vector<96x64xf32> to vector<16x64xf32>
    %cst_122 = arith.constant dense<0.000000e+00> : vector<16x128xf32>
    %187 = tpu.matmul %186, %167, %cst_122 {dimension_numbers = #tpu.dot_dimension_numbers<[1], [0], [0], [1], [0, 0, 1, 1], [], []>} : vector<16x64xf32>, vector<64x128xf32>, vector<16x128xf32> -> vector<16x128xf32>
    %188 = arith.addf %185, %187 : vector<16x128xf32>
    %189 = vector.extract_strided_slice %162 {offsets = [1, 0], sizes = [16, 64], strides = [1, 1]} : vector<96x64xf32> to vector<16x64xf32>
    %cst_123 = arith.constant dense<0.000000e+00> : vector<16x128xf32>
    %190 = tpu.matmul %189, %169, %cst_123 {dimension_numbers = #tpu.dot_dimension_numbers<[1], [0], [0], [1], [0, 0, 1, 1], [], []>} : vector<16x64xf32>, vector<64x128xf32>, vector<16x128xf32> -> vector<16x128xf32>
    %191 = arith.addf %188, %190 : vector<16x128xf32>
    %192 = vector.extract_strided_slice %162 {offsets = [48, 0], sizes = [16, 64], strides = [1, 1]} : vector<96x64xf32> to vector<16x64xf32>
    %cst_124 = arith.constant dense<0.000000e+00> : vector<16x128xf32>
    %193 = tpu.matmul %192, %171, %cst_124 {dimension_numbers = #tpu.dot_dimension_numbers<[1], [0], [0], [1], [0, 0, 1, 1], [], []>} : vector<16x64xf32>, vector<64x128xf32>, vector<16x128xf32> -> vector<16x128xf32>
    %194 = arith.addf %191, %193 : vector<16x128xf32>
    %195 = vector.extract_strided_slice %162 {offsets = [72, 0], sizes = [16, 64], strides = [1, 1]} : vector<96x64xf32> to vector<16x64xf32>
    %cst_125 = arith.constant dense<0.000000e+00> : vector<16x128xf32>
    %196 = tpu.matmul %195, %173, %cst_125 {dimension_numbers = #tpu.dot_dimension_numbers<[1], [0], [0], [1], [0, 0, 1, 1], [], []>} : vector<16x64xf32>, vector<64x128xf32>, vector<16x128xf32> -> vector<16x128xf32>
    %197 = arith.addf %194, %196 : vector<16x128xf32>
    %198 = vector.extract_strided_slice %162 {offsets = [49, 0], sizes = [16, 64], strides = [1, 1]} : vector<96x64xf32> to vector<16x64xf32>
    %cst_126 = arith.constant dense<0.000000e+00> : vector<16x128xf32>
    %199 = tpu.matmul %198, %175, %cst_126 {dimension_numbers = #tpu.dot_dimension_numbers<[1], [0], [0], [1], [0, 0, 1, 1], [], []>} : vector<16x64xf32>, vector<64x128xf32>, vector<16x128xf32> -> vector<16x128xf32>
    %200 = arith.addf %197, %199 : vector<16x128xf32>
    %201 = vector.extract_strided_slice %162 {offsets = [4, 0], sizes = [16, 64], strides = [1, 1]} : vector<96x64xf32> to vector<16x64xf32>
    %cst_127 = arith.constant dense<0.000000e+00> : vector<16x128xf32>
    %202 = tpu.matmul %201, %177, %cst_127 {dimension_numbers = #tpu.dot_dimension_numbers<[1], [0], [0], [1], [0, 0, 1, 1], [], []>} : vector<16x64xf32>, vector<64x128xf32>, vector<16x128xf32> -> vector<16x128xf32>
    %203 = arith.addf %200, %202 : vector<16x128xf32>
    %204 = vector.extract_strided_slice %162 {offsets = [28, 0], sizes = [16, 64], strides = [1, 1]} : vector<96x64xf32> to vector<16x64xf32>
    %cst_128 = arith.constant dense<0.000000e+00> : vector<16x128xf32>
    %205 = tpu.matmul %204, %179, %cst_128 {dimension_numbers = #tpu.dot_dimension_numbers<[1], [0], [0], [1], [0, 0, 1, 1], [], []>} : vector<16x64xf32>, vector<64x128xf32>, vector<16x128xf32> -> vector<16x128xf32>
    %206 = arith.addf %203, %205 : vector<16x128xf32>
    %207 = vector.extract_strided_slice %162 {offsets = [5, 0], sizes = [16, 64], strides = [1, 1]} : vector<96x64xf32> to vector<16x64xf32>
    %cst_129 = arith.constant dense<0.000000e+00> : vector<16x128xf32>
    %208 = tpu.matmul %207, %181, %cst_129 {dimension_numbers = #tpu.dot_dimension_numbers<[1], [0], [0], [1], [0, 0, 1, 1], [], []>} : vector<16x64xf32>, vector<64x128xf32>, vector<16x128xf32> -> vector<16x128xf32>
    %209 = arith.addf %206, %208 : vector<16x128xf32>
    %cst_130 = arith.constant 0.000000e+00 : f32
    %210 = vector.broadcast %cst_130 : f32 to vector<16x128xf32>
    %211 = vector.extract_strided_slice %162 {offsets = [24, 0], sizes = [16, 64], strides = [1, 1]} : vector<96x64xf32> to vector<16x64xf32>
    %cst_131 = arith.constant dense<0.000000e+00> : vector<16x128xf32>
    %212 = tpu.matmul %211, %165, %cst_131 {dimension_numbers = #tpu.dot_dimension_numbers<[1], [0], [0], [1], [0, 0, 1, 1], [], []>} : vector<16x64xf32>, vector<64x128xf32>, vector<16x128xf32> -> vector<16x128xf32>
    %213 = arith.addf %210, %212 : vector<16x128xf32>
    %214 = vector.extract_strided_slice %162 {offsets = [1, 0], sizes = [16, 64], strides = [1, 1]} : vector<96x64xf32> to vector<16x64xf32>
    %cst_132 = arith.constant dense<0.000000e+00> : vector<16x128xf32>
    %215 = tpu.matmul %214, %167, %cst_132 {dimension_numbers = #tpu.dot_dimension_numbers<[1], [0], [0], [1], [0, 0, 1, 1], [], []>} : vector<16x64xf32>, vector<64x128xf32>, vector<16x128xf32> -> vector<16x128xf32>
    %216 = arith.addf %213, %215 : vector<16x128xf32>
    %217 = vector.extract_strided_slice %162 {offsets = [25, 0], sizes = [16, 64], strides = [1, 1]} : vector<96x64xf32> to vector<16x64xf32>
    %cst_133 = arith.constant dense<0.000000e+00> : vector<16x128xf32>
    %218 = tpu.matmul %217, %169, %cst_133 {dimension_numbers = #tpu.dot_dimension_numbers<[1], [0], [0], [1], [0, 0, 1, 1], [], []>} : vector<16x64xf32>, vector<64x128xf32>, vector<16x128xf32> -> vector<16x128xf32>
    %219 = arith.addf %216, %218 : vector<16x128xf32>
    %220 = vector.extract_strided_slice %162 {offsets = [72, 0], sizes = [16, 64], strides = [1, 1]} : vector<96x64xf32> to vector<16x64xf32>
    %cst_134 = arith.constant dense<0.000000e+00> : vector<16x128xf32>
    %221 = tpu.matmul %220, %171, %cst_134 {dimension_numbers = #tpu.dot_dimension_numbers<[1], [0], [0], [1], [0, 0, 1, 1], [], []>} : vector<16x64xf32>, vector<64x128xf32>, vector<16x128xf32> -> vector<16x128xf32>
    %222 = arith.addf %219, %221 : vector<16x128xf32>
    %223 = vector.extract_strided_slice %162 {offsets = [49, 0], sizes = [16, 64], strides = [1, 1]} : vector<96x64xf32> to vector<16x64xf32>
    %cst_135 = arith.constant dense<0.000000e+00> : vector<16x128xf32>
    %224 = tpu.matmul %223, %173, %cst_135 {dimension_numbers = #tpu.dot_dimension_numbers<[1], [0], [0], [1], [0, 0, 1, 1], [], []>} : vector<16x64xf32>, vector<64x128xf32>, vector<16x128xf32> -> vector<16x128xf32>
    %225 = arith.addf %222, %224 : vector<16x128xf32>
    %226 = vector.extract_strided_slice %162 {offsets = [73, 0], sizes = [16, 64], strides = [1, 1]} : vector<96x64xf32> to vector<16x64xf32>
    %cst_136 = arith.constant dense<0.000000e+00> : vector<16x128xf32>
    %227 = tpu.matmul %226, %175, %cst_136 {dimension_numbers = #tpu.dot_dimension_numbers<[1], [0], [0], [1], [0, 0, 1, 1], [], []>} : vector<16x64xf32>, vector<64x128xf32>, vector<16x128xf32> -> vector<16x128xf32>
    %228 = arith.addf %225, %227 : vector<16x128xf32>
    %229 = vector.extract_strided_slice %162 {offsets = [28, 0], sizes = [16, 64], strides = [1, 1]} : vector<96x64xf32> to vector<16x64xf32>
    %cst_137 = arith.constant dense<0.000000e+00> : vector<16x128xf32>
    %230 = tpu.matmul %229, %177, %cst_137 {dimension_numbers = #tpu.dot_dimension_numbers<[1], [0], [0], [1], [0, 0, 1, 1], [], []>} : vector<16x64xf32>, vector<64x128xf32>, vector<16x128xf32> -> vector<16x128xf32>
    %231 = arith.addf %228, %230 : vector<16x128xf32>
    %232 = vector.extract_strided_slice %162 {offsets = [5, 0], sizes = [16, 64], strides = [1, 1]} : vector<96x64xf32> to vector<16x64xf32>
    %cst_138 = arith.constant dense<0.000000e+00> : vector<16x128xf32>
    %233 = tpu.matmul %232, %179, %cst_138 {dimension_numbers = #tpu.dot_dimension_numbers<[1], [0], [0], [1], [0, 0, 1, 1], [], []>} : vector<16x64xf32>, vector<64x128xf32>, vector<16x128xf32> -> vector<16x128xf32>
    %234 = arith.addf %231, %233 : vector<16x128xf32>
    %235 = vector.extract_strided_slice %162 {offsets = [29, 0], sizes = [16, 64], strides = [1, 1]} : vector<96x64xf32> to vector<16x64xf32>
    %cst_139 = arith.constant dense<0.000000e+00> : vector<16x128xf32>
    %236 = tpu.matmul %235, %181, %cst_139 {dimension_numbers = #tpu.dot_dimension_numbers<[1], [0], [0], [1], [0, 0, 1, 1], [], []>} : vector<16x64xf32>, vector<64x128xf32>, vector<16x128xf32> -> vector<16x128xf32>
    %237 = arith.addf %234, %236 : vector<16x128xf32>
    %cst_140 = arith.constant 0.000000e+00 : f32
    %238 = vector.broadcast %cst_140 : f32 to vector<16x128xf32>
    %239 = vector.extract_strided_slice %162 {offsets = [48, 0], sizes = [16, 64], strides = [1, 1]} : vector<96x64xf32> to vector<16x64xf32>
    %cst_141 = arith.constant dense<0.000000e+00> : vector<16x128xf32>
    %240 = tpu.matmul %239, %165, %cst_141 {dimension_numbers = #tpu.dot_dimension_numbers<[1], [0], [0], [1], [0, 0, 1, 1], [], []>} : vector<16x64xf32>, vector<64x128xf32>, vector<16x128xf32> -> vector<16x128xf32>
    %241 = arith.addf %238, %240 : vector<16x128xf32>
    %242 = vector.extract_strided_slice %162 {offsets = [72, 0], sizes = [16, 64], strides = [1, 1]} : vector<96x64xf32> to vector<16x64xf32>
    %cst_142 = arith.constant dense<0.000000e+00> : vector<16x128xf32>
    %243 = tpu.matmul %242, %167, %cst_142 {dimension_numbers = #tpu.dot_dimension_numbers<[1], [0], [0], [1], [0, 0, 1, 1], [], []>} : vector<16x64xf32>, vector<64x128xf32>, vector<16x128xf32> -> vector<16x128xf32>
    %244 = arith.addf %241, %243 : vector<16x128xf32>
    %245 = vector.extract_strided_slice %162 {offsets = [49, 0], sizes = [16, 64], strides = [1, 1]} : vector<96x64xf32> to vector<16x64xf32>
    %cst_143 = arith.constant dense<0.000000e+00> : vector<16x128xf32>
    %246 = tpu.matmul %245, %169, %cst_143 {dimension_numbers = #tpu.dot_dimension_numbers<[1], [0], [0], [1], [0, 0, 1, 1], [], []>} : vector<16x64xf32>, vector<64x128xf32>, vector<16x128xf32> -> vector<16x128xf32>
    %247 = arith.addf %244, %246 : vector<16x128xf32>
    %248 = vector.extract_strided_slice %162 {offsets = [4, 0], sizes = [16, 64], strides = [1, 1]} : vector<96x64xf32> to vector<16x64xf32>
    %cst_144 = arith.constant dense<0.000000e+00> : vector<16x128xf32>
    %249 = tpu.matmul %248, %171, %cst_144 {dimension_numbers = #tpu.dot_dimension_numbers<[1], [0], [0], [1], [0, 0, 1, 1], [], []>} : vector<16x64xf32>, vector<64x128xf32>, vector<16x128xf32> -> vector<16x128xf32>
    %250 = arith.addf %247, %249 : vector<16x128xf32>
    %251 = vector.extract_strided_slice %162 {offsets = [28, 0], sizes = [16, 64], strides = [1, 1]} : vector<96x64xf32> to vector<16x64xf32>
    %cst_145 = arith.constant dense<0.000000e+00> : vector<16x128xf32>
    %252 = tpu.matmul %251, %173, %cst_145 {dimension_numbers = #tpu.dot_dimension_numbers<[1], [0], [0], [1], [0, 0, 1, 1], [], []>} : vector<16x64xf32>, vector<64x128xf32>, vector<16x128xf32> -> vector<16x128xf32>
    %253 = arith.addf %250, %252 : vector<16x128xf32>
    %254 = vector.extract_strided_slice %162 {offsets = [5, 0], sizes = [16, 64], strides = [1, 1]} : vector<96x64xf32> to vector<16x64xf32>
    %cst_146 = arith.constant dense<0.000000e+00> : vector<16x128xf32>
    %255 = tpu.matmul %254, %175, %cst_146 {dimension_numbers = #tpu.dot_dimension_numbers<[1], [0], [0], [1], [0, 0, 1, 1], [], []>} : vector<16x64xf32>, vector<64x128xf32>, vector<16x128xf32> -> vector<16x128xf32>
    %256 = arith.addf %253, %255 : vector<16x128xf32>
    %257 = vector.extract_strided_slice %162 {offsets = [52, 0], sizes = [16, 64], strides = [1, 1]} : vector<96x64xf32> to vector<16x64xf32>
    %cst_147 = arith.constant dense<0.000000e+00> : vector<16x128xf32>
    %258 = tpu.matmul %257, %177, %cst_147 {dimension_numbers = #tpu.dot_dimension_numbers<[1], [0], [0], [1], [0, 0, 1, 1], [], []>} : vector<16x64xf32>, vector<64x128xf32>, vector<16x128xf32> -> vector<16x128xf32>
    %259 = arith.addf %256, %258 : vector<16x128xf32>
    %260 = vector.extract_strided_slice %162 {offsets = [76, 0], sizes = [16, 64], strides = [1, 1]} : vector<96x64xf32> to vector<16x64xf32>
    %cst_148 = arith.constant dense<0.000000e+00> : vector<16x128xf32>
    %261 = tpu.matmul %260, %179, %cst_148 {dimension_numbers = #tpu.dot_dimension_numbers<[1], [0], [0], [1], [0, 0, 1, 1], [], []>} : vector<16x64xf32>, vector<64x128xf32>, vector<16x128xf32> -> vector<16x128xf32>
    %262 = arith.addf %259, %261 : vector<16x128xf32>
    %263 = vector.extract_strided_slice %162 {offsets = [53, 0], sizes = [16, 64], strides = [1, 1]} : vector<96x64xf32> to vector<16x64xf32>
    %cst_149 = arith.constant dense<0.000000e+00> : vector<16x128xf32>
    %264 = tpu.matmul %263, %181, %cst_149 {dimension_numbers = #tpu.dot_dimension_numbers<[1], [0], [0], [1], [0, 0, 1, 1], [], []>} : vector<16x64xf32>, vector<64x128xf32>, vector<16x128xf32> -> vector<16x128xf32>
    %265 = arith.addf %262, %264 : vector<16x128xf32>
    %cst_150 = arith.constant 0.000000e+00 : f32
    %266 = vector.broadcast %cst_150 : f32 to vector<16x128xf32>
    %267 = vector.extract_strided_slice %162 {offsets = [72, 0], sizes = [16, 64], strides = [1, 1]} : vector<96x64xf32> to vector<16x64xf32>
    %cst_151 = arith.constant dense<0.000000e+00> : vector<16x128xf32>
    %268 = tpu.matmul %267, %165, %cst_151 {dimension_numbers = #tpu.dot_dimension_numbers<[1], [0], [0], [1], [0, 0, 1, 1], [], []>} : vector<16x64xf32>, vector<64x128xf32>, vector<16x128xf32> -> vector<16x128xf32>
    %269 = arith.addf %266, %268 : vector<16x128xf32>
    %270 = vector.extract_strided_slice %162 {offsets = [49, 0], sizes = [16, 64], strides = [1, 1]} : vector<96x64xf32> to vector<16x64xf32>
    %cst_152 = arith.constant dense<0.000000e+00> : vector<16x128xf32>
    %271 = tpu.matmul %270, %167, %cst_152 {dimension_numbers = #tpu.dot_dimension_numbers<[1], [0], [0], [1], [0, 0, 1, 1], [], []>} : vector<16x64xf32>, vector<64x128xf32>, vector<16x128xf32> -> vector<16x128xf32>
    %272 = arith.addf %269, %271 : vector<16x128xf32>
    %273 = vector.extract_strided_slice %162 {offsets = [73, 0], sizes = [16, 64], strides = [1, 1]} : vector<96x64xf32> to vector<16x64xf32>
    %cst_153 = arith.constant dense<0.000000e+00> : vector<16x128xf32>
    %274 = tpu.matmul %273, %169, %cst_153 {dimension_numbers = #tpu.dot_dimension_numbers<[1], [0], [0], [1], [0, 0, 1, 1], [], []>} : vector<16x64xf32>, vector<64x128xf32>, vector<16x128xf32> -> vector<16x128xf32>
    %275 = arith.addf %272, %274 : vector<16x128xf32>
    %276 = vector.extract_strided_slice %162 {offsets = [28, 0], sizes = [16, 64], strides = [1, 1]} : vector<96x64xf32> to vector<16x64xf32>
    %cst_154 = arith.constant dense<0.000000e+00> : vector<16x128xf32>
    %277 = tpu.matmul %276, %171, %cst_154 {dimension_numbers = #tpu.dot_dimension_numbers<[1], [0], [0], [1], [0, 0, 1, 1], [], []>} : vector<16x64xf32>, vector<64x128xf32>, vector<16x128xf32> -> vector<16x128xf32>
    %278 = arith.addf %275, %277 : vector<16x128xf32>
    %279 = vector.extract_strided_slice %162 {offsets = [5, 0], sizes = [16, 64], strides = [1, 1]} : vector<96x64xf32> to vector<16x64xf32>
    %cst_155 = arith.constant dense<0.000000e+00> : vector<16x128xf32>
    %280 = tpu.matmul %279, %173, %cst_155 {dimension_numbers = #tpu.dot_dimension_numbers<[1], [0], [0], [1], [0, 0, 1, 1], [], []>} : vector<16x64xf32>, vector<64x128xf32>, vector<16x128xf32> -> vector<16x128xf32>
    %281 = arith.addf %278, %280 : vector<16x128xf32>
    %282 = vector.extract_strided_slice %162 {offsets = [29, 0], sizes = [16, 64], strides = [1, 1]} : vector<96x64xf32> to vector<16x64xf32>
    %cst_156 = arith.constant dense<0.000000e+00> : vector<16x128xf32>
    %283 = tpu.matmul %282, %175, %cst_156 {dimension_numbers = #tpu.dot_dimension_numbers<[1], [0], [0], [1], [0, 0, 1, 1], [], []>} : vector<16x64xf32>, vector<64x128xf32>, vector<16x128xf32> -> vector<16x128xf32>
    %284 = arith.addf %281, %283 : vector<16x128xf32>
    %285 = vector.extract_strided_slice %162 {offsets = [76, 0], sizes = [16, 64], strides = [1, 1]} : vector<96x64xf32> to vector<16x64xf32>
    %cst_157 = arith.constant dense<0.000000e+00> : vector<16x128xf32>
    %286 = tpu.matmul %285, %177, %cst_157 {dimension_numbers = #tpu.dot_dimension_numbers<[1], [0], [0], [1], [0, 0, 1, 1], [], []>} : vector<16x64xf32>, vector<64x128xf32>, vector<16x128xf32> -> vector<16x128xf32>
    %287 = arith.addf %284, %286 : vector<16x128xf32>
    %288 = vector.extract_strided_slice %162 {offsets = [53, 0], sizes = [16, 64], strides = [1, 1]} : vector<96x64xf32> to vector<16x64xf32>
    %cst_158 = arith.constant dense<0.000000e+00> : vector<16x128xf32>
    %289 = tpu.matmul %288, %179, %cst_158 {dimension_numbers = #tpu.dot_dimension_numbers<[1], [0], [0], [1], [0, 0, 1, 1], [], []>} : vector<16x64xf32>, vector<64x128xf32>, vector<16x128xf32> -> vector<16x128xf32>
    %290 = arith.addf %287, %289 : vector<16x128xf32>
    %291 = vector.extract_strided_slice %162 {offsets = [77, 0], sizes = [16, 64], strides = [1, 1]} : vector<96x64xf32> to vector<16x64xf32>
    %cst_159 = arith.constant dense<0.000000e+00> : vector<16x128xf32>
    %292 = tpu.matmul %291, %181, %cst_159 {dimension_numbers = #tpu.dot_dimension_numbers<[1], [0], [0], [1], [0, 0, 1, 1], [], []>} : vector<16x64xf32>, vector<64x128xf32>, vector<16x128xf32> -> vector<16x128xf32>
    %293 = arith.addf %290, %292 : vector<16x128xf32>
    %294 = arith.maximumf %209, %237 : vector<16x128xf32>
    %295 = arith.maximumf %265, %293 : vector<16x128xf32>
    %296 = arith.maximumf %294, %295 : vector<16x128xf32>
    %297 = vector.broadcast %163 : vector<1x128xf32> to vector<16x128xf32>
    %298 = arith.addf %296, %297 : vector<16x128xf32>
    %cst_160 = arith.constant 0.000000e+00 : f32
    %299 = vector.broadcast %cst_160 : f32 to vector<16x128xf32>
    %300 = arith.maximumf %298, %299 : vector<16x128xf32>
    %c0_161 = arith.constant 0 : index
    %c0_162 = arith.constant 0 : index
    %301 = vector.load %arg11[%c0_161, %c0_162] : memref<1x128xf32, #tpu.memory_space<vmem>>, vector<1x128xf32>
    %302 = vector.extract_strided_slice %300 {offsets = [0, 0], sizes = [1, 128], strides = [1, 1]} : vector<16x128xf32> to vector<1x128xf32>
    %c0_163 = arith.constant 0 : index
    %c0_164 = arith.constant 0 : index
    %c0_165 = arith.constant 0 : index
    %303 = vector.load %arg10[%c0_163, %c0_164, %c0_165] : memref<9x128x128xf32, #tpu.memory_space<vmem>>, vector<1x128x128xf32>
    %304 = vector.shape_cast %303 : vector<1x128x128xf32> to vector<128x128xf32>
    %cst_166 = arith.constant dense<0.000000e+00> : vector<1x128xf32>
    %305 = tpu.matmul %302, %304, %cst_166 {dimension_numbers = #tpu.dot_dimension_numbers<[1], [0], [0], [1], [0, 0, 1, 1], [], []>} : vector<1x128xf32>, vector<128x128xf32>, vector<1x128xf32> -> vector<1x128xf32>
    %306 = arith.addf %301, %305 : vector<1x128xf32>
    %307 = vector.extract_strided_slice %300 {offsets = [1, 0], sizes = [1, 128], strides = [1, 1]} : vector<16x128xf32> to vector<1x128xf32>
    %c1_167 = arith.constant 1 : index
    %c0_168 = arith.constant 0 : index
    %c0_169 = arith.constant 0 : index
    %308 = vector.load %arg10[%c1_167, %c0_168, %c0_169] : memref<9x128x128xf32, #tpu.memory_space<vmem>>, vector<1x128x128xf32>
    %309 = vector.shape_cast %308 : vector<1x128x128xf32> to vector<128x128xf32>
    %cst_170 = arith.constant dense<0.000000e+00> : vector<1x128xf32>
    %310 = tpu.matmul %307, %309, %cst_170 {dimension_numbers = #tpu.dot_dimension_numbers<[1], [0], [0], [1], [0, 0, 1, 1], [], []>} : vector<1x128xf32>, vector<128x128xf32>, vector<1x128xf32> -> vector<1x128xf32>
    %311 = arith.addf %306, %310 : vector<1x128xf32>
    %312 = vector.extract_strided_slice %300 {offsets = [2, 0], sizes = [1, 128], strides = [1, 1]} : vector<16x128xf32> to vector<1x128xf32>
    %c2_171 = arith.constant 2 : index
    %c0_172 = arith.constant 0 : index
    %c0_173 = arith.constant 0 : index
    %313 = vector.load %arg10[%c2_171, %c0_172, %c0_173] : memref<9x128x128xf32, #tpu.memory_space<vmem>>, vector<1x128x128xf32>
    %314 = vector.shape_cast %313 : vector<1x128x128xf32> to vector<128x128xf32>
    %cst_174 = arith.constant dense<0.000000e+00> : vector<1x128xf32>
    %315 = tpu.matmul %312, %314, %cst_174 {dimension_numbers = #tpu.dot_dimension_numbers<[1], [0], [0], [1], [0, 0, 1, 1], [], []>} : vector<1x128xf32>, vector<128x128xf32>, vector<1x128xf32> -> vector<1x128xf32>
    %316 = arith.addf %311, %315 : vector<1x128xf32>
    %317 = vector.extract_strided_slice %300 {offsets = [4, 0], sizes = [1, 128], strides = [1, 1]} : vector<16x128xf32> to vector<1x128xf32>
    %c3_175 = arith.constant 3 : index
    %c0_176 = arith.constant 0 : index
    %c0_177 = arith.constant 0 : index
    %318 = vector.load %arg10[%c3_175, %c0_176, %c0_177] : memref<9x128x128xf32, #tpu.memory_space<vmem>>, vector<1x128x128xf32>
    %319 = vector.shape_cast %318 : vector<1x128x128xf32> to vector<128x128xf32>
    %cst_178 = arith.constant dense<0.000000e+00> : vector<1x128xf32>
    %320 = tpu.matmul %317, %319, %cst_178 {dimension_numbers = #tpu.dot_dimension_numbers<[1], [0], [0], [1], [0, 0, 1, 1], [], []>} : vector<1x128xf32>, vector<128x128xf32>, vector<1x128xf32> -> vector<1x128xf32>
    %321 = arith.addf %316, %320 : vector<1x128xf32>
    %322 = vector.extract_strided_slice %300 {offsets = [5, 0], sizes = [1, 128], strides = [1, 1]} : vector<16x128xf32> to vector<1x128xf32>
    %c4_179 = arith.constant 4 : index
    %c0_180 = arith.constant 0 : index
    %c0_181 = arith.constant 0 : index
    %323 = vector.load %arg10[%c4_179, %c0_180, %c0_181] : memref<9x128x128xf32, #tpu.memory_space<vmem>>, vector<1x128x128xf32>
    %324 = vector.shape_cast %323 : vector<1x128x128xf32> to vector<128x128xf32>
    %cst_182 = arith.constant dense<0.000000e+00> : vector<1x128xf32>
    %325 = tpu.matmul %322, %324, %cst_182 {dimension_numbers = #tpu.dot_dimension_numbers<[1], [0], [0], [1], [0, 0, 1, 1], [], []>} : vector<1x128xf32>, vector<128x128xf32>, vector<1x128xf32> -> vector<1x128xf32>
    %326 = arith.addf %321, %325 : vector<1x128xf32>
    %327 = vector.extract_strided_slice %300 {offsets = [6, 0], sizes = [1, 128], strides = [1, 1]} : vector<16x128xf32> to vector<1x128xf32>
    %c5_183 = arith.constant 5 : index
    %c0_184 = arith.constant 0 : index
    %c0_185 = arith.constant 0 : index
    %328 = vector.load %arg10[%c5_183, %c0_184, %c0_185] : memref<9x128x128xf32, #tpu.memory_space<vmem>>, vector<1x128x128xf32>
    %329 = vector.shape_cast %328 : vector<1x128x128xf32> to vector<128x128xf32>
    %cst_186 = arith.constant dense<0.000000e+00> : vector<1x128xf32>
    %330 = tpu.matmul %327, %329, %cst_186 {dimension_numbers = #tpu.dot_dimension_numbers<[1], [0], [0], [1], [0, 0, 1, 1], [], []>} : vector<1x128xf32>, vector<128x128xf32>, vector<1x128xf32> -> vector<1x128xf32>
    %331 = arith.addf %326, %330 : vector<1x128xf32>
    %332 = vector.extract_strided_slice %300 {offsets = [8, 0], sizes = [1, 128], strides = [1, 1]} : vector<16x128xf32> to vector<1x128xf32>
    %c6_187 = arith.constant 6 : index
    %c0_188 = arith.constant 0 : index
    %c0_189 = arith.constant 0 : index
    %333 = vector.load %arg10[%c6_187, %c0_188, %c0_189] : memref<9x128x128xf32, #tpu.memory_space<vmem>>, vector<1x128x128xf32>
    %334 = vector.shape_cast %333 : vector<1x128x128xf32> to vector<128x128xf32>
    %cst_190 = arith.constant dense<0.000000e+00> : vector<1x128xf32>
    %335 = tpu.matmul %332, %334, %cst_190 {dimension_numbers = #tpu.dot_dimension_numbers<[1], [0], [0], [1], [0, 0, 1, 1], [], []>} : vector<1x128xf32>, vector<128x128xf32>, vector<1x128xf32> -> vector<1x128xf32>
    %336 = arith.addf %331, %335 : vector<1x128xf32>
    %337 = vector.extract_strided_slice %300 {offsets = [9, 0], sizes = [1, 128], strides = [1, 1]} : vector<16x128xf32> to vector<1x128xf32>
    %c7_191 = arith.constant 7 : index
    %c0_192 = arith.constant 0 : index
    %c0_193 = arith.constant 0 : index
    %338 = vector.load %arg10[%c7_191, %c0_192, %c0_193] : memref<9x128x128xf32, #tpu.memory_space<vmem>>, vector<1x128x128xf32>
    %339 = vector.shape_cast %338 : vector<1x128x128xf32> to vector<128x128xf32>
    %cst_194 = arith.constant dense<0.000000e+00> : vector<1x128xf32>
    %340 = tpu.matmul %337, %339, %cst_194 {dimension_numbers = #tpu.dot_dimension_numbers<[1], [0], [0], [1], [0, 0, 1, 1], [], []>} : vector<1x128xf32>, vector<128x128xf32>, vector<1x128xf32> -> vector<1x128xf32>
    %341 = arith.addf %336, %340 : vector<1x128xf32>
    %342 = vector.extract_strided_slice %300 {offsets = [10, 0], sizes = [1, 128], strides = [1, 1]} : vector<16x128xf32> to vector<1x128xf32>
    %c8_195 = arith.constant 8 : index
    %c0_196 = arith.constant 0 : index
    %c0_197 = arith.constant 0 : index
    %343 = vector.load %arg10[%c8_195, %c0_196, %c0_197] : memref<9x128x128xf32, #tpu.memory_space<vmem>>, vector<1x128x128xf32>
    %344 = vector.shape_cast %343 : vector<1x128x128xf32> to vector<128x128xf32>
    %cst_198 = arith.constant dense<0.000000e+00> : vector<1x128xf32>
    %345 = tpu.matmul %342, %344, %cst_198 {dimension_numbers = #tpu.dot_dimension_numbers<[1], [0], [0], [1], [0, 0, 1, 1], [], []>} : vector<1x128xf32>, vector<128x128xf32>, vector<1x128xf32> -> vector<1x128xf32>
    %346 = arith.addf %341, %345 : vector<1x128xf32>
    %347 = vector.shape_cast %346 : vector<1x128xf32> to vector<1x128xf32>
    %348 = vector.broadcast %347 : vector<1x128xf32> to vector<8x128xf32>
    %c0_199 = arith.constant 0 : index
    %c0_200 = arith.constant 0 : index
    %c0_201 = arith.constant 0 : index
    %349 = vector.load %arg12[%c0_199, %c0_200, %c0_201] : memref<1x8x128xf32, #tpu.memory_space<vmem>>, vector<1x8x128xf32>
    %350 = vector.shape_cast %349 : vector<1x8x128xf32> to vector<8x128xf32>
    %351 = vector.shape_cast %348 : vector<8x128xf32> to vector<1x8x128xf32>
    tpu.vector_store %arg12[%c0_199, %c0_200, %c0_201], %351 {strides = array<i32>} : memref<1x8x128xf32, #tpu.memory_space<vmem>>, vector<1x8x128xf32>,
    return
  }
  func.func @transform_0(%arg0: i32) -> (i32, i32, i32, i32) {
    %c0_i32 = arith.constant 0 : i32
    %c0_i32_0 = arith.constant 0 : i32
    %c0_i32_1 = arith.constant 0 : i32
    %c0_i32_2 = arith.constant 0 : i32
    return %arg0, %c0_i32, %c0_i32_0, %c0_i32_1 : i32, i32, i32, i32
  }
  func.func @transform_1(%arg0: i32) -> (i32, i32) {
    %c0_i32 = arith.constant 0 : i32
    %c0_i32_0 = arith.constant 0 : i32
    %c0_i32_1 = arith.constant 0 : i32
    return %c0_i32, %c0_i32_0 : i32, i32
  }
  func.func @transform_2(%arg0: i32) -> (i32, i32) {
    %c0_i32 = arith.constant 0 : i32
    %c0_i32_0 = arith.constant 0 : i32
    %c0_i32_1 = arith.constant 0 : i32
    return %c0_i32, %c0_i32_0 : i32, i32
  }
  func.func @transform_3(%arg0: i32) -> (i32, i32) {
    %c0_i32 = arith.constant 0 : i32
    %c0_i32_0 = arith.constant 0 : i32
    %c0_i32_1 = arith.constant 0 : i32
    return %c0_i32, %c0_i32_0 : i32, i32
  }
  func.func @transform_4(%arg0: i32) -> (i32, i32, i32) {
    %c0_i32 = arith.constant 0 : i32
    %c0_i32_0 = arith.constant 0 : i32
    %c0_i32_1 = arith.constant 0 : i32
    %c0_i32_2 = arith.constant 0 : i32
    return %c0_i32, %c0_i32_0, %c0_i32_1 : i32, i32, i32
  }
  func.func @transform_5(%arg0: i32) -> (i32, i32) {
    %c0_i32 = arith.constant 0 : i32
    %c0_i32_0 = arith.constant 0 : i32
    %c0_i32_1 = arith.constant 0 : i32
    return %c0_i32, %c0_i32_0 : i32, i32
  }
  func.func @transform_6(%arg0: i32) -> (i32, i32) {
    %c0_i32 = arith.constant 0 : i32
    %c0_i32_0 = arith.constant 0 : i32
    %c0_i32_1 = arith.constant 0 : i32
    return %c0_i32, %c0_i32_0 : i32, i32
  }
  func.func @transform_7(%arg0: i32) -> (i32, i32, i32) {
    %c0_i32 = arith.constant 0 : i32
    %c0_i32_0 = arith.constant 0 : i32
    %c0_i32_1 = arith.constant 0 : i32
    %c0_i32_2 = arith.constant 0 : i32
    return %c0_i32, %c0_i32_0, %c0_i32_1 : i32, i32, i32
  }
  func.func @transform_8(%arg0: i32) -> (i32, i32) {
    %c0_i32 = arith.constant 0 : i32
    %c0_i32_0 = arith.constant 0 : i32
    %c0_i32_1 = arith.constant 0 : i32
    return %c0_i32, %c0_i32_0 : i32, i32
  }
  func.func @transform_9(%arg0: i32) -> (i32, i32, i32) {
    %c0_i32 = arith.constant 0 : i32
    %c0_i32_0 = arith.constant 0 : i32
    %c0_i32_1 = arith.constant 0 : i32
    %c0_i32_2 = arith.constant 0 : i32
    return %c0_i32, %c0_i32_0, %c0_i32_1 : i32, i32, i32
  }
  func.func @transform_10(%arg0: i32) -> (i32, i32) {
    %c0_i32 = arith.constant 0 : i32
    %c0_i32_0 = arith.constant 0 : i32
    %c0_i32_1 = arith.constant 0 : i32
    return %c0_i32, %c0_i32_0 : i32, i32
  }
  func.func @transform_11(%arg0: i32) -> (i32, i32, i32) {
    %c0_i32 = arith.constant 0 : i32
    %c0_i32_0 = arith.constant 0 : i32
    %c0_i32_1 = arith.constant 0 : i32
    return %arg0, %c0_i32, %c0_i32_0 : i32, i32, i32
  }
}

</mosaic_0001>

<bundles_post_ra>
// kernel: conv_mnist_forward.1
= control target key start
LH: loop header
LB: loop body
LE: loop exit
PB: predicated region body
PF: predicated region fallthrough
CT: control target
= control target key end

     0   :  { %s6134_s17 = smov 0   ;;  %s9898_s0 = inlined_call_operand.vmem [shape: f32[2,4,196,9], index: 0, kind: input, shape index: {}]   ;;  %s9899_s1 = inlined_call_operand.vmem [shape: f32[9,32], index: 1, kind: input, shape index: {}]   ;;  %s9900_s2 = inlined_call_operand.vmem [shape: f32[1,32], index: 2, kind: input, shape index: {}]   ;;  %s9901_s3 = inlined_call_operand.vmem [shape: f32[288,196], index: 3, kind: input, shape index: {}]   ;;  %s9902_s4 = inlined_call_operand.vmem [shape: f32[9,32,64], index: 4, kind: input, shape index: {}]   ;;  %s9903_s5 = inlined_call_operand.vmem [shape: f32[1,64], index: 5, kind: input, shape index: {}]   ;;  %s9904_s6 = inlined_call_operand.vmem [shape: f32[96,56], index: 6, kind: input, shape index: {}]   ;;  %s9905_s7 = inlined_call_operand.vmem [shape: f32[9,64,128], index: 7, kind: input, shape index: {}]   ;;  %s9906_s8 = inlined_call_operand.vmem [shape: f32[1,128], index: 8, kind: input, shape index: {}]   ;;  %s9907_s9 = inlined_call_operand.vmem [shape: f32[9,128,128], index: 9, kind: input, shape index: {}]   ;;  %s9908_s10 = inlined_call_operand.vmem [shape: f32[1,128], index: 10, kind: input, shape index: {}]   ;;  %s9909_s11 = inlined_call_operand.vmem [shape: f32[2,8,128], index: 11, kind: output, shape index: {}]  }
   0x1 LB: > { %s5241_s18 = sadd.s32 4294967295, %s6072_s17   ;;  %p5245_p0 = scmp.ge.s32.totalorder %s6072_s17, 1  ;;  %s6072_s17 = sphi %s6134_s17, %s21_s17  }
   0x2   : > { %p337_p1 = scmp.lt.s32.totalorder %s6072_s17, 3 }
   0x4   : > { %p338_p2 = pnand %p5245_p0, %p337_p1 }
   0x6   : > { %341 = sbr.rel (%p338_p2) target bundleno = 2076 (0x81c), region = 64 }
   0xb   : > { %v386_v0 = vld [vmem:[%s9899_s1 + $0x8] sm:$0x1]  ;;  %vm488_vm0 = vcmask 1040384   ;;  %v385_v1 = vld [vmem:[%s9899_s1] sm:$0xff]  ;;  %p376_p3 = scmp.lt.s32.totalorder %s5241_s18, 1  ;;  %vm412_vm1 = vcmask 72704  }
   0xc   : > { %6026 = vmatpush.msk.msra.mxu2 %vm488_vm0, %v386_v0  ;;  %6028 = vmatpush.msk.msra.mxu3 %vm488_vm0, %v386_v0  ;;  %vm1473_vm2 = vcmask 1043456   ;;  %vm1364_vm3 = vcmask 556032   ;;  %vm1772_vm4 = vcmask 261120   ;;  %vm1892_vm5 = vcmask 1046528  }
   0xd   : > { %s10397_s18 = smov (!%p376_p3, %s5241_s18), 1  ;;  %5248 = vmatpush.msk.msra.mxu0 %vm488_vm0, %v386_v0  ;;  %5299 = vmatpush.msk.msra.mxu1 %vm488_vm0, %v386_v0  ;;  %vm3620_vm6 = vcmask 457728   ;;  %vm4051_vm7 = vcmask 1042432   ;;  %vm3791_vm8 = vcmask 523264  }
   0xe   : > { %6027 = vmatpush.msra.mxu2 %v385_v1  ;;  %6029 = vmatpush.msra.mxu3 %v385_v1  ;;  %s6030_s23 = smul.u32 800, %s10397_s18  ;;  %s5247_s24 = sshll.u32 %s10397_s18, 3 }
   0xf   : > { %507 = vmatpush.msra.mxu0 %v385_v1  ;;  %700 = vmatpush.msra.mxu1 %v385_v1  ;;  %s384_s27 = scalar_lea.vmem %s9909_s11, %s5247_s24 }
  0x10   : > { %5350 = vmatpush.msk.msrb.mxu2 %vm488_vm0, %v386_v0  ;;  %5401 = vmatpush.msk.msrb.mxu3 %vm488_vm0, %v386_v0  ;;  %s6154_s26 = scalar_lea.vmem %s9898_s0, %s6030_s23 }
  0x11   : > { %v411_v2 = vld [vmem:[%s6154_s26 + $0xc0] sm:$0xf]  ;;  %v5298_v3 = vld [vmem:[%s6154_s26 + $0x188] sm:$0xf]  ;;  %v5325_v6 = vld [vmem:[%s6154_s26 + $0x190] sm:$0xff] }
  0x12   : > { %893 = vmatpush.msrb.mxu2 %v385_v1  ;;  %1086 = vmatpush.msrb.mxu3 %v385_v1  ;;  %v387_v4 = vld [vmem:[%s6154_s26] sm:$0xff]  ;;  %v5274_v5 = vld [vmem:[%s6154_s26 + $0xc8] sm:$0xff]  ;;  %v5376_v7 = vld [vmem:[%s6154_s26 + $0x258] sm:$0xff] }
  0x13   : > { %5273 = vmatmul.msk.f32.vlgmr.msra.gmra.mxu2 %vm412_vm1, %v411_v2  ;;  %5324 = vmatmul.msk.f32.vlgmr.msra.gmra.mxu3 %vm412_vm1, %v5298_v3  ;;  %v388_v8 = vld [vmem:[%s6154_s26 + $0x8] sm:$0xff]  ;;  %v5275_v9 = vld [vmem:[%s6154_s26 + $0xd0] sm:$0xff]  ;;  %v5326_v10 = vld [vmem:[%s6154_s26 + $0x198] sm:$0xff] }
  0x14   : > { %5249 = vmatmul.msk.f32.vlgmr.msra.gmra.mxu0 %vm412_vm1, %v387_v4  ;;  %5300 = vmatmul.msk.f32.vlgmr.msra.gmra.mxu1 %vm412_vm1, %v5274_v5  ;;  %v5377_v11 = vld [vmem:[%s6154_s26 + $0x260] sm:$0xff]  ;;  %v389_v12 = vld [vmem:[%s6154_s26 + $0x10] sm:$0xff]  ;;  %v5276_v13 = vld [vmem:[%s6154_s26 + $0xd8] sm:$0xff] }
  0x15   : > { %v5327_v14 = vld [vmem:[%s6154_s26 + $0x1a0] sm:$0xff]  ;;  %v5378_v15 = vld [vmem:[%s6154_s26 + $0x268] sm:$0xff]  ;;  %v390_v16 = vld [vmem:[%s6154_s26 + $0x18] sm:$0xff] }
  0x16   : > { %v5277_v17 = vld [vmem:[%s6154_s26 + $0xe0] sm:$0xff]  ;;  %v5328_v18 = vld [vmem:[%s6154_s26 + $0x1a8] sm:$0xff]  ;;  %v5379_v19 = vld [vmem:[%s6154_s26 + $0x270] sm:$0xff] }
  0x17   : > { %v391_v20 = vld [vmem:[%s6154_s26 + $0x20] sm:$0xff]  ;;  %v5278_v21 = vld [vmem:[%s6154_s26 + $0xe8] sm:$0xff]  ;;  %v5329_v22 = vld [vmem:[%s6154_s26 + $0x1b0] sm:$0xff] }
  0x18   : > { %v5380_v23 = vld [vmem:[%s6154_s26 + $0x278] sm:$0xff]  ;;  %v392_v24 = vld [vmem:[%s6154_s26 + $0x28] sm:$0xff]  ;;  %v5279_v25 = vld [vmem:[%s6154_s26 + $0xf0] sm:$0xff] }
  0x19   : > { %v5330_v26 = vld [vmem:[%s6154_s26 + $0x1b8] sm:$0xff]  ;;  %v5381_v27 = vld [vmem:[%s6154_s26 + $0x280] sm:$0xff]  ;;  %v393_v28 = vld [vmem:[%s6154_s26 + $0x30] sm:$0xff] }
  0x1a   : > { %v5280_v29 = vld [vmem:[%s6154_s26 + $0xf8] sm:$0xff]  ;;  %v5331_v30 = vld [vmem:[%s6154_s26 + $0x1c0] sm:$0xff]  ;;  %v5382_v31 = vld [vmem:[%s6154_s26 + $0x288] sm:$0xff] }
  0x1b   : > { %5351 = vmatmul.msk.f32.vlgmr.msrb.gmra.mxu2 %vm412_vm1, %v5325_v6  ;;  %5402 = vmatmul.msk.f32.vlgmr.msrb.gmra.mxu3 %vm412_vm1, %v5376_v7  ;;  %v394_v32 = vld [vmem:[%s6154_s26 + $0x38] sm:$0xff]  ;;  %v5281_v33 = vld [vmem:[%s6154_s26 + $0x100] sm:$0xff]  ;;  %v5332_v34 = vld [vmem:[%s6154_s26 + $0x1c8] sm:$0xff] }
  0x1c   : > { %5250 = vmatmul.msk.f32.gmra.mxu0 %vm412_vm1, %v388_v8  ;;  %5301 = vmatmul.msk.f32.gmra.mxu1 %vm412_vm1, %v5275_v9  ;;  %v5383_v35 = vld [vmem:[%s6154_s26 + $0x290] sm:$0xff]  ;;  %v395_v36 = vld [vmem:[%s6154_s26 + $0x40] sm:$0xff]  ;;  %v5282_v37 = vld [vmem:[%s6154_s26 + $0x108] sm:$0xff] }
  0x1d   : > { %v5333_v38 = vld [vmem:[%s6154_s26 + $0x1d0] sm:$0xff]  ;;  %v5384_v39 = vld [vmem:[%s6154_s26 + $0x298] sm:$0xff]  ;;  %v396_v40 = vld [vmem:[%s6154_s26 + $0x48] sm:$0xff] }
  0x1e   : > { %v5283_v41 = vld [vmem:[%s6154_s26 + $0x110] sm:$0xff]  ;;  %v5334_v42 = vld [vmem:[%s6154_s26 + $0x1d8] sm:$0xff]  ;;  %v5385_v43 = vld [vmem:[%s6154_s26 + $0x2a0] sm:$0xff] }
  0x1f   : > { %v397_v44 = vld [vmem:[%s6154_s26 + $0x50] sm:$0xff]  ;;  %v5284_v45 = vld [vmem:[%s6154_s26 + $0x118] sm:$0xff]  ;;  %v5335_v46 = vld [vmem:[%s6154_s26 + $0x1e0] sm:$0xff] }
  0x20   : > { %v5386_v47 = vld [vmem:[%s6154_s26 + $0x2a8] sm:$0xff]  ;;  %v398_v48 = vld [vmem:[%s6154_s26 + $0x58] sm:$0xff]  ;;  %v5285_v49 = vld [vmem:[%s6154_s26 + $0x120] sm:$0xff] }
  0x21   : > { %v5336_v50 = vld [vmem:[%s6154_s26 + $0x1e8] sm:$0xff]  ;;  %v5387_v51 = vld [vmem:[%s6154_s26 + $0x2b0] sm:$0xff]  ;;  %v399_v52 = vld [vmem:[%s6154_s26 + $0x60] sm:$0xff] }
  0x22   : > { %v5286_v53 = vld [vmem:[%s6154_s26 + $0x128] sm:$0xff]  ;;  %v5337_v54 = vld [vmem:[%s6154_s26 + $0x1f0] sm:$0xff]  ;;  %v5388_v55 = vld [vmem:[%s6154_s26 + $0x2b8] sm:$0xff] }
  0x23   : > { %5352 = vmatmul.msk.f32.gmra.mxu2 %vm412_vm1, %v5326_v10  ;;  %5403 = vmatmul.msk.f32.gmra.mxu3 %vm412_vm1, %v5377_v11  ;;  %v400_v56 = vld [vmem:[%s6154_s26 + $0x68] sm:$0xff]  ;;  %v5287_v57 = vld [vmem:[%s6154_s26 + $0x130] sm:$0xff]  ;;  %v5338_v58 = vld [vmem:[%s6154_s26 + $0x1f8] sm:$0xff] }
  0x24   : > { %5251 = vmatmul.msk.f32.gmra.mxu0 %vm412_vm1, %v389_v12  ;;  %5302 = vmatmul.msk.f32.gmra.mxu1 %vm412_vm1, %v5276_v13  ;;  %v5389_v59 = vld [vmem:[%s6154_s26 + $0x2c0] sm:$0xff]  ;;  %v401_v60 = vld [vmem:[%s6154_s26 + $0x70] sm:$0xff]  ;;  %v5288_v61 = vld [vmem:[%s6154_s26 + $0x138] sm:$0xff] }
  0x25   : > { %v5339_v62 = vld [vmem:[%s6154_s26 + $0x200] sm:$0xff]  ;;  %v5390_v63 = vld [vmem:[%s6154_s26 + $0x2c8] sm:$0xff]  ;;  %v402_v0 = vld [vmem:[%s6154_s26 + $0x78] sm:$0xff] }
  0x26   : > { %v5289_v1 = vld [vmem:[%s6154_s26 + $0x140] sm:$0xff]  ;;  %v5340_v2 = vld [vmem:[%s6154_s26 + $0x208] sm:$0xff]  ;;  %v5391_v3 = vld [vmem:[%s6154_s26 + $0x2d0] sm:$0xff] }
  0x27   : > { %v403_v6 = vld [vmem:[%s6154_s26 + $0x80] sm:$0xff]  ;;  %v5290_v7 = vld [vmem:[%s6154_s26 + $0x148] sm:$0xff]  ;;  %v5341_v11 = vld [vmem:[%s6154_s26 + $0x210] sm:$0xff] }
  0x28   : > { %v5392_v12 = vld [vmem:[%s6154_s26 + $0x2d8] sm:$0xff] }
  0x2b   : > { %5353 = vmatmul.msk.f32.gmra.mxu2 %vm412_vm1, %v5327_v14  ;;  %5404 = vmatmul.msk.f32.gmra.mxu3 %vm412_vm1, %v5378_v15  ;;  %v404_v15 = vld [vmem:[%s6154_s26 + $0x88] sm:$0xff] }
  0x2c   : > { %5252 = vmatmul.msk.f32.gmra.mxu0 %vm412_vm1, %v390_v16  ;;  %5303 = vmatmul.msk.f32.gmra.mxu1 %vm412_vm1, %v5277_v17  ;;  %v5291_v16 = vld [vmem:[%s6154_s26 + $0x150] sm:$0xff] }
  0x33   : > { %5354 = vmatmul.msk.f32.gmra.mxu2 %vm412_vm1, %v5328_v18  ;;  %5405 = vmatmul.msk.f32.gmra.mxu3 %vm412_vm1, %v5379_v19 }
  0x34   : > { %5253 = vmatmul.msk.f32.gmra.mxu0 %vm412_vm1, %v391_v20  ;;  %5304 = vmatmul.msk.f32.gmra.mxu1 %vm412_vm1, %v5278_v21  ;;  %v5342_v20 = vld [vmem:[%s6154_s26 + $0x218] sm:$0xff]  ;;  %v5393_v21 = vld [vmem:[%s6154_s26 + $0x2e0] sm:$0xff] }
  0x3b   : > { %5355 = vmatmul.msk.f32.gmra.mxu2 %vm412_vm1, %v5329_v22  ;;  %5406 = vmatmul.msk.f32.gmra.mxu3 %vm412_vm1, %v5380_v23 }
  0x3c   : > { %5254 = vmatmul.msk.f32.gmra.mxu0 %vm412_vm1, %v392_v24  ;;  %5305 = vmatmul.msk.f32.gmra.mxu1 %vm412_vm1, %v5279_v25  ;;  %v405_v24 = vld [vmem:[%s6154_s26 + $0x90] sm:$0xff]  ;;  %v5292_v25 = vld [vmem:[%s6154_s26 + $0x158] sm:$0xff] }
  0x43   : > { %5356 = vmatmul.msk.f32.gmra.mxu2 %vm412_vm1, %v5330_v26  ;;  %5407 = vmatmul.msk.f32.gmra.mxu3 %vm412_vm1, %v5381_v27 }
  0x44   : > { %5255 = vmatmul.msk.f32.gmra.mxu0 %vm412_vm1, %v393_v28  ;;  %5306 = vmatmul.msk.f32.gmra.mxu1 %vm412_vm1, %v5280_v29  ;;  %v5343_v28 = vld [vmem:[%s6154_s26 + $0x220] sm:$0xff]  ;;  %v5394_v29 = vld [vmem:[%s6154_s26 + $0x2e8] sm:$0xff] }
  0x4b   : > { %5357 = vmatmul.msk.f32.gmra.mxu2 %vm412_vm1, %v5331_v30  ;;  %5408 = vmatmul.msk.f32.gmra.mxu3 %vm412_vm1, %v5382_v31 }
  0x4c   : > { %5256 = vmatmul.msk.f32.gmra.mxu0 %vm412_vm1, %v394_v32  ;;  %5307 = vmatmul.msk.f32.gmra.mxu1 %vm412_vm1, %v5281_v33  ;;  %v406_v32 = vld [vmem:[%s6154_s26 + $0x98] sm:$0xff]  ;;  %v5293_v33 = vld [vmem:[%s6154_s26 + $0x160] sm:$0xff] }
  0x53   : > { %5358 = vmatmul.msk.f32.gmra.mxu2 %vm412_vm1, %v5332_v34  ;;  %5409 = vmatmul.msk.f32.gmra.mxu3 %vm412_vm1, %v5383_v35 }
  0x54   : > { %5257 = vmatmul.msk.f32.gmra.mxu0 %vm412_vm1, %v395_v36  ;;  %5308 = vmatmul.msk.f32.gmra.mxu1 %vm412_vm1, %v5282_v37  ;;  %v5344_v36 = vld [vmem:[%s6154_s26 + $0x228] sm:$0xff]  ;;  %v5395_v37 = vld [vmem:[%s6154_s26 + $0x2f0] sm:$0xff] }
  0x5b   : > { %5359 = vmatmul.msk.f32.gmra.mxu2 %vm412_vm1, %v5333_v38  ;;  %5410 = vmatmul.msk.f32.gmra.mxu3 %vm412_vm1, %v5384_v39 }
  0x5c   : > { %5258 = vmatmul.msk.f32.gmra.mxu0 %vm412_vm1, %v396_v40  ;;  %5309 = vmatmul.msk.f32.gmra.mxu1 %vm412_vm1, %v5283_v41  ;;  %v407_v40 = vld [vmem:[%s6154_s26 + $0xa0] sm:$0xff]  ;;  %v5294_v41 = vld [vmem:[%s6154_s26 + $0x168] sm:$0xff] }
  0x63   : > { %5360 = vmatmul.msk.f32.gmra.mxu2 %vm412_vm1, %v5334_v42  ;;  %5411 = vmatmul.msk.f32.gmra.mxu3 %vm412_vm1, %v5385_v43 }
  0x64   : > { %5259 = vmatmul.msk.f32.gmra.mxu0 %vm412_vm1, %v397_v44  ;;  %5310 = vmatmul.msk.f32.gmra.mxu1 %vm412_vm1, %v5284_v45  ;;  %v5345_v44 = vld [vmem:[%s6154_s26 + $0x230] sm:$0xff]  ;;  %v5396_v45 = vld [vmem:[%s6154_s26 + $0x2f8] sm:$0xff] }
  0x6b   : > { %5361 = vmatmul.msk.f32.gmra.mxu2 %vm412_vm1, %v5335_v46  ;;  %5412 = vmatmul.msk.f32.gmra.mxu3 %vm412_vm1, %v5386_v47 }
  0x6c   : > { %5260 = vmatmul.msk.f32.gmra.mxu0 %vm412_vm1, %v398_v48  ;;  %5311 = vmatmul.msk.f32.gmra.mxu1 %vm412_vm1, %v5285_v49  ;;  %v408_v48 = vld [vmem:[%s6154_s26 + $0xa8] sm:$0xff]  ;;  %v5295_v49 = vld [vmem:[%s6154_s26 + $0x170] sm:$0xff] }
  0x73   : > { %5362 = vmatmul.msk.f32.gmra.mxu2 %vm412_vm1, %v5336_v50  ;;  %5413 = vmatmul.msk.f32.gmra.mxu3 %vm412_vm1, %v5387_v51 }
  0x74   : > { %5261 = vmatmul.msk.f32.gmra.mxu0 %vm412_vm1, %v399_v52  ;;  %5312 = vmatmul.msk.f32.gmra.mxu1 %vm412_vm1, %v5286_v53  ;;  %v5346_v52 = vld [vmem:[%s6154_s26 + $0x238] sm:$0xff]  ;;  %v5397_v53 = vld [vmem:[%s6154_s26 + $0x300] sm:$0xff] }
  0x7b   : > { %5363 = vmatmul.msk.f32.gmra.mxu2 %vm412_vm1, %v5337_v54  ;;  %5414 = vmatmul.msk.f32.gmra.mxu3 %vm412_vm1, %v5388_v55 }
  0x7c   : > { %5262 = vmatmul.msk.f32.gmra.mxu0 %vm412_vm1, %v400_v56  ;;  %5313 = vmatmul.msk.f32.gmra.mxu1 %vm412_vm1, %v5287_v57  ;;  %v409_v56 = vld [vmem:[%s6154_s26 + $0xb0] sm:$0xff]  ;;  %v5296_v57 = vld [vmem:[%s6154_s26 + $0x178] sm:$0xff] }
  0x83   : > { %5364 = vmatmul.msk.f32.gmra.mxu2 %vm412_vm1, %v5338_v58  ;;  %5415 = vmatmul.msk.f32.gmra.mxu3 %vm412_vm1, %v5389_v59 }
  0x84   : > { %5263 = vmatmul.msk.f32.gmra.mxu0 %vm412_vm1, %v401_v60  ;;  %5314 = vmatmul.msk.f32.gmra.mxu1 %vm412_vm1, %v5288_v61  ;;  %v5347_v60 = vld [vmem:[%s6154_s26 + $0x240] sm:$0xff]  ;;  %v5398_v61 = vld [vmem:[%s6154_s26 + $0x308] sm:$0xff] }
  0x8b   : > { %5365 = vmatmul.msk.f32.gmra.mxu2 %vm412_vm1, %v5339_v62  ;;  %5416 = vmatmul.msk.f32.gmra.mxu3 %vm412_vm1, %v5390_v63 }
  0x8c   : > { %5264 = vmatmul.msk.f32.gmra.mxu0 %vm412_vm1, %v402_v0  ;;  %5315 = vmatmul.msk.f32.gmra.mxu1 %vm412_vm1, %v5289_v1  ;;  %v410_v0 = vld [vmem:[%s6154_s26 + $0xb8] sm:$0xff]  ;;  %v5297_v1 = vld [vmem:[%s6154_s26 + $0x180] sm:$0xff] }
  0x91   : > { %v6286_v4 = vpop.f32.mrf.mxu0  ;;  %v6288_v5 = vpop.f32.mrf.mxu1 }
  0x92   : > { %10052 = vst [vmem:[#allocation2_spill] sm:$0xff] %v6286_v4 }
  0x93   : > { %10053 = vst [vmem:[#allocation3_spill] sm:$0xff] %v6288_v5  ;;  %5366 = vmatmul.msk.f32.gmra.mxu2 %vm412_vm1, %v5340_v2  ;;  %5417 = vmatmul.msk.f32.gmra.mxu3 %vm412_vm1, %v5391_v3 }
  0x94   : > { %5265 = vmatmul.msk.f32.gmra.mxu0 %vm412_vm1, %v403_v6  ;;  %5316 = vmatmul.msk.f32.gmra.mxu1 %vm412_vm1, %v5290_v7  ;;  %v5348_v6 = vld [vmem:[%s6154_s26 + $0x248] sm:$0xff]  ;;  %v5399_v7 = vld [vmem:[%s6154_s26 + $0x310] sm:$0xff] }
  0x96   : > { %v6296_v8 = vpop.f32.mrf.mxu2  ;;  %v6298_v9 = vpop.f32.mrf.mxu3 }
  0x97   : > { %10054 = vst [vmem:[#allocation4_spill] sm:$0xff] %v6296_v8 }
  0x98   : > { %10055 = vst [vmem:[#allocation5_spill] sm:$0xff] %v6298_v9 }
  0x99   : > { %v6304_v13 = vpop.f32.mrf.mxu0  ;;  %v6306_v14 = vpop.f32.mrf.mxu1 }
  0x9a   : > { %10056 = vst [vmem:[#allocation6_spill] sm:$0xff] %v6304_v13 }
  0x9b   : > { %10057 = vst [vmem:[#allocation7_spill] sm:$0xff] %v6306_v14  ;;  %5367 = vmatmul.msk.f32.gmra.mxu2 %vm412_vm1, %v5341_v11  ;;  %5418 = vmatmul.msk.f32.gmra.mxu3 %vm412_vm1, %v5392_v12 }
  0x9c   : > { %5266 = vmatmul.msk.f32.gmra.mxu0 %vm412_vm1, %v404_v15  ;;  %5317 = vmatmul.msk.f32.gmra.mxu1 %vm412_vm1, %v5291_v16 }
  0x9e   : > { %v6314_v17 = vpop.f32.mrf.mxu2  ;;  %v6316_v18 = vpop.f32.mrf.mxu3 }
  0x9f   : > { %10058 = vst [vmem:[#allocation8_spill] sm:$0xff] %v6314_v17 }
  0xa0   : > { %10059 = vst [vmem:[#allocation9_spill] sm:$0xff] %v6316_v18 }
  0xa1   : > { %v6322_v22 = vpop.f32.mrf.mxu0  ;;  %v6324_v23 = vpop.f32.mrf.mxu1 }
  0xa2   : > { %10060 = vst [vmem:[#allocation10_spill] sm:$0xff] %v6322_v22 }
  0xa3   : > { %10061 = vst [vmem:[#allocation11_spill] sm:$0xff] %v6324_v23  ;;  %5368 = vmatmul.msk.f32.gmra.mxu2 %vm412_vm1, %v5342_v20  ;;  %5419 = vmatmul.msk.f32.gmra.mxu3 %vm412_vm1, %v5393_v21  ;;  %v5349_v20 = vld [vmem:[%s6154_s26 + $0x250] sm:$0xf]  ;;  %v5400_v21 = vld [vmem:[%s6154_s26 + $0x318] sm:$0xf] }
  0xa4   : > { %5267 = vmatmul.msk.f32.gmra.mxu0 %vm412_vm1, %v405_v24  ;;  %5318 = vmatmul.msk.f32.gmra.mxu1 %vm412_vm1, %v5292_v25 }
  0xa6   : > { %v6332_v26 = vpop.f32.mrf.mxu2  ;;  %v6334_v27 = vpop.f32.mrf.mxu3 }
  0xa7   : > { %10062 = vst [vmem:[#allocation12_spill] sm:$0xff] %v6332_v26 }
  0xa8   : > { %10063 = vst [vmem:[#allocation13_spill] sm:$0xff] %v6334_v27 }
  0xa9   : > { %v6338_v30 = vpop.f32.mrf.mxu0  ;;  %v6340_v31 = vpop.f32.mrf.mxu1 }
  0xaa   : > { %10064 = vst [vmem:[#allocation14_spill] sm:$0xff] %v6338_v30 }
  0xab   : > { %5369 = vmatmul.msk.f32.gmra.mxu2 %vm412_vm1, %v5343_v28  ;;  %5420 = vmatmul.msk.f32.gmra.mxu3 %vm412_vm1, %v5394_v29 }
  0xac   : > { %5268 = vmatmul.msk.f32.gmra.mxu0 %vm412_vm1, %v406_v32  ;;  %5319 = vmatmul.msk.f32.gmra.mxu1 %vm412_vm1, %v5293_v33 }
  0xae   : > { %v6348_v34 = vpop.f32.mrf.mxu2  ;;  %v6350_v35 = vpop.f32.mrf.mxu3 }
  0xaf   : > { %10065 = vst [vmem:[#allocation15_spill] sm:$0xff] %v6348_v34 }
  0xb0   : > { %10066 = vst [vmem:[#allocation16_spill] sm:$0xff] %v6350_v35 }
  0xb1   : > { %v6354_v38 = vpop.f32.mrf.mxu0  ;;  %v6356_v39 = vpop.f32.mrf.mxu1 }
  0xb3   : > { %5370 = vmatmul.msk.f32.gmra.mxu2 %vm412_vm1, %v5344_v36  ;;  %5421 = vmatmul.msk.f32.gmra.mxu3 %vm412_vm1, %v5395_v37 }
  0xb4   : > { %5269 = vmatmul.msk.f32.gmra.mxu0 %vm412_vm1, %v407_v40  ;;  %5320 = vmatmul.msk.f32.gmra.mxu1 %vm412_vm1, %v5294_v41 }
  0xb6   : > { %v6364_v42 = vpop.f32.mrf.mxu2  ;;  %v6366_v43 = vpop.f32.mrf.mxu3 }
  0xb7   : > { %10067 = vst [vmem:[#allocation17_spill] sm:$0xff] %v6364_v42 }
  0xb8   : > { %10068 = vst [vmem:[#allocation18_spill] sm:$0xff] %v6366_v43 }
  0xb9   : > { %v6370_v46 = vpop.f32.mrf.mxu0  ;;  %v6372_v47 = vpop.f32.mrf.mxu1 }
  0xbb   : > { %5371 = vmatmul.msk.f32.gmra.mxu2 %vm412_vm1, %v5345_v44  ;;  %5422 = vmatmul.msk.f32.gmra.mxu3 %vm412_vm1, %v5396_v45 }
  0xbc   : > { %5270 = vmatmul.msk.f32.gmra.mxu0 %vm412_vm1, %v408_v48  ;;  %5321 = vmatmul.msk.f32.gmra.mxu1 %vm412_vm1, %v5295_v49 }
  0xbe   : > { %v6380_v50 = vpop.f32.mrf.mxu2  ;;  %v6382_v51 = vpop.f32.mrf.mxu3 }
  0xc1   : > { %v6386_v54 = vpop.f32.mrf.mxu0  ;;  %v6388_v55 = vpop.f32.mrf.mxu1 }
  0xc3   : > { %5372 = vmatmul.msk.f32.gmra.mxu2 %vm412_vm1, %v5346_v52  ;;  %5423 = vmatmul.msk.f32.gmra.mxu3 %vm412_vm1, %v5397_v53 }
  0xc4   : > { %5271 = vmatmul.msk.f32.gmra.mxu0 %vm412_vm1, %v409_v56  ;;  %5322 = vmatmul.msk.f32.gmra.mxu1 %vm412_vm1, %v5296_v57 }
  0xc6   : > { %v6396_v58 = vpop.f32.mrf.mxu2  ;;  %v6398_v59 = vpop.f32.mrf.mxu3 }
  0xc9   : > { %v6402_v62 = vpop.f32.mrf.mxu0  ;;  %v6404_v63 = vpop.f32.mrf.mxu1 }
  0xcb   : > { %5373 = vmatmul.msk.f32.gmra.mxu2 %vm412_vm1, %v5347_v60  ;;  %5424 = vmatmul.msk.f32.gmra.mxu3 %vm412_vm1, %v5398_v61 }
  0xcc   : > { %5272 = vmatmul.msk.f32.gmra.mxu0 %vm412_vm1, %v410_v0  ;;  %5323 = vmatmul.msk.f32.gmra.mxu1 %vm412_vm1, %v5297_v1 }
  0xce   : > { %v6412_v2 = vpop.f32.mrf.mxu2  ;;  %v6414_v3 = vpop.f32.mrf.mxu3 }
  0xd1   : > { %v6418_v11 = vpop.f32.mrf.mxu0  ;;  %v6420_v12 = vpop.f32.mrf.mxu1 }
  0xd3   : > { %5374 = vmatmul.msk.f32.gmra.mxu2 %vm412_vm1, %v5348_v6  ;;  %5425 = vmatmul.msk.f32.gmra.mxu3 %vm412_vm1, %v5399_v7 }
  0xd6   : > { %v6424_v15 = vpop.f32.mrf.mxu2  ;;  %v6426_v16 = vpop.f32.mrf.mxu3 }
  0xd9   : > { %v6430_v24 = vpop.f32.mrf.mxu0  ;;  %v6432_v25 = vpop.f32.mrf.mxu1 }
  0xdb   : > { %5375 = vmatmul.msk.f32.gmra.mxu2 %vm412_vm1, %v5349_v20  ;;  %5426 = vmatmul.msk.f32.gmra.mxu3 %vm412_vm1, %v5400_v21 }
  0xde   : > { %v6436_v28 = vpop.f32.mrf.mxu2  ;;  %v6438_v29 = vpop.f32.mrf.mxu3 }
  0xe1   : > { %v539_v32 = vpop.f32.mrf.mxu0  ;;  %v732_v33 = vpop.f32.mrf.mxu1 }
  0xe6   : > { %v6440_v36 = vpop.f32.mrf.mxu2  ;;  %v1115_v37 = vpop.f32.mrf.mxu3 }
  0xe9   : > { %v542_v40 = vpop.f32.mrf.mxu0  ;;  %v735_v41 = vpop.f32.mrf.mxu1 }
  0xea   : > { %v1174_v23 = vmax.f32 %v542_v40, %v735_v41  ;;  %v10070_v40 = vld [vmem:[#allocation14_spill] sm:$0xff] }
  0xeb   : > { %v1166_v41 = vmax.f32 %v10070_v40, %v6340_v31  ;;  %v10077_v31 = vld [vmem:[#allocation7_spill] sm:$0xff] }
  0xee   : > { %v925_v44 = vpop.f32.mrf.mxu2  ;;  %v1118_v45 = vpop.f32.mrf.mxu3 }
  0xf1   : > { %v545_v48 = vpop.f32.mrf.mxu0  ;;  %v738_v49 = vpop.f32.mrf.mxu1 }
  0xf2   : > { %v1175_v14 = vmax.f32 %v545_v48, %v738_v49 }
  0xf6   : > { %v928_v52 = vpop.f32.mrf.mxu2  ;;  %v1121_v53 = vpop.f32.mrf.mxu3 }
  0xf7   : > { %v1199_v42 = vmax.f32 %v928_v52, %v1121_v53  ;;  %v10073_v53 = vld [vmem:[#allocation11_spill] sm:$0xff] }
  0xf9   : > { %v548_v56 = vpop.f32.mrf.mxu0  ;;  %v741_v57 = vpop.f32.mrf.mxu1 }
  0xfa   : > { %v1176_v4 = vmax.f32 %v548_v56, %v741_v57 }
  0xfe   : > { %v931_v60 = vpop.f32.mrf.mxu2  ;;  %v1124_v61 = vpop.f32.mrf.mxu3 }
  0xff   : > { %v1200_v34 = vmax.f32 %v931_v60, %v1124_v61  ;;  %v10074_v60 = vld [vmem:[#allocation10_spill] sm:$0xff] }
 0x100   : > { %v1165_v61 = vmax.f32 %v10074_v60, %v10073_v53 }
 0x101   : > { %v551_v0 = vpop.f32.mrf.mxu0  ;;  %v744_v1 = vpop.f32.mrf.mxu1 }
 0x102   : > { %v1177_v18 = vmax.f32 %v551_v0, %v744_v1  ;;  %v1173_v0 = vmax.f32 %v539_v32, %v732_v33 }
 0x106   : > { %v934_v6 = vpop.f32.mrf.mxu2  ;;  %v1127_v7 = vpop.f32.mrf.mxu3 }
 0x107   : > { %v1201_v5 = vmax.f32 %v934_v6, %v1127_v7 }
 0x109   : > { %v554_v20 = vpop.f32.mrf.mxu0  ;;  %v747_v21 = vpop.f32.mrf.mxu1  ;;  %v1226_v43 = vmax.f32 %v1176_v4, %v1201_v5  ;;  %v1172_v4 = vmax.f32 %v6430_v24, %v6432_v25  ;;  %v1197_v5 = vmax.f32 %v6440_v36, %v1115_v37  ;;  %v1169_v25 = vmax.f32 %v6386_v54, %v6388_v55 }
 0x10a   : > { %v1178_v26 = vmax.f32 %v554_v20, %v747_v21  ;;  %v10078_v21 = vld [vmem:[#allocation6_spill] sm:$0xff] }
 0x10e   : > { %v937_v10 = vpop.f32.mrf.mxu2  ;;  %v1130_v19 = vpop.f32.mrf.mxu3 }
 0x10f   : > { %v1202_v17 = vmax.f32 %v937_v10, %v1130_v19  ;;  %v1198_v10 = vmax.f32 %v925_v44, %v1118_v45  ;;  %v1225_v19 = vmax.f32 %v1175_v14, %v1200_v34  ;;  %v1171_v14 = vmax.f32 %v6418_v11, %v6420_v12  ;;  %v10071_v44 = vld [vmem:[#allocation18_spill] sm:$0xff]  ;;  %v10072_v45 = vld [vmem:[#allocation17_spill] sm:$0xff] }
 0x110   : > { %v1191_v49 = vmax.f32 %v10072_v45, %v10071_v44 }
 0x111   : > { %v6442_v9 = vpop.f32.mrf.mxu0  ;;  %v6444_v8 = vpop.f32.mrf.mxu1  ;;  %v1227_v35 = vmax.f32 %v1177_v18, %v1202_v17  ;;  %v1223_v34 = vmax.f32 %v1173_v0, %v1198_v10  ;;  %v1164_v0 = vmax.f32 %v10078_v21, %v10077_v31  ;;  %v10079_v10 = vld [vmem:[#allocation13_spill] sm:$0xff] }
 0x112   : > { %10069 = vst [vmem:[#allocation19_spill] sm:$0xff] %v6442_v9  ;;  %v6449_v9 = vld [vmem:[%s9900_s2] ss:$0 sm:$0xff] }
 0x113   : > { %v1256_v57 = vadd.f32 %v6449_v9, %v1227_v35  ;;  %v1254_v24 = vadd.f32 %v6449_v9, %v1225_v19  ;;  %v1252_v33 = vadd.f32 %v6449_v9, %v1223_v34  ;;  %v10080_v19 = vld [vmem:[#allocation12_spill] sm:$0xff] }
 0x115   : > { %v1281_v35 = vmax.f32 %v1256_v57, 0.0  ;;  %v1279_v32 = vmax.f32 %v1254_v24, 0.0  ;;  %v1216_v57 = vmax.f32 %v1166_v41, %v1191_v49 }
 0x116   : > { %v940_v27 = vpop.f32.mrf.mxu2  ;;  %v1133_v13 = vpop.f32.mrf.mxu3 }
 0x117   : > { %v1203_v22 = vmax.f32 %v940_v27, %v1133_v13  ;;  %v1224_v13 = vmax.f32 %v1174_v23, %v1199_v42  ;;  %v1170_v23 = vmax.f32 %v6402_v62, %v6404_v63  ;;  %v1195_v42 = vmax.f32 %v6424_v15, %v6426_v16 }
 0x118   : > { %v1168_v62 = vmax.f32 %v6370_v46, %v6372_v47  ;;  %v1193_v63 = vmax.f32 %v6396_v58, %v6398_v59  ;;  %v1192_v46 = vmax.f32 %v6380_v50, %v6382_v51  ;;  %v1277_v58 = vmax.f32 %v1252_v33, 0.0  ;;  %v10075_v50 = vld [vmem:[#allocation16_spill] sm:$0xff]  ;;  %v10076_v51 = vld [vmem:[#allocation15_spill] sm:$0xff] }
 0x119   : > { %v1228_v30 = vmax.f32 %v1178_v26, %v1203_v22  ;;  %v6453_v48 = vpop.f32.mrf.mxu0  ;;  %v6455_v17 = vpop.f32.mrf.mxu1  ;;  %v1255_v22 = vadd.f32 %v6449_v9, %v1226_v43  ;;  %v1222_v43 = vmax.f32 %v1172_v4, %v1197_v5  ;;  %v1253_v12 = vadd.f32 %v6449_v9, %v1224_v13 }
 0x11a   : > { %v1220_v15 = vmax.f32 %v1170_v23, %v1195_v42  ;;  %v1218_v52 = vmax.f32 %v1168_v62, %v1193_v63  ;;  %v1190_v1 = vmax.f32 %v10076_v51, %v10075_v50 }
 0x11b   : > { %v1257_v56 = vadd.f32 %v6449_v9, %v1228_v30  ;;  %v1196_v30 = vmax.f32 %v6436_v28, %v6438_v29  ;;  %v1280_v11 = vmax.f32 %v1255_v22, 0.0  ;;  %v1194_v28 = vmax.f32 %v6412_v2, %v6414_v3  ;;  %v10081_v22 = vld [vmem:[#allocation3_spill] sm:$0xff] }
 0x11c   : > { %v1278_v16 = vmax.f32 %v1253_v12, 0.0  ;;  %v1251_v36 = vadd.f32 %v6449_v9, %v1222_v43  ;;  %v1167_v2 = vmax.f32 %v6354_v38, %v6356_v39  ;;  %v1249_v39 = vadd.f32 %v6449_v9, %v1220_v15 }
 0x11d   : > { %v1282_v18 = vmax.f32 %v1257_v56, 0.0  ;;  %v1221_v29 = vmax.f32 %v1171_v14, %v1196_v30  ;;  %v1219_v47 = vmax.f32 %v1169_v25, %v1194_v28  ;;  %v1189_v56 = vmax.f32 %v10080_v19, %v10079_v10  ;;  %v10082_v14 = vld [vmem:[#allocation2_spill] sm:$0xff]  ;;  %v10083_v25 = vld [vmem:[#allocation8_spill] sm:$0xff]  ;;  %v10084_v28 = vld [vmem:[#allocation9_spill] sm:$0xff] }
 0x11e   : > { %v6463_v26 = vpop.f32.mrf.mxu2  ;;  %v6465_v27 = vpop.f32.mrf.mxu3  ;;  %v1276_v38 = vmax.f32 %v1251_v36, 0.0  ;;  %v1217_v6 = vmax.f32 %v1167_v2, %v1192_v46  ;;  %v1274_v4 = vmax.f32 %v1249_v39, 0.0  ;;  %v1247_v5 = vadd.f32 %v6449_v9, %v1218_v52  ;;  %v1294_v10 = vld [vmem:[%s9901_s3 + $0x10] sm:$0xff] }
 0x11f   : > { %1477 = vmatpush.msrb.mxu0 %v1282_v18  ;;  %v1250_v59 = vadd.f32 %v6449_v9, %v1221_v29  ;;  %v1248_v20 = vadd.f32 %v6449_v9, %v1219_v47  ;;  %v1163_v30 = vmax.f32 %v10082_v14, %v10081_v22  ;;  %v1215_v34 = vmax.f32 %v1165_v61, %v1190_v1  ;;  %v1292_v1 = vld [vmem:[%s9901_s3] sm:$0xff] }
 0x120   : > { %v1246_v24 = vadd.f32 %v6449_v9, %v1217_v6  ;;  %v1214_v43 = vmax.f32 %v1164_v0, %v1189_v56  ;;  %v1245_v12 = vadd.f32 %v6449_v9, %v1216_v57  ;;  %v10085_v29 = vmax.f32 %v10083_v25, %v10084_v28 }
 0x121   : > { %1478 = vmatpush.msrb.mxu0 %v1281_v35  ;;  %v6485_v54 = vpop.f32.mrf.mxu0  ;;  %v6487_v55 = vpop.f32.mrf.mxu1  ;;  %v1275_v7 = vmax.f32 %v1250_v59, 0.0  ;;  %v1273_v35 = vmax.f32 %v1248_v20, 0.0  ;;  %v1244_v62 = vadd.f32 %v6449_v9, %v1215_v34 }
 0x122   : > { %v1271_v33 = vmax.f32 %v1246_v24, 0.0  ;;  %v1270_v63 = vmax.f32 %v1245_v12, 0.0  ;;  %v1243_v15 = vadd.f32 %v6449_v9, %v1214_v43  ;;  %v10087_v24 = vld [vmem:[#allocation5_spill] sm:$0xff] }
 0x123   : > { %1479 = vmatpush.msrb.mxu0 %v1280_v11  ;;  %v1272_v11 = vmax.f32 %v1247_v5, 0.0  ;;  %v1269_v2 = vmax.f32 %v1244_v62, 0.0 }
 0x124   : > { %v1268_v47 = vmax.f32 %v1243_v15, 0.0 }
 0x125   : > { %1480 = vmatpush.msrb.mxu0 %v1279_v32  ;;  %v1213_v32 = vmax.f32 %v1163_v30, %v10085_v29 }
 0x126   : > { %v6491_v3 = vpop.f32.mrf.mxu2  ;;  %v6493_v37 = vpop.f32.mrf.mxu3 }
 0x127   : > { %1481 = vmatpush.msrb.mxu0 %v1278_v16  ;;  %v1242_v46 = vadd.f32 %v6449_v9, %v1213_v32 }
 0x129   : > { %1482 = vmatpush.msrb.mxu0 %v1277_v58  ;;  %v6520_v23 = vpop.f32.mrf.mxu0  ;;  %v6522_v42 = vpop.f32.mrf.mxu1  ;;  %v1267_v40 = vmax.f32 %v1242_v46, 0.0  ;;  %v1204_v46 = vmax.f32 %v6463_v26, %v6465_v27 }
 0x12a   : > { %v1182_v12 = vmax.f32 %v6520_v23, %v6522_v42  ;;  %v1296_v23 = vld [vmem:[%s9901_s3 + $0x20] sm:$0xff]  ;;  %v1180_v42 = vmax.f32 %v6453_v48, %v6455_v17 }
 0x12b   : > { %1483 = vmatpush.msrb.mxu0 %v1276_v38 }
 0x12d   : > { %1484 = vmatpush.msrb.mxu0 %v1275_v7 }
 0x12e   : > { %v6513_v13 = vpop.f32.mrf.mxu2  ;;  %v6515_v18 = vpop.f32.mrf.mxu3 }
 0x12f   : > { %1485 = vmatpush.msrb.mxu0 %v1274_v4  ;;  %v1206_v62 = vmax.f32 %v6513_v13, %v6515_v18  ;;  %v10089_v13 = vld [vmem:[#allocation19_spill] sm:$0xff] }
 0x130   : > { %v1179_v18 = vmax.f32 %v10089_v13, %v6444_v8  ;;  %v1298_v8 = vld [vmem:[%s9901_s3 + $0x30] sm:$0xff] }
 0x131   : > { %1486 = vmatpush.msrb.mxu0 %v1273_v35  ;;  %v569_v58 = vpop.f32.mrf.mxu0  ;;  %v762_v59 = vpop.f32.mrf.mxu1  ;;  %v10086_v35 = vld [vmem:[#allocation4_spill] sm:$0xff] }
 0x132   : > { %v1183_v14 = vmax.f32 %v569_v58, %v762_v59  ;;  %v10088_v43 = vmax.f32 %v10086_v35, %v10087_v24  ;;  %v1229_v59 = vmax.f32 %v1179_v18, %v1204_v46  ;;  %v6663_v35 = vld [vmem:[%s9902_s4 + $0x10] sm:$0xff]  ;;  %v6669_v24 = vld [vmem:[%s9902_s4 + $0x8] sm:$0xff]  ;;  %v1327_v18 = vld [vmem:[%s9901_s3 + $0x118] sm:$0xff] }
 0x133   : > { %1487 = vmatpush.msrb.mxu0 %v1272_v11 }
 0x135   : > { %1488 = vmatpush.msrb.mxu0 %v1271_v33  ;;  %v1181_v33 = vmax.f32 %v6485_v54, %v6487_v55 }
 0x136   : > { %v952_v16 = vpop.f32.mrf.mxu2  ;;  %v1145_v36 = vpop.f32.mrf.mxu3 }
 0x137   : > { %1489 = vmatpush.msrb.mxu0 %v1270_v63  ;;  %v1207_v25 = vmax.f32 %v952_v16, %v1145_v36  ;;  %v1205_v16 = vmax.f32 %v6491_v3, %v6493_v37 }
 0x139   : > { %1490 = vmatpush.msrb.mxu0 %v1269_v2  ;;  %v572_v45 = vpop.f32.mrf.mxu0  ;;  %v765_v49 = vpop.f32.mrf.mxu1  ;;  %v1232_v36 = vmax.f32 %v1182_v12, %v1207_v25  ;;  %v1230_v17 = vmax.f32 %v1180_v42, %v1205_v16  ;;  %v6678_v12 = vld [vmem:[%s9902_s4] sm:$0xff]  ;;  %v1325_v16 = vld [vmem:[%s9901_s3 + $0x108] sm:$0xff] }
 0x13a   : > { %v1184_v57 = vmax.f32 %v572_v45, %v765_v49  ;;  %v1258_v45 = vadd.f32 %v6449_v9, %v1229_v59  ;;  %v1324_v25 = vld [vmem:[%s9901_s3 + $0x100] sm:$0xff] }
 0x13b   : > { %1491 = vmatpush.msrb.mxu0 %v1268_v47  ;;  %v1231_v47 = vmax.f32 %v1181_v33, %v1206_v62  ;;  %v1261_v37 = vadd.f32 %v6449_v9, %v1232_v36  ;;  %v1259_v27 = vadd.f32 %v6449_v9, %v1230_v17  ;;  %v1321_v33 = vld [vmem:[%s9901_s3 + $0xe8] sm:$0xff]  ;;  %v1336_v59 = vld [vmem:[%s9901_s3 + $0x160] sm:$0xff] }
 0x13c   : > { %v1329_v17 = vld [vmem:[%s9901_s3 + $0x128] sm:$0xff] }
 0x13d   : > { %1492 = vmatpush.msrb.mxu0 %v1267_v40  ;;  %v1286_v26 = vmax.f32 %v1261_v37, 0.0  ;;  %v1284_v49 = vmax.f32 %v1259_v27, 0.0  ;;  %v1338_v27 = vld [vmem:[%s9901_s3 + $0x170] sm:$0xff] }
 0x13e   : > { %v955_v41 = vpop.f32.mrf.mxu2  ;;  %v1148_v44 = vpop.f32.mrf.mxu3  ;;  %1493 = vmatmul.f32.vlgmr.msrb.gmra.mxu0 %v1292_v1  ;;  %v1301_v1 = vld [vmem:[%s9901_s3 + $0x48] sm:$0xff] }
 0x13f   : > { %v1208_v30 = vmax.f32 %v955_v41, %v1148_v44  ;;  %v1260_v41 = vadd.f32 %v6449_v9, %v1231_v47 }
 0x141   : > { %v575_v39 = vpop.f32.mrf.mxu0  ;;  %v768_v53 = vpop.f32.mrf.mxu1  ;;  %v1233_v63 = vmax.f32 %v1183_v14, %v1208_v30  ;;  %v1285_v44 = vmax.f32 %v1260_v41, 0.0  ;;  %v1315_v14 = vld [vmem:[%s9901_s3 + $0xb8] sm:$0xff]  ;;  %v1322_v30 = vld [vmem:[%s9901_s3 + $0xf0] sm:$0xff] }
 0x142   : > { %v1185_v21 = vmax.f32 %v575_v39, %v768_v53  ;;  %v1300_v39 = vld [vmem:[%s9901_s3 + $0x40] sm:$0xff]  ;;  %v1302_v53 = vld [vmem:[%s9901_s3 + $0x50] sm:$0xff]  ;;  %v1331_v41 = vld [vmem:[%s9901_s3 + $0x138] sm:$0xff] }
 0x143   : > { %v1262_v48 = vadd.f32 %v6449_v9, %v1233_v63  ;;  %v1328_v63 = vld [vmem:[%s9901_s3 + $0x120] sm:$0xff] }
 0x145   : > { %v1287_v40 = vmax.f32 %v1262_v48, 0.0 }
 0x146   : > { %v958_v52 = vpop.f32.mrf.mxu2  ;;  %v1151_v38 = vpop.f32.mrf.mxu3  ;;  %1496 = vmatmul.f32.gmra.mxu0 %v1294_v10  ;;  %v1314_v10 = vld [vmem:[%s9901_s3 + $0xb0] sm:$0xff] }
 0x147   : > { %v1209_v4 = vmax.f32 %v958_v52, %v1151_v38  ;;  %v1283_v52 = vmax.f32 %v1258_v45, 0.0  ;;  %v1293_v38 = vld [vmem:[%s9901_s3 + $0x8] sm:$0xff] }
 0x148   : > { %v1333_v45 = vld [vmem:[%s9901_s3 + $0x148] sm:$0xff] }
 0x149   : > { %v578_v6 = vpop.f32.mrf.mxu0  ;;  %v771_v7 = vpop.f32.mrf.mxu1  ;;  %v1234_v28 = vmax.f32 %v1184_v57, %v1209_v4  ;;  %v1311_v57 = vld [vmem:[%s9901_s3 + $0x98] sm:$0xff]  ;;  %v1318_v4 = vld [vmem:[%s9901_s3 + $0xd0] sm:$0xff] }
 0x14a   : > { %v1186_v20 = vmax.f32 %v578_v6, %v771_v7  ;;  %v1308_v6 = vld [vmem:[%s9901_s3 + $0x80] sm:$0xff]  ;;  %v1303_v7 = vld [vmem:[%s9901_s3 + $0x58] sm:$0xff] }
 0x14b   : > { %v1263_v55 = vadd.f32 %v6449_v9, %v1234_v28  ;;  %v1319_v28 = vld [vmem:[%s9901_s3 + $0xd8] sm:$0xff] }
 0x14d   : > { %v1288_v3 = vmax.f32 %v1263_v55, 0.0  ;;  %v1332_v55 = vld [vmem:[%s9901_s3 + $0x140] sm:$0xff] }
 0x14e   : > { %v961_v60 = vpop.f32.mrf.mxu2  ;;  %v1154_v61 = vpop.f32.mrf.mxu3  ;;  %1499 = vmatmul.f32.gmra.mxu0 %v1296_v23  ;;  %v1330_v23 = vld [vmem:[%s9901_s3 + $0x130] sm:$0xff] }
 0x14f   : > { %v1210_v0 = vmax.f32 %v961_v60, %v1154_v61  ;;  %v1297_v60 = vld [vmem:[%s9901_s3 + $0x28] sm:$0xff]  ;;  %v1304_v61 = vld [vmem:[%s9901_s3 + $0x60] sm:$0xff] }
 0x151   : > { %v1235_v34 = vmax.f32 %v1185_v21, %v1210_v0  ;;  %v1312_v21 = vld [vmem:[%s9901_s3 + $0xa0] sm:$0xff]  ;;  %v1307_v0 = vld [vmem:[%s9901_s3 + $0x78] sm:$0xff] }
 0x153   : > { %v1264_v2 = vadd.f32 %v6449_v9, %v1235_v34  ;;  %v6657_v34 = vld [vmem:[%s9902_s4 + $0x18] sm:$0xff] }
 0x154   : > { %1865 = vmatpush.msra.mxu3 %v6657_v34 }
 0x155   : > { %v1289_v58 = vmax.f32 %v1264_v2, 0.0 }
 0x156   : > { %v964_v50 = vpop.f32.mrf.mxu2  ;;  %v1157_v51 = vpop.f32.mrf.mxu3  ;;  %1502 = vmatmul.f32.gmra.mxu0 %v1298_v8  ;;  %1866 = vmatpush.msra.mxu3 %v6663_v35 }
 0x157   : > { %v1211_v31 = vmax.f32 %v964_v50, %v1157_v51  ;;  %v1299_v50 = vld [vmem:[%s9901_s3 + $0x38] sm:$0xff]  ;;  %v1306_v51 = vld [vmem:[%s9901_s3 + $0x70] sm:$0xff] }
 0x158   : > { %1867 = vmatpush.msra.mxu3 %v6669_v24 }
 0x159   : > { %v1236_v5 = vmax.f32 %v1186_v20, %v1211_v31  ;;  %v1310_v20 = vld [vmem:[%s9901_s3 + $0x90] sm:$0xff]  ;;  %v1305_v31 = vld [vmem:[%s9901_s3 + $0x68] sm:$0xff] }
 0x15a   : > { %1868 = vmatpush.msra.mxu3 %v6678_v12 }
 0x15b   : > { %v1265_v32 = vadd.f32 %v6449_v9, %v1236_v5  ;;  %v1313_v5 = vld [vmem:[%s9901_s3 + $0xa8] sm:$0xff] }
 0x15d   : > { %v1290_v54 = vmax.f32 %v1265_v32, 0.0  ;;  %v1326_v32 = vld [vmem:[%s9901_s3 + $0x110] sm:$0xff] }
 0x15e   : > { %v967_v19 = vpop.f32.mrf.mxu2  ;;  %v1160_v56 = vpop.f32.mrf.mxu3  ;;  %1505 = vmatmul.f32.gmra.mxu0 %v1300_v39  ;;  %v6762_v39 = vld [vmem:[%s9902_s4 + $0x38] sm:$0xff] }
 0x15f   : > { %v1212_v22 = vmax.f32 %v967_v19, %v1160_v56  ;;  %v1309_v19 = vld [vmem:[%s9901_s3 + $0x88] sm:$0xff]  ;;  %v1316_v56 = vld [vmem:[%s9901_s3 + $0xc0] sm:$0xff]  ;;  %1806 = vmatpush.msra.mxu2 %v6762_v39 }
 0x161   : > { %v1237_v11 = vmax.f32 %v10088_v43, %v1212_v22  ;;  %v1320_v22 = vld [vmem:[%s9901_s3 + $0xe0] sm:$0xff]  ;;  %v1317_v43 = vld [vmem:[%s9901_s3 + $0xc8] sm:$0xff] }
 0x163   : > { %v1266_v29 = vadd.f32 %v6449_v9, %v1237_v11  ;;  %v1295_v9 = vld [vmem:[%s9901_s3 + $0x18] sm:$0xff] }
 0x165   : > { %v1291_v15 = vmax.f32 %v1266_v29, 0.0 }
 0x166   : > { %1508 = vmatmul.f32.gmra.mxu0 %v1302_v53  ;;  %v6776_v53 = vld [vmem:[%s9902_s4 + $0x28] sm:$0xff] }
 0x167   : > { %5427 = vmatpush.msk.msrb.mxu1 %vm1473_vm2, %v1291_v15  ;;  %v1323_v15 = vld [vmem:[%s9901_s3 + $0xf8] sm:$0xff] }
 0x169   : > { %1610 = vmatpush.msrb.mxu1 %v1290_v54 }
 0x16b   : > { %1611 = vmatpush.msrb.mxu1 %v1289_v58  ;;  %v1334_v58 = vld [vmem:[%s9901_s3 + $0x150] sm:$0xff] }
 0x16d   : > { %1612 = vmatpush.msrb.mxu1 %v1288_v3 }
 0x16e   : > { %1511 = vmatmul.f32.gmra.mxu0 %v1304_v61  ;;  %v1335_v61 = vld [vmem:[%s9901_s3 + $0x158] sm:$0xff] }
 0x16f   : > { %1613 = vmatpush.msrb.mxu1 %v1287_v40 }
 0x171   : > { %1614 = vmatpush.msrb.mxu1 %v1286_v26 }
 0x173   : > { %1615 = vmatpush.msrb.mxu1 %v1285_v44 }
 0x175   : > { %1616 = vmatpush.msrb.mxu1 %v1284_v49 }
 0x176   : > { %1514 = vmatmul.f32.gmra.mxu0 %v1306_v51 }
 0x177   : > { %1617 = vmatpush.msrb.mxu1 %v1283_v52 }
 0x178   : > { %5428 = vmatmul.msk.f32.vlgmr.msrb.gmra.mxu1 %vm1364_vm3, %v1293_v38  ;;  %v1340_v38 = vld [vmem:[%s9901_s3 + $0x180] sm:$0xff] }
 0x17e   : > { %1517 = vmatmul.f32.gmra.mxu0 %v1308_v6  ;;  %v1342_v6 = vld [vmem:[%s9901_s3 + $0x190] sm:$0xff] }
 0x180   : > { %5429 = vmatmul.msk.f32.gmra.mxu1 %vm1364_vm3, %v1295_v9  ;;  %v6770_v9 = vld [vmem:[%s9902_s4 + $0x30] sm:$0xff] }
 0x181   : > { %1807 = vmatpush.msra.mxu2 %v6770_v9 }
 0x183   : > { %1808 = vmatpush.msra.mxu2 %v6776_v53 }
 0x186   : > { %1520 = vmatmul.f32.gmra.mxu0 %v1310_v20  ;;  %v1337_v20 = vld [vmem:[%s9901_s3 + $0x168] sm:$0xff] }
 0x188   : > { %5430 = vmatmul.msk.f32.gmra.mxu1 %vm1364_vm3, %v1297_v60 }
 0x18e   : > { %1523 = vmatmul.f32.gmra.mxu0 %v1312_v21 }
 0x190   : > { %5431 = vmatmul.msk.f32.gmra.mxu1 %vm1364_vm3, %v1299_v50 }
 0x196   : > { %1526 = vmatmul.f32.gmra.mxu0 %v1314_v10 }
 0x198   : > { %5432 = vmatmul.msk.f32.gmra.mxu1 %vm1364_vm3, %v1301_v1  ;;  %v6787_v1 = vld [vmem:[%s9902_s4 + $0x20] sm:$0xff] }
 0x199   : > { %1809 = vmatpush.msra.mxu2 %v6787_v1 }
 0x19e   : > { %1529 = vmatmul.f32.gmra.mxu0 %v1316_v56 }
 0x1a0   : > { %5433 = vmatmul.msk.f32.gmra.mxu1 %vm1364_vm3, %v1303_v7 }
 0x1a6   : > { %1532 = vmatmul.f32.gmra.mxu0 %v1318_v4 }
 0x1a8   : > { %5434 = vmatmul.msk.f32.gmra.mxu1 %vm1364_vm3, %v1305_v31 }
 0x1ae   : > { %1535 = vmatmul.f32.gmra.mxu0 %v1320_v22  ;;  %v1341_v22 = vld [vmem:[%s9901_s3 + $0x188] sm:$0xff] }
 0x1b0   : > { %5435 = vmatmul.msk.f32.gmra.mxu1 %vm1364_vm3, %v1307_v0  ;;  %v1344_v0 = vld [vmem:[%s9901_s3 + $0x1a0] sm:$0xff] }
 0x1b6   : > { %1538 = vmatmul.f32.gmra.mxu0 %v1322_v30 }
 0x1b8   : > { %5436 = vmatmul.msk.f32.gmra.mxu1 %vm1364_vm3, %v1309_v19  ;;  %v1339_v19 = vld [vmem:[%s9901_s3 + $0x178] sm:$0xff] }
 0x1bb   : > { %v1494_v11 = vpop.f32.mrf.mxu0 }
 0x1be   : > { %1541 = vmatmul.f32.gmra.mxu0 %v1324_v25 }
 0x1c0   : > { %5437 = vmatmul.msk.f32.gmra.mxu1 %vm1364_vm3, %v1311_v57  ;;  %v1346_v57 = vld [vmem:[%s9901_s3 + $0x1b0] sm:$0xff] }
 0x1c3   : > { %v1497_v29 = vpop.f32.mrf.mxu0 }
 0x1c6   : > { %1544 = vmatmul.f32.gmra.mxu0 %v1326_v32  ;;  %v1343_v32 = vld [vmem:[%s9901_s3 + $0x198] sm:$0xff] }
 0x1c8   : > { %5438 = vmatmul.msk.f32.gmra.mxu1 %vm1364_vm3, %v1313_v5 }
 0x1cb   : > { %v1500_v62 = vpop.f32.mrf.mxu0 }
 0x1ce   : > { %1547 = vmatmul.f32.gmra.mxu0 %v1328_v63  ;;  %v1350_v63 = vld [vmem:[%s9901_s3 + $0x1d0] sm:$0xff] }
 0x1d0   : > { %5439 = vmatmul.msk.f32.gmra.mxu1 %vm1364_vm3, %v1315_v14 }
 0x1d3   : > { %v1503_v2 = vpop.f32.mrf.mxu0 }
 0x1d6   : > { %1550 = vmatmul.f32.gmra.mxu0 %v1330_v23 }
 0x1d8   : > { %5440 = vmatmul.msk.f32.gmra.mxu1 %vm1364_vm3, %v1317_v43  ;;  %v1348_v43 = vld [vmem:[%s9901_s3 + $0x1c0] sm:$0xff] }
 0x1db   : > { %v1506_v36 = vpop.f32.mrf.mxu0 }
 0x1de   : > { %1553 = vmatmul.f32.gmra.mxu0 %v1332_v55  ;;  %v1347_v55 = vld [vmem:[%s9901_s3 + $0x1b8] sm:$0xff] }
 0x1e0   : > { %5441 = vmatmul.msk.f32.gmra.mxu1 %vm1364_vm3, %v1319_v28 }
 0x1e3   : > { %v1509_v46 = vpop.f32.mrf.mxu0 }
 0x1e6   : > { %1556 = vmatmul.f32.gmra.mxu0 %v1334_v58  ;;  %v6865_v58 = vld [vmem:[%s9902_s4 + $0x58] sm:$0xff] }
 0x1e7   : > { %1934 = vmatpush.msrb.mxu2 %v6865_v58 }
 0x1e8   : > { %5442 = vmatmul.msk.f32.gmra.mxu1 %vm1364_vm3, %v1321_v33 }
 0x1eb   : > { %v1512_v3 = vpop.f32.mrf.mxu0 }
 0x1ee   : > { %1559 = vmatmul.f32.gmra.mxu0 %v1336_v59 }
 0x1f0   : > { %5443 = vmatmul.msk.f32.gmra.mxu1 %vm1364_vm3, %v1323_v15 }
 0x1f3   : > { %v1515_v8 = vpop.f32.mrf.mxu0 }
 0x1f5   : > { %v1619_v42 = vpop.f32.mrf.mxu1 }
 0x1f6   : > { %v6709_v54 = vadd.f32 %v1619_v42, %v1494_v11  ;;  %1562 = vmatmul.f32.gmra.mxu0 %v1338_v27  ;;  %v6893_v27 = vld [vmem:[%s9902_s4 + $0x40] sm:$0xff] }
 0x1f8   : > { %5444 = vmatmul.msk.f32.gmra.mxu1 %vm1364_vm3, %v1325_v16  ;;  %5503 = vmatmul.msk.f32.vlgmr.msra.gmra.mxu3 %vm1772_vm4, %v6709_v54  ;;  %v1352_v16 = vld [vmem:[%s9901_s3 + $0x1e0] sm:$0xff] }
 0x1fb   : > { %v1518_v49 = vpop.f32.mrf.mxu0 }
 0x1fd   : > { %v1622_v13 = vpop.f32.mrf.mxu1 }
 0x1fe   : > { %v6720_v47 = vadd.f32 %v1622_v13, %v1497_v29  ;;  %1565 = vmatmul.f32.gmra.mxu0 %v1340_v38 }
 0x200   : > { %5445 = vmatmul.msk.f32.gmra.mxu1 %vm1364_vm3, %v1327_v18  ;;  %5504 = vmatmul.msk.f32.gmra.mxu3 %vm1772_vm4, %v6720_v47 }
 0x203   : > { %v1521_v50 = vpop.f32.mrf.mxu0 }
 0x205   : > { %v1625_v48 = vpop.f32.mrf.mxu1 }
 0x206   : > { %v6731_v37 = vadd.f32 %v1625_v48, %v1500_v62  ;;  %1568 = vmatmul.f32.gmra.mxu0 %v1342_v6  ;;  %v6871_v48 = vld [vmem:[%s9902_s4 + $0x50] sm:$0xff] }
 0x207   : > { %1935 = vmatpush.msrb.mxu2 %v6871_v48 }
 0x208   : > { %5446 = vmatmul.msk.f32.gmra.mxu1 %vm1364_vm3, %v1329_v17  ;;  %5505 = vmatmul.msk.f32.gmra.mxu3 %vm1772_vm4, %v6731_v37 }
 0x20b   : > { %v1524_v31 = vpop.f32.mrf.mxu0 }
 0x20d   : > { %v1628_v40 = vpop.f32.mrf.mxu1 }
 0x20e   : > { %v6742_v26 = vadd.f32 %v1628_v40, %v1503_v2  ;;  %1571 = vmatmul.f32.gmra.mxu0 %v1344_v0  ;;  %v1345_v2 = vld [vmem:[%s9901_s3 + $0x1a8] sm:$0xff] }
 0x20f   : > { %v6882_v40 = vld [vmem:[%s9902_s4 + $0x48] sm:$0xff] }
 0x210   : > { %5447 = vmatmul.msk.f32.gmra.mxu1 %vm1364_vm3, %v1331_v41  ;;  %5506 = vmatmul.msk.f32.gmra.mxu3 %vm1772_vm4, %v6742_v26 }
 0x211   : > { %1936 = vmatpush.msrb.mxu2 %v6882_v40 }
 0x213   : > { %v1527_v56 = vpop.f32.mrf.mxu0  ;;  %1937 = vmatpush.msrb.mxu2 %v6893_v27 }
 0x215   : > { %v1631_v44 = vpop.f32.mrf.mxu1 }
 0x216   : > { %v6753_v52 = vadd.f32 %v1631_v44, %v1506_v36  ;;  %1574 = vmatmul.f32.gmra.mxu0 %v1346_v57  ;;  %v1355_v57 = vld [vmem:[%s9901_s3 + $0x1f8] sm:$0xff] }
 0x218   : > { %5448 = vmatmul.msk.f32.gmra.mxu1 %vm1364_vm3, %v1333_v45  ;;  %5507 = vmatmul.msk.f32.gmra.mxu3 %vm1772_vm4, %v6753_v52  ;;  %v1351_v45 = vld [vmem:[%s9901_s3 + $0x1d8] sm:$0xff] }
 0x21b   : > { %v1530_v14 = vpop.f32.mrf.mxu0 }
 0x21d   : > { %v1634_v60 = vpop.f32.mrf.mxu1 }
 0x21e   : > { %v6782_v51 = vadd.f32 %v1634_v60, %v1509_v46  ;;  %1577 = vmatmul.f32.gmra.mxu0 %v1348_v43  ;;  %v1354_v46 = vld [vmem:[%s9901_s3 + $0x1f0] sm:$0xff]  ;;  %v1894_v43 = vrot.slane %v6720_v47, 1 }
 0x21f   : > { %v1358_v60 = vld [vmem:[%s9901_s3 + $0x210] sm:$0xff] }
 0x220   : > { %5449 = vmatmul.msk.f32.gmra.mxu1 %vm1364_vm3, %v1335_v61  ;;  %5508 = vmatmul.msk.f32.gmra.mxu3 %vm1772_vm4, %v6782_v51  ;;  %v6915_v61 = vld [vmem:[%s9902_s4 + $0x78] sm:$0xff] }
 0x221   : > { %2000 = vmatpush.msrb.mxu3 %v6915_v61  ;;  %2481 = vmatpush.msra.mxu0 %v6915_v61 }
 0x223   : > { %v1533_v33 = vpop.f32.mrf.mxu0 }
 0x225   : > { %v1637_v7 = vpop.f32.mrf.mxu1 }
 0x226   : > { %v6799_v21 = vadd.f32 %v1637_v7, %v1512_v3  ;;  %1580 = vmatmul.f32.gmra.mxu0 %v1350_v63  ;;  %v1349_v3 = vld [vmem:[%s9901_s3 + $0x1c8] sm:$0xff] }
 0x227   : > { %v1353_v7 = vld [vmem:[%s9901_s3 + $0x1e8] sm:$0xff] }
 0x228   : > { %5450 = vmatmul.msk.f32.gmra.mxu1 %vm1364_vm3, %v1337_v20  ;;  %5509 = vmatmul.msk.f32.gmra.mxu3 %vm1772_vm4, %v6799_v21 }
 0x22b   : > { %v1536_v23 = vpop.f32.mrf.mxu0 }
 0x22d   : > { %v1640_v10 = vpop.f32.mrf.mxu1 }
 0x22e   : > { %v6814_v4 = vadd.f32 %v1640_v10, %v1515_v8  ;;  %1583 = vmatmul.f32.gmra.mxu0 %v1352_v16  ;;  %v1356_v8 = vld [vmem:[%s9901_s3 + $0x200] sm:$0xff]  ;;  %v1359_v16 = vld [vmem:[%s9901_s3 + $0x218] sm:$0xff] }
 0x22f   : > { %v6941_v10 = vld [vmem:[%s9902_s4 + $0x60] sm:$0xff] }
 0x230   : > { %5451 = vmatmul.msk.f32.gmra.mxu1 %vm1364_vm3, %v1339_v19  ;;  %v9914_v11 = vrot.slane %v6814_v4, 1  ;;  %v1360_v19 = vld [vmem:[%s9901_s3 + $0x220] sm:$0xff] }
 0x233   : > { %v1539_v13 = vpop.f32.mrf.mxu0 }
 0x235   : > { %v1643_v5 = vpop.f32.mrf.mxu1 }
 0x236   : > { %v1644_v30 = vadd.f32 %v1643_v5, %v1518_v49  ;;  %1586 = vmatmul.f32.gmra.mxu0 %v1354_v46 }
 0x238   : > { %v2270_v25 = vrot.slane %v1644_v30, 1  ;;  %5452 = vmatmul.msk.f32.gmra.mxu1 %vm1364_vm3, %v1341_v22  ;;  %v6967_v30 = vld [vmem:[%s9902_s4 + $0x90] sm:$0xff] }
 0x239   : > { %10093 = vst [vmem:[#allocation11_spill] sm:$0xff] %v6967_v30 }
 0x23a   : > { %v6827_v28 = vsel %vm1892_vm5, %v9914_v11, %v2270_v25  ;;  %v1893_v25 = vrot.slane %v6709_v54, 1  ;;  %v6993_v54 = vld [vmem:[%s9902_s4 + $0x80] sm:$0xff] }
 0x23b   : > { %10090 = vst [vmem:[#allocation14_spill] sm:$0xff] %v6827_v28  ;;  %v6877_v59 = vpop.f32.mrf.mxu0 }
 0x23c   : > { %v6988_v63 = vsel %vm1892_vm5, %v1893_v25, %v1894_v43  ;;  %10095 = vst [vmem:[#allocation16_spill] sm:$0xff] %v6993_v54 }
 0x23d   : > { %v1646_v29 = vpop.f32.mrf.mxu1 }
 0x23e   : > { %v6832_v62 = vadd.f32 %v1646_v29, %v1521_v50  ;;  %1589 = vmatmul.f32.gmra.mxu0 %v1356_v8  ;;  %v6921_v50 = vld [vmem:[%s9902_s4 + $0x70] sm:$0xff] }
 0x23f   : > { %2001 = vmatpush.msrb.mxu3 %v6921_v50  ;;  %2482 = vmatpush.msra.mxu0 %v6921_v50 }
 0x240   : > { %10091 = vst [vmem:[#allocation18_spill] sm:$0xff] %v6832_v62  ;;  %5453 = vmatmul.msk.f32.gmra.mxu1 %vm1364_vm3, %v1343_v32  ;;  %5496 = vmatmul.msk.f32.vlgmr.msra.gmra.mxu2 %vm1772_vm4, %v6832_v62  ;;  %v1357_v32 = vld [vmem:[%s9901_s3 + $0x208] sm:$0xff] }
 0x241   : > { %v5489_v62 = vld [vmem:[%s9902_s4 + $0xe8] sm:$0xff] }
 0x243   : > { %v6902_v49 = vpop.f32.mrf.mxu0 }
 0x245   : > { %v1649_v15 = vpop.f32.mrf.mxu1 }
 0x246   : > { %v6843_v42 = vadd.f32 %v1649_v15, %v1524_v31  ;;  %1592 = vmatmul.f32.gmra.mxu0 %v1358_v60  ;;  %v6932_v31 = vld [vmem:[%s9902_s4 + $0x68] sm:$0xff] }
 0x247   : > { %2002 = vmatpush.msrb.mxu3 %v6932_v31  ;;  %2483 = vmatpush.msra.mxu0 %v6932_v31 }
 0x248   : > { %5454 = vmatmul.msk.f32.gmra.mxu1 %vm1364_vm3, %v1345_v2  ;;  %5497 = vmatmul.msk.f32.gmra.mxu2 %vm1772_vm4, %v6843_v42  ;;  %v1896_v2 = vrot.slane %v6731_v37, 1 }
 0x249   : > { %2003 = vmatpush.msrb.mxu3 %v6941_v10  ;;  %2484 = vmatpush.msra.mxu0 %v6941_v10 }
 0x24b   : > { %v1548_v20 = vpop.f32.mrf.mxu0 }
 0x24d   : > { %v1652_v36 = vpop.f32.mrf.mxu1 }
 0x24e   : > { %v6854_v18 = vadd.f32 %v1652_v36, %v1527_v56  ;;  %1595 = vmatmul.f32.gmra.mxu0 %v1360_v19  ;;  %v7007_v36 = vsel %vm1892_vm5, %v1894_v43, %v1896_v2 }
 0x250   : > { %5455 = vmatmul.msk.f32.gmra.mxu1 %vm1364_vm3, %v1347_v55  ;;  %5498 = vmatmul.msk.f32.gmra.mxu2 %vm1772_vm4, %v6854_v18 }
 0x253   : > { %v1551_v22 = vpop.f32.mrf.mxu0 }
 0x255   : > { %v1655_v17 = vpop.f32.mrf.mxu1 }
 0x256   : > { %v6884_v41 = vadd.f32 %v1655_v17, %v1530_v14  ;;  %v6962_v14 = vld [vmem:[%s9902_s4 + $0x98] sm:$0xff]  ;;  %v1361_v17 = vld [vmem:[%s9901_s3 + $0x228] sm:$0xff] }
 0x257   : > { %10092 = vst [vmem:[#allocation17_spill] sm:$0xff] %v6962_v14  ;;  %2526 = vmatpush.msra.mxu1 %v6962_v14  ;;  %2066 = vmatpush.msra.mxu2 %v6962_v14 }
 0x258   : > { %5456 = vmatmul.msk.f32.gmra.mxu1 %vm1364_vm3, %v1349_v3  ;;  %5499 = vmatmul.msk.f32.gmra.mxu2 %vm1772_vm4, %v6884_v41 }
 0x259   : > { %2527 = vmatpush.msra.mxu1 %v6967_v30  ;;  %2067 = vmatpush.msra.mxu2 %v6967_v30  ;;  %v7133_v30 = vld [vmem:[%s9902_s4 + $0x108] sm:$0xff] }
 0x25a   : > { %10108 = vst [vmem:[#allocation19_spill] sm:$0xff] %v7133_v30 }
 0x25b   : > { %v1554_v15 = vpop.f32.mrf.mxu0 }
 0x25d   : > { %v1658_v44 = vpop.f32.mrf.mxu1 }
 0x25e   : > { %v6904_v38 = vadd.f32 %v1658_v44, %v1533_v33  ;;  %v6983_v33 = vld [vmem:[%s9902_s4 + $0x88] sm:$0xff]  ;;  %v1900_v44 = vrot.slane %v6753_v52, 1 }
 0x25f   : > { %10094 = vst [vmem:[#allocation10_spill] sm:$0xff] %v6983_v33  ;;  %2528 = vmatpush.msra.mxu1 %v6983_v33  ;;  %2068 = vmatpush.msra.mxu2 %v6983_v33  ;;  %v1362_v33 = vld [vmem:[%s9901_s3 + $0x230] sm:$0xff] }
 0x260   : > { %5457 = vmatmul.msk.f32.gmra.mxu1 %vm1364_vm3, %v1351_v45  ;;  %5500 = vmatmul.msk.f32.gmra.mxu2 %vm1772_vm4, %v6904_v38 }
 0x261   : > { %2529 = vmatpush.msra.mxu1 %v6993_v54  ;;  %2069 = vmatpush.msra.mxu2 %v6993_v54 }
 0x262   : > { %1598 = vmatmul.f32.gmra.mxu0 %v1362_v33  ;;  %v7141_v33 = vld [vmem:[%s9902_s4 + $0x100] sm:$0xff] }
 0x263   : > { %v1557_v55 = vpop.f32.mrf.mxu0  ;;  %10110 = vst [vmem:[#allocation21_spill] sm:$0xff] %v7141_v33 }
 0x265   : > { %v1661_v6 = vpop.f32.mrf.mxu1 }
 0x266   : > { %v6934_v0 = vadd.f32 %v1661_v6, %v1536_v23  ;;  %v1363_v6 = vld [vmem:[%s9901_s3 + $0x238] sm:$0xff] }
 0x268   : > { %5458 = vmatmul.msk.f32.gmra.mxu1 %vm1364_vm3, %v1353_v7  ;;  %5501 = vmatmul.msk.f32.gmra.mxu2 %vm1772_vm4, %v6934_v0 }
 0x26b   : > { %v1560_v45 = vpop.f32.mrf.mxu0 }
 0x26d   : > { %v1664_v56 = vpop.f32.mrf.mxu1 }
 0x26e   : > { %v6954_v5 = vadd.f32 %v1664_v56, %v1539_v13  ;;  %v1898_v13 = vrot.slane %v6742_v26, 1  ;;  %v1902_v56 = vrot.slane %v6782_v51, 1 }
 0x270   : > { %5459 = vmatmul.msk.f32.gmra.mxu1 %vm1364_vm3, %v1355_v57  ;;  %5502 = vmatmul.msk.f32.gmra.mxu2 %vm1772_vm4, %v6954_v5  ;;  %v7022_v8 = vsel %vm1892_vm5, %v1896_v2, %v1898_v13  ;;  %v7053_v2 = vsel %vm1892_vm5, %v1900_v44, %v1902_v56 }
 0x273   : > { %v1563_v25 = vpop.f32.mrf.mxu0 }
 0x275   : > { %v6975_v29 = vpop.f32.mrf.mxu1 }
 0x278   : > { %5460 = vmatmul.msk.f32.gmra.mxu1 %vm1364_vm3, %v1357_v32  ;;  %5510 = vmatmul.msk.f32.vlgmr.msrb.gmra.mxu2 %vm1772_vm4, %v6988_v63 }
 0x27d   : > { %v7001_v23 = vpop.f32.mrf.mxu1 }
 0x280   : > { %5461 = vmatmul.msk.f32.gmra.mxu1 %vm1364_vm3, %v1359_v16  ;;  %5511 = vmatmul.msk.f32.gmra.mxu2 %vm1772_vm4, %v7007_v36  ;;  %v7058_v16 = vld [vmem:[%s9902_s4 + $0xb8] sm:$0xff] }
 0x281   : > { %2141 = vmatpush.msra.mxu3 %v7058_v16 }
 0x285   : > { %v1673_v46 = vpop.f32.mrf.mxu1 }
 0x286   : > { %v7016_v3 = vadd.f32 %v1673_v46, %v1548_v20  ;;  %v7036_v20 = vsel %vm1892_vm5, %v1898_v13, %v1900_v44  ;;  %v1904_v46 = vrot.slane %v6799_v21, 1  ;;  %v7074_v44 = vld [vmem:[%s9902_s4 + $0xa8] sm:$0xff] }
 0x288   : > { %10096 = vst [vmem:[#allocation15_spill] sm:$0xff] %v7016_v3  ;;  %5462 = vmatmul.msk.f32.gmra.mxu1 %vm1364_vm3, %v1361_v17  ;;  %5517 = vmatmul.msk.f32.vlgmr.msrb.gmra.mxu3 %vm1772_vm4, %v7016_v3  ;;  %v2100_v57 = vrot.slane %v7016_v3, 1 }
 0x289   : > { %5512 = vmatmul.msk.f32.gmra.mxu2 %vm1772_vm4, %v7022_v8 }
 0x28d   : > { %v1676_v60 = vpop.f32.mrf.mxu1 }
 0x28e   : > { %v7030_v7 = vadd.f32 %v1676_v60, %v1551_v22 }
 0x290   : > { %10097 = vst [vmem:[#allocation7_spill] sm:$0xff] %v7030_v7  ;;  %5463 = vmatmul.msk.f32.gmra.mxu1 %vm1364_vm3, %v1363_v6  ;;  %5518 = vmatmul.msk.f32.gmra.mxu3 %vm1772_vm4, %v7030_v7  ;;  %v2101_v19 = vrot.slane %v7030_v7, 1 }
 0x291   : > { %5513 = vmatmul.msk.f32.gmra.mxu2 %vm1772_vm4, %v7036_v20 }
 0x292   : > { %v7046_v32 = vsel %vm1892_vm5, %v2100_v57, %v2101_v19  ;;  %v7085_v57 = vld [vmem:[%s9902_s4 + $0xa0] sm:$0xff] }
 0x293   : > { %10099 = vst [vmem:[#allocation13_spill] sm:$0xff] %v7046_v32 }
 0x295   : > { %v1679_v43 = vpop.f32.mrf.mxu1 }
 0x296   : > { %v7043_v22 = vadd.f32 %v1679_v43, %v1554_v15  ;;  %v7063_v15 = vld [vmem:[%s9902_s4 + $0xb0] sm:$0xff]  ;;  %v7092_v43 = vsel %vm1892_vm5, %v1902_v56, %v1904_v46  ;;  %v10104_v56 = vrot.slane %v6814_v4, 1 }
 0x297   : > { %2142 = vmatpush.msra.mxu3 %v7063_v15 }
 0x298   : > { %10098 = vst [vmem:[#allocation6_spill] sm:$0xff] %v7043_v22  ;;  %5519 = vmatmul.msk.f32.gmra.mxu3 %vm1772_vm4, %v7043_v22  ;;  %5587 = vmatmul.msk.f32.vlgmr.msra.gmra.mxu1 %vm1772_vm4, %v7046_v32  ;;  %v2103_v13 = vrot.slane %v7043_v22, 1  ;;  %v7110_v54 = vsel %vm1892_vm5, %v1904_v46, %v10104_v56 }
 0x299   : > { %5514 = vmatmul.msk.f32.gmra.mxu2 %vm1772_vm4, %v7053_v2  ;;  %2143 = vmatpush.msra.mxu3 %v7074_v44  ;;  %10105 = vst [vmem:[#allocation9_spill] sm:$0xff] %v7110_v54 }
 0x29a   : > { %v7080_v6 = vsel %vm1892_vm5, %v2101_v19, %v2103_v13 }
 0x29b   : > { %10101 = vst [vmem:[#allocation3_spill] sm:$0xff] %v7080_v6  ;;  %2144 = vmatpush.msra.mxu3 %v7085_v57 }
 0x29d   : > { %v1682_v17 = vpop.f32.mrf.mxu1 }
 0x29e   : > { %v7076_v60 = vadd.f32 %v1682_v17, %v1557_v55  ;;  %v1566_v55 = vpop.f32.mrf.mxu0 }
 0x2a0   : > { %10100 = vst [vmem:[#allocation12_spill] sm:$0xff] %v7076_v60  ;;  %5520 = vmatmul.msk.f32.gmra.mxu3 %vm1772_vm4, %v7076_v60  ;;  %5588 = vmatmul.msk.f32.gmra.mxu1 %vm1772_vm4, %v7080_v6  ;;  %v2105_v19 = vrot.slane %v7076_v60, 1 }
 0x2a1   : > { %5515 = vmatmul.msk.f32.gmra.mxu2 %vm1772_vm4, %v7092_v43 }
 0x2a2   : > { %v7101_v3 = vsel %vm1892_vm5, %v2103_v13, %v2105_v19  ;;  %v7125_v13 = vld [vmem:[%s9902_s4 + $0x110] sm:$0xff] }
 0x2a3   : > { %10103 = vst [vmem:[#allocation8_spill] sm:$0xff] %v7101_v3 }
 0x2a4   : > { %10107 = vst [vmem:[#allocation5_spill] sm:$0xff] %v7125_v13 }
 0x2a5   : > { %v1685_v17 = vpop.f32.mrf.mxu1 }
 0x2a6   : > { %v7098_v11 = vadd.f32 %v1685_v17, %v1560_v45  ;;  %v7118_v45 = vld [vmem:[%s9902_s4 + $0x118] sm:$0xff]  ;;  %v1569_v46 = vpop.f32.mrf.mxu0 }
 0x2a7   : > { %10106 = vst [vmem:[#allocation4_spill] sm:$0xff] %v7118_v45  ;;  %2741 = vmatpush.msrb.mxu1 %v7118_v45 }
 0x2a8   : > { %10102 = vst [vmem:[#allocation2_spill] sm:$0xff] %v7098_v11  ;;  %5521 = vmatmul.msk.f32.gmra.mxu3 %vm1772_vm4, %v7098_v11  ;;  %5589 = vmatmul.msk.f32.gmra.mxu1 %vm1772_vm4, %v7101_v3  ;;  %v2107_v17 = vrot.slane %v7098_v11, 1 }
 0x2a9   : > { %5516 = vmatmul.msk.f32.gmra.mxu2 %vm1772_vm4, %v7110_v54  ;;  %2742 = vmatpush.msrb.mxu1 %v7125_v13 }
 0x2aa   : > { %v7144_v60 = vsel %vm1892_vm5, %v2105_v19, %v2107_v17 }
 0x2ab   : > { %2743 = vmatpush.msrb.mxu1 %v7133_v30  ;;  %10111 = vst [vmem:[#allocation22_spill] sm:$0xff] %v7144_v60 }
 0x2ad   : > { %v1688_v56 = vpop.f32.mrf.mxu1  ;;  %2744 = vmatpush.msrb.mxu1 %v7141_v33 }
 0x2ae   : > { %v7135_v14 = vadd.f32 %v1688_v56, %v1563_v25  ;;  %v7153_v56 = vpop.f32.mrf.mxu0 }
 0x2af   : > { %2907 = vmatpush.msra.mxu1 %v6915_v61  ;;  %10112 = vst [vmem:[#allocation23_spill] sm:$0xff] %v7153_v56 }
 0x2b0   : > { %10109 = vst [vmem:[#allocation20_spill] sm:$0xff] %v7135_v14  ;;  %5522 = vmatmul.msk.f32.gmra.mxu3 %vm1772_vm4, %v7135_v14  ;;  %5590 = vmatmul.msk.f32.gmra.mxu1 %vm1772_vm4, %v7144_v60  ;;  %v2109_v25 = vrot.slane %v7135_v14, 1 }
 0x2b1   : > { %2908 = vmatpush.msra.mxu1 %v6921_v50 }
 0x2b2   : > { %v7160_v19 = vsel %vm1892_vm5, %v2107_v17, %v2109_v25 }
 0x2b3   : > { %2909 = vmatpush.msra.mxu1 %v6932_v31  ;;  %10114 = vst [vmem:[#allocation25_spill] sm:$0xff] %v7160_v19 }
 0x2b5   : > { %v1691_v11 = vpop.f32.mrf.mxu1  ;;  %2910 = vmatpush.msra.mxu1 %v6941_v10 }
 0x2b6   : > { %v7156_v22 = vadd.f32 %v1691_v11, %v1566_v55  ;;  %v1575_v50 = vpop.f32.mrf.mxu0 }
 0x2b8   : > { %10113 = vst [vmem:[#allocation24_spill] sm:$0xff] %v7156_v22  ;;  %5523 = vmatmul.msk.f32.gmra.mxu3 %vm1772_vm4, %v7156_v22  ;;  %5591 = vmatmul.msk.f32.gmra.mxu1 %vm1772_vm4, %v7160_v19  ;;  %v2111_v61 = vrot.slane %v7156_v22, 1 }
 0x2ba   : > { %v7171_v11 = vsel %vm1892_vm5, %v2109_v25, %v2111_v61 }
 0x2bb   : > { %10116 = vst [vmem:[#allocation27_spill] sm:$0xff] %v7171_v11 }
 0x2bd   : > { %v1694_v56 = vpop.f32.mrf.mxu1 }
 0x2be   : > { %v7168_v14 = vadd.f32 %v1694_v56, %v1569_v46  ;;  %v7185_v46 = vpop.f32.mrf.mxu3  ;;  %v1578_v17 = vpop.f32.mrf.mxu0  ;;  %v2398_v56 = vrot.slane %v6854_v18, 1 }
 0x2c0   : > { %10115 = vst [vmem:[#allocation26_spill] sm:$0xff] %v7168_v14  ;;  %5531 = vmatmul.msk.f32.vlgmr.msra.gmra.mxu3 %vm1772_vm4, %v7046_v32  ;;  %5592 = vmatmul.msk.f32.gmra.mxu1 %vm1772_vm4, %v7171_v11  ;;  %v9932_v31 = vrot.slane %v7168_v14, 1  ;;  %v9935_v14 = vrot.slane %v6843_v42, 1 }
 0x2c2   : > { %v7183_v10 = vsel %vm1892_vm5, %v2111_v61, %v9932_v31  ;;  %v7204_v61 = vsel %vm1892_vm5, %v9935_v14, %v2398_v56  ;;  %v5490_v31 = vld [vmem:[%s9902_s4 + $0xf0] sm:$0xff] }
 0x2c3   : > { %10118 = vst [vmem:[#allocation29_spill] sm:$0xff] %v7183_v10  ;;  %v7191_v25 = vpop.f32.mrf.mxu2 }
 0x2c4   : > { %10120 = vst [vmem:[#allocation31_spill] sm:$0xff] %v7204_v61 }
 0x2c5   : > { %v7178_v55 = vpop.f32.mrf.mxu1 }
 0x2c6   : > { %10117 = vst [vmem:[#allocation28_spill] sm:$0xff] %v7178_v55  ;;  %v1581_v7 = vpop.f32.mrf.mxu0 }
 0x2c8   : > { %5532 = vmatmul.msk.f32.gmra.mxu3 %vm1772_vm4, %v7080_v6  ;;  %5593 = vmatmul.msk.f32.gmra.mxu1 %vm1772_vm4, %v7183_v10 }
 0x2cb   : > { %v7218_v14 = vpop.f32.mrf.mxu2 }
 0x2cd   : > { %v1700_v22 = vpop.f32.mrf.mxu1 }
 0x2ce   : > { %v7194_v55 = vadd.f32 %v1700_v22, %v1575_v50  ;;  %v7210_v22 = vpop.f32.mrf.mxu3  ;;  %v5491_v50 = vld [vmem:[%s9902_s4 + $0xf8] sm:$0xff] }
 0x2cf   : > { %10121 = vst [vmem:[#allocation32_spill] sm:$0xff] %v7210_v22  ;;  %2236 = vmatpush.msrb.mxu3 %v5491_v50  ;;  %2691 = vmatpush.msrb.mxu0 %v5491_v50 }
 0x2d0   : > { %10119 = vst [vmem:[#allocation30_spill] sm:$0xff] %v7194_v55  ;;  %5524 = vmatmul.msk.f32.vlgmr.msra.gmra.mxu2 %vm1772_vm4, %v7194_v55  ;;  %5533 = vmatmul.msk.f32.gmra.mxu3 %vm1772_vm4, %v7101_v3  ;;  %v5488_v3 = vld [vmem:[%s9902_s4 + $0xe0] sm:$0xff] }
 0x2d1   : > { %5580 = vmatmul.msk.f32.vlgmr.msra.gmra.mxu0 %vm1772_vm4, %v7194_v55  ;;  %5615 = vmatmul.msk.f32.vlgmr.msrb.gmra.mxu1 %vm1772_vm4, %v7204_v61  ;;  %v2400_v55 = vrot.slane %v6884_v41, 1 }
 0x2d2   : > { %3091 = vmatpush.msrb.mxu1 %v5491_v50  ;;  %2237 = vmatpush.msrb.mxu3 %v5490_v31 }
 0x2d3   : > { %2692 = vmatpush.msrb.mxu0 %v5490_v31  ;;  %v7234_v50 = vsel %vm1892_vm5, %v2398_v56, %v2400_v55  ;;  %v7245_v56 = vpop.f32.mrf.mxu2 }
 0x2d4   : > { %3092 = vmatpush.msrb.mxu1 %v5490_v31  ;;  %2238 = vmatpush.msrb.mxu3 %v5489_v62  ;;  %10122 = vst [vmem:[#allocation33_spill] sm:$0xff] %v7234_v50 }
 0x2d5   : > { %v1703_v61 = vpop.f32.mrf.mxu1  ;;  %2693 = vmatpush.msrb.mxu0 %v5489_v62 }
 0x2d6   : > { %v7224_v22 = vadd.f32 %v1703_v61, %v1578_v17  ;;  %3093 = vmatpush.msrb.mxu1 %v5489_v62  ;;  %2239 = vmatpush.msrb.mxu3 %v5488_v3  ;;  %v7240_v31 = vpop.f32.mrf.mxu3  ;;  %v2402_v62 = vrot.slane %v6904_v38, 1  ;;  %v1584_v17 = vpop.f32.mrf.mxu0 }
 0x2d7   : > { %2694 = vmatpush.msrb.mxu0 %v5488_v3  ;;  %10123 = vst [vmem:[#allocation34_spill] sm:$0xff] %v7240_v31  ;;  %v7294_v31 = vld [vmem:[%s9902_s4 + $0xc0] sm:$0xff] }
 0x2d8   : > { %5525 = vmatmul.msk.f32.gmra.mxu2 %vm1772_vm4, %v7224_v22  ;;  %5534 = vmatmul.msk.f32.gmra.mxu3 %vm1772_vm4, %v7144_v60 }
 0x2d9   : > { %5581 = vmatmul.msk.f32.gmra.mxu0 %vm1772_vm4, %v7224_v22  ;;  %5616 = vmatmul.msk.f32.gmra.mxu1 %vm1772_vm4, %v7234_v50 }
 0x2da   : > { %2331 = vmatpush.msra.mxu3 %v6762_v39  ;;  %2862 = vmatpush.msra.mxu0 %v6865_v58  ;;  %v7258_v39 = vsel %vm1892_vm5, %v2400_v55, %v2402_v62 }
 0x2db   : > { %3094 = vmatpush.msrb.mxu1 %v5488_v3  ;;  %10124 = vst [vmem:[#allocation35_spill] sm:$0xff] %v7258_v39  ;;  %v2404_v3 = vrot.slane %v6934_v0, 1 }
 0x2dc   : > { %2332 = vmatpush.msra.mxu3 %v6770_v9  ;;  %2863 = vmatpush.msra.mxu0 %v6871_v48  ;;  %v7267_v9 = vld [vmem:[%s9902_s4 + $0xd8] sm:$0xff] }
 0x2dd   : > { %v1706_v61 = vpop.f32.mrf.mxu1  ;;  %2188 = vmatpush.msrb.mxu2 %v7267_v9 }
 0x2de   : > { %v7249_v50 = vadd.f32 %v1706_v61, %v1581_v7  ;;  %2333 = vmatpush.msra.mxu3 %v6776_v53  ;;  %2864 = vmatpush.msra.mxu0 %v6882_v40  ;;  %v7272_v53 = vld [vmem:[%s9902_s4 + $0xd0] sm:$0xff]  ;;  %v7279_v55 = vpop.f32.mrf.mxu3  ;;  %v7284_v61 = vld [vmem:[%s9902_s4 + $0xc8] sm:$0xff] }
 0x2df   : > { %2189 = vmatpush.msrb.mxu2 %v7272_v53  ;;  %10125 = vst [vmem:[#allocation36_spill] sm:$0xff] %v7279_v55  ;;  %v7301_v55 = vsel %vm1892_vm5, %v2402_v62, %v2404_v3  ;;  %v7318_v62 = vadd.f32 %v6975_v29, %v6877_v59 }
 0x2e0   : > { %5526 = vmatmul.msk.f32.gmra.mxu2 %vm1772_vm4, %v7249_v50  ;;  %5535 = vmatmul.msk.f32.gmra.mxu3 %vm1772_vm4, %v7160_v19  ;;  %v7289_v19 = vpop.f32.mrf.mxu2 }
 0x2e1   : > { %5582 = vmatmul.msk.f32.gmra.mxu0 %vm1772_vm4, %v7249_v50  ;;  %5617 = vmatmul.msk.f32.gmra.mxu1 %vm1772_vm4, %v7258_v39  ;;  %10126 = vst [vmem:[#allocation37_spill] sm:$0xff] %v7289_v19  ;;  %v2408_v59 = vrot.slane %v7318_v62, 1 }
 0x2e2   : > { %2334 = vmatpush.msra.mxu3 %v6787_v1  ;;  %2865 = vmatpush.msra.mxu0 %v6893_v27  ;;  %v1587_v1 = vpop.f32.mrf.mxu0 }
 0x2e3   : > { %2190 = vmatpush.msrb.mxu2 %v7284_v61 }
 0x2e5   : > { %v1709_v7 = vpop.f32.mrf.mxu1  ;;  %2191 = vmatpush.msrb.mxu2 %v7294_v31 }
 0x2e6   : > { %v7286_v39 = vadd.f32 %v1709_v7, %v1584_v17  ;;  %v2406_v17 = vrot.slane %v6954_v5, 1 }
 0x2e7   : > { %2286 = vmatpush.msra.mxu2 %v7118_v45 }
 0x2e8   : > { %5527 = vmatmul.msk.f32.gmra.mxu2 %vm1772_vm4, %v7286_v39  ;;  %5536 = vmatmul.msk.f32.gmra.mxu3 %vm1772_vm4, %v7171_v11  ;;  %v7313_v11 = vpop.f32.mrf.mxu3  ;;  %v7325_v45 = vsel %vm1892_vm5, %v2404_v3, %v2406_v17  ;;  %v1671_v3 = vadd.f32 %v7001_v23, %v6902_v49 }
 0x2e9   : > { %5583 = vmatmul.msk.f32.gmra.mxu0 %vm1772_vm4, %v7286_v39  ;;  %5618 = vmatmul.msk.f32.gmra.mxu1 %vm1772_vm4, %v7301_v55  ;;  %10127 = vst [vmem:[#allocation38_spill] sm:$0xff] %v7325_v45 }
 0x2ea   : > { %2287 = vmatpush.msra.mxu2 %v7125_v13  ;;  %v7327_v13 = vpop.f32.mrf.mxu2 }
 0x2ec   : > { %2288 = vmatpush.msra.mxu2 %v7133_v30  ;;  %v7344_v30 = vsel %vm1892_vm5, %v2406_v17, %v2408_v59 }
 0x2ed   : > { %v1712_v7 = vpop.f32.mrf.mxu1 }
 0x2ee   : > { %v7311_v19 = vadd.f32 %v1712_v7, %v1587_v1  ;;  %v1590_v1 = vpop.f32.mrf.mxu0  ;;  %2289 = vmatpush.msra.mxu2 %v7141_v33 }
 0x2f0   : > { %5528 = vmatmul.msk.f32.gmra.mxu2 %vm1772_vm4, %v7311_v19  ;;  %5537 = vmatmul.msk.f32.gmra.mxu3 %vm1772_vm4, %v7183_v10 }
 0x2f1   : > { %5584 = vmatmul.msk.f32.gmra.mxu0 %vm1772_vm4, %v7311_v19  ;;  %5619 = vmatmul.msk.f32.gmra.mxu1 %vm1772_vm4, %v7325_v45 }
 0x2f2   : > { %v7353_v49 = vpop.f32.mrf.mxu2 }
 0x2f5   : > { %v1715_v29 = vpop.f32.mrf.mxu1 }
 0x2f6   : > { %v7335_v7 = vadd.f32 %v1715_v29, %v1590_v1  ;;  %v7350_v1 = vpop.f32.mrf.mxu3  ;;  %v1593_v23 = vpop.f32.mrf.mxu0  ;;  %v2725_v29 = vrot.slane %v1671_v3, 1 }
 0x2f8   : > { %5529 = vmatmul.msk.f32.gmra.mxu2 %vm1772_vm4, %v7335_v7  ;;  %5545 = vmatmul.msk.f32.vlgmr.msrb.gmra.mxu3 %vm1772_vm4, %v6843_v42  ;;  %v7364_v17 = vsel %vm1892_vm5, %v2408_v59, %v2725_v29 }
 0x2f9   : > { %5585 = vmatmul.msk.f32.gmra.mxu0 %vm1772_vm4, %v7335_v7  ;;  %5620 = vmatmul.msk.f32.gmra.mxu1 %vm1772_vm4, %v7344_v30  ;;  %10128 = vst [vmem:[#allocation39_spill] sm:$0xff] %v7364_v17 }
 0x2fa   : > { %2436 = vmatpush.msrb.mxu3 %v6865_v58  ;;  %v7373_v3 = vpop.f32.mrf.mxu2 }
 0x2fc   : > { %2437 = vmatpush.msrb.mxu3 %v6871_v48 }
 0x2fd   : > { %v1718_v33 = vpop.f32.mrf.mxu1 }
 0x2fe   : > { %v7356_v45 = vadd.f32 %v1718_v33, %v1593_v23  ;;  %2438 = vmatpush.msrb.mxu3 %v6882_v40  ;;  %v7371_v33 = vpop.f32.mrf.mxu3 }
 0x300   : > { %5530 = vmatmul.msk.f32.gmra.mxu2 %vm1772_vm4, %v7356_v45  ;;  %5546 = vmatmul.msk.f32.gmra.mxu3 %vm1772_vm4, %v6854_v18 }
 0x301   : > { %5586 = vmatmul.msk.f32.gmra.mxu0 %vm1772_vm4, %v7356_v45  ;;  %5621 = vmatmul.msk.f32.gmra.mxu1 %vm1772_vm4, %v7364_v17 }
 0x302   : > { %2439 = vmatpush.msrb.mxu3 %v6893_v27  ;;  %v7393_v23 = vpop.f32.mrf.mxu2 }
 0x308   : > { %5538 = vmatmul.msk.f32.vlgmr.msrb.gmra.mxu2 %vm1772_vm4, %v6720_v47  ;;  %5547 = vmatmul.msk.f32.gmra.mxu3 %vm1772_vm4, %v6884_v41 }
 0x309   : > { %5608 = vmatmul.msk.f32.vlgmr.msrb.gmra.mxu0 %vm1772_vm4, %v7007_v36  ;;  %5643 = vmatmul.msk.f32.vlgmr.msra.gmra.mxu1 %vm1772_vm4, %v6720_v47 }
 0x30a   : > { %2369 = vmatpush.msrb.mxu2 %v6657_v34  ;;  %3044 = vmatpush.msrb.mxu0 %v7267_v9 }
 0x30b   : > { %v7385_v59 = vpop.f32.mrf.mxu3  ;;  %3262 = vmatpush.msra.mxu1 %v6865_v58  ;;  %v7413_v58 = vpop.f32.mrf.mxu2 }
 0x30c   : > { %2370 = vmatpush.msrb.mxu2 %v6663_v35  ;;  %3045 = vmatpush.msrb.mxu0 %v7272_v53 }
 0x30d   : > { %3263 = vmatpush.msra.mxu1 %v6871_v48 }
 0x30e   : > { %2371 = vmatpush.msrb.mxu2 %v6669_v24  ;;  %3046 = vmatpush.msrb.mxu0 %v7284_v61 }
 0x30f   : > { %3264 = vmatpush.msra.mxu1 %v6882_v40 }
 0x310   : > { %5539 = vmatmul.msk.f32.gmra.mxu2 %vm1772_vm4, %v6731_v37  ;;  %5548 = vmatmul.msk.f32.gmra.mxu3 %vm1772_vm4, %v6904_v38 }
 0x311   : > { %5609 = vmatmul.msk.f32.gmra.mxu0 %vm1772_vm4, %v7022_v8  ;;  %5644 = vmatmul.msk.f32.gmra.mxu1 %vm1772_vm4, %v6731_v37 }
 0x312   : > { %2372 = vmatpush.msrb.mxu2 %v6678_v12  ;;  %3047 = vmatpush.msrb.mxu0 %v7294_v31 }
 0x313   : > { %v7406_v47 = vpop.f32.mrf.mxu3  ;;  %3265 = vmatpush.msra.mxu1 %v6893_v27  ;;  %v7429_v48 = vpop.f32.mrf.mxu2 }
 0x314   : > { %v7433_v27 = vpop.f32.mrf.mxu1 }
 0x318   : > { %5540 = vmatmul.msk.f32.gmra.mxu2 %vm1772_vm4, %v6742_v26  ;;  %5549 = vmatmul.msk.f32.gmra.mxu3 %vm1772_vm4, %v6934_v0 }
 0x319   : > { %5610 = vmatmul.msk.f32.gmra.mxu0 %vm1772_vm4, %v7036_v20  ;;  %5645 = vmatmul.msk.f32.gmra.mxu1 %vm1772_vm4, %v6742_v26 }
 0x31b   : > { %v7419_v37 = vpop.f32.mrf.mxu3 }
 0x31c   : > { %v7447_v29 = vpop.f32.mrf.mxu1 }
 0x31d   : > { %10129 = vst [vmem:[#allocation40_spill] sm:$0xff] %v7447_v29 }
 0x320   : > { %5541 = vmatmul.msk.f32.gmra.mxu2 %vm1772_vm4, %v6753_v52  ;;  %5550 = vmatmul.msk.f32.gmra.mxu3 %vm1772_vm4, %v6954_v5 }
 0x321   : > { %5611 = vmatmul.msk.f32.gmra.mxu0 %vm1772_vm4, %v7053_v2  ;;  %5646 = vmatmul.msk.f32.gmra.mxu1 %vm1772_vm4, %v6753_v52  ;;  %v7445_v52 = vpop.f32.mrf.mxu2 }
 0x323   : > { %v7431_v40 = vpop.f32.mrf.mxu3 }
 0x324   : > { %v7464_v17 = vpop.f32.mrf.mxu1 }
 0x325   : > { %10130 = vst [vmem:[#allocation41_spill] sm:$0xff] %v7464_v17 }
 0x328   : > { %5542 = vmatmul.msk.f32.gmra.mxu2 %vm1772_vm4, %v6782_v51  ;;  %5551 = vmatmul.msk.f32.gmra.mxu3 %vm1772_vm4, %v7318_v62 }
 0x329   : > { %5612 = vmatmul.msk.f32.gmra.mxu0 %vm1772_vm4, %v7092_v43  ;;  %5647 = vmatmul.msk.f32.gmra.mxu1 %vm1772_vm4, %v6782_v51  ;;  %v7462_v29 = vpop.f32.mrf.mxu2 }
 0x32b   : > { %v7443_v26 = vpop.f32.mrf.mxu3 }
 0x32c   : > { %v7487_v17 = vpop.f32.mrf.mxu1 }
 0x32d   : > { %10131 = vst [vmem:[#allocation42_spill] sm:$0xff] %v7487_v17 }
 0x330   : > { %5543 = vmatmul.msk.f32.gmra.mxu2 %vm1772_vm4, %v6799_v21  ;;  %5559 = vmatmul.msk.f32.vlgmr.msra.gmra.mxu3 %vm1772_vm4, %v6988_v63 }
 0x331   : > { %5613 = vmatmul.msk.f32.gmra.mxu0 %vm1772_vm4, %v7110_v54  ;;  %5648 = vmatmul.msk.f32.gmra.mxu1 %vm1772_vm4, %v6799_v21  ;;  %v7481_v63 = vpop.f32.mrf.mxu2 }
 0x332   : > { %2646 = vmatpush.msra.mxu3 %v7267_v9 }
 0x333   : > { %v7458_v51 = vpop.f32.mrf.mxu3 }
 0x334   : > { %2647 = vmatpush.msra.mxu3 %v7272_v53 }
 0x336   : > { %2648 = vmatpush.msra.mxu3 %v7284_v61 }
 0x338   : > { %5544 = vmatmul.msk.f32.gmra.mxu2 %vm1772_vm4, %v6814_v4  ;;  %5560 = vmatmul.msk.f32.gmra.mxu3 %vm1772_vm4, %v7007_v36 }
 0x339   : > { %5614 = vmatmul.msk.f32.gmra.mxu0 %vm1772_vm4, %v6827_v28  ;;  %5649 = vmatmul.msk.f32.gmra.mxu1 %vm1772_vm4, %v6814_v4 }
 0x33a   : > { %2649 = vmatpush.msra.mxu3 %v7294_v31 }
 0x33b   : > { %v7475_v21 = vpop.f32.mrf.mxu3 }
 0x340   : > { %5552 = vmatmul.msk.f32.vlgmr.msra.gmra.mxu2 %vm1772_vm4, %v7007_v36  ;;  %5561 = vmatmul.msk.f32.gmra.mxu3 %vm1772_vm4, %v7022_v8 }
 0x341   : > { %5636 = vmatmul.msk.f32.vlgmr.msra.gmra.mxu0 %vm1772_vm4, %v7046_v32  ;;  %5671 = vmatmul.msk.f32.vlgmr.msrb.gmra.mxu1 %vm1772_vm4, %v7224_v22 }
 0x342   : > { %2601 = vmatpush.msra.mxu2 %v7058_v16  ;;  %3224 = vmatpush.msra.mxu0 %v6657_v34  ;;  %v7508_v34 = vpop.f32.mrf.mxu2 }
 0x343   : > { %v2146_v4 = vpop.f32.mrf.mxu3  ;;  %3442 = vmatpush.msrb.mxu1 %v7267_v9  ;;  %v1871_v9 = vadd.f32 %v7185_v46, %v7191_v25  ;;  %v10134_v46 = vld [vmem:[#allocation32_spill] sm:$0xff] }
 0x344   : > { %2602 = vmatpush.msra.mxu2 %v7063_v15  ;;  %3225 = vmatpush.msra.mxu0 %v6663_v35  ;;  %v1874_v25 = vadd.f32 %v10134_v46, %v7218_v14 }
 0x345   : > { %3443 = vmatpush.msrb.mxu1 %v7272_v53  ;;  %v1960_v53 = vadd.f32 %v7393_v23, %v1871_v9 }
 0x346   : > { %2603 = vmatpush.msra.mxu2 %v7074_v44  ;;  %3226 = vmatpush.msra.mxu0 %v6669_v24  ;;  %v7511_v24 = vpop.f32.mrf.mxu1 }
 0x347   : > { %3444 = vmatpush.msrb.mxu1 %v7284_v61  ;;  %10132 = vst [vmem:[#allocation43_spill] sm:$0xff] %v7511_v24  ;;  %v10133_v61 = vld [vmem:[#allocation8_spill] sm:$0xff]  ;;  %v1961_v24 = vadd.f32 %v7413_v58, %v1874_v25  ;;  %v10136_v58 = vld [vmem:[#allocation34_spill] sm:$0xff] }
 0x348   : > { %5553 = vmatmul.msk.f32.gmra.mxu2 %vm1772_vm4, %v7022_v8  ;;  %5562 = vmatmul.msk.f32.gmra.mxu3 %vm1772_vm4, %v7036_v20 }
 0x349   : > { %5637 = vmatmul.msk.f32.gmra.mxu0 %vm1772_vm4, %v7080_v6  ;;  %5672 = vmatmul.msk.f32.gmra.mxu1 %vm1772_vm4, %v7249_v50  ;;  %v2027_v14 = vadd.f32 %v7406_v47, %v1961_v24  ;;  %v10138_v47 = vld [vmem:[#allocation25_spill] sm:$0xff] }
 0x34a   : > { %2604 = vmatpush.msra.mxu2 %v7085_v57  ;;  %3227 = vmatpush.msra.mxu0 %v6678_v12  ;;  %v2026_v12 = vadd.f32 %v7385_v59, %v1960_v53 }
 0x34b   : > { %v2149_v35 = vpop.f32.mrf.mxu3  ;;  %3445 = vmatpush.msrb.mxu1 %v7294_v31 }
 0x34e   : > { %v7527_v23 = vpop.f32.mrf.mxu1 }
 0x34f   : > { %10135 = vst [vmem:[#allocation32_spill] sm:$0xff] %v7527_v23 }
 0x350   : > { %5554 = vmatmul.msk.f32.gmra.mxu2 %vm1772_vm4, %v7036_v20  ;;  %5563 = vmatmul.msk.f32.gmra.mxu3 %vm1772_vm4, %v7053_v2 }
 0x351   : > { %5638 = vmatmul.msk.f32.gmra.mxu0 %vm1772_vm4, %v10133_v61  ;;  %5673 = vmatmul.msk.f32.gmra.mxu1 %vm1772_vm4, %v7286_v39 }
 0x353   : > { %v2071_v31 = vpop.f32.mrf.mxu2  ;;  %v2152_v6 = vpop.f32.mrf.mxu3 }
 0x354   : > { %v2092_v32 = vadd.f32 %v2071_v31, %v2026_v12  ;;  %v1877_v12 = vadd.f32 %v10136_v58, %v7245_v56  ;;  %v10141_v58 = vld [vmem:[#allocation37_spill] sm:$0xff] }
 0x356   : > { %v7529_v9 = vadd.f32 %v2146_v4, %v2092_v32  ;;  %v1596_v32 = vpop.f32.mrf.mxu0  ;;  %v1962_v46 = vadd.f32 %v7429_v48, %v1877_v12  ;;  %v7546_v25 = vpop.f32.mrf.mxu1  ;;  %v10142_v12 = vld [vmem:[#allocation36_spill] sm:$0xff] }
 0x357   : > { %10137 = vst [vmem:[#allocation34_spill] sm:$0xff] %v7546_v25  ;;  %v10143_v25 = vrot.slane %v6843_v42, 1 }
 0x358   : > { %5555 = vmatmul.msk.f32.gmra.mxu2 %vm1772_vm4, %v7053_v2  ;;  %5564 = vmatmul.msk.f32.gmra.mxu3 %vm1772_vm4, %v7092_v43  ;;  %v2028_v56 = vadd.f32 %v7419_v37, %v1962_v46  ;;  %v10144_v37 = vld [vmem:[#allocation27_spill] sm:$0xff] }
 0x359   : > { %5639 = vmatmul.msk.f32.gmra.mxu0 %vm1772_vm4, %v7144_v60  ;;  %5674 = vmatmul.msk.f32.gmra.mxu1 %vm1772_vm4, %v7311_v19  ;;  %v1880_v60 = vadd.f32 %v10142_v12, %v10141_v58  ;;  %v10147_v12 = vld [vmem:[#allocation31_spill] sm:$0xff] }
 0x35b   : > { %v2074_v59 = vpop.f32.mrf.mxu2  ;;  %v2155_v53 = vpop.f32.mrf.mxu3  ;;  %v1963_v23 = vadd.f32 %v7445_v52, %v1880_v60 }
 0x35c   : > { %v2093_v4 = vadd.f32 %v2074_v59, %v2027_v14  ;;  %v10140_v59 = vld [vmem:[#allocation18_spill] sm:$0xff] }
 0x35e   : > { %v7543_v31 = vadd.f32 %v2149_v35, %v2093_v4  ;;  %v7557_v14 = vpop.f32.mrf.mxu0  ;;  %v2395_v4 = vrot.slane %v10140_v59, 1  ;;  %v7576_v46 = vpop.f32.mrf.mxu1 }
 0x35f   : > { %10139 = vst [vmem:[#allocation44_spill] sm:$0xff] %v7557_v14  ;;  %v2565_v14 = vrot.slane %v7286_v39, 1 }
 0x360   : > { %5556 = vmatmul.msk.f32.gmra.mxu2 %vm1772_vm4, %v7092_v43  ;;  %5565 = vmatmul.msk.f32.gmra.mxu3 %vm1772_vm4, %v7110_v54  ;;  %10145 = vst [vmem:[#allocation18_spill] sm:$0xff] %v7576_v46 }
 0x361   : > { %5640 = vmatmul.msk.f32.gmra.mxu0 %vm1772_vm4, %v10138_v47  ;;  %5675 = vmatmul.msk.f32.gmra.mxu1 %vm1772_vm4, %v7335_v7  ;;  %v2397_v47 = vsel %vm1892_vm5, %v2395_v4, %v10143_v25  ;;  %v6042_v25 = vld [vmem:[%s9902_s4 + $0x18] sm:$0xff]  ;;  %v7594_v4 = vadd.f32 %v7433_v27, %v1596_v32 }
 0x363   : > { %v2077_v35 = vpop.f32.mrf.mxu2  ;;  %v2158_v24 = vpop.f32.mrf.mxu3  ;;  %10146 = vst [vmem:[#allocation37_spill] sm:$0xff] %v7594_v4 }
 0x364   : > { %v2094_v48 = vadd.f32 %v2077_v35, %v2028_v56  ;;  %v1883_v35 = vadd.f32 %v7313_v11, %v7327_v13  ;;  %v6045_v11 = vld [vmem:[%s9902_s4] sm:$0xff] }
 0x366   : > { %v7562_v61 = vadd.f32 %v2152_v6, %v2094_v48  ;;  %v2029_v6 = vadd.f32 %v7431_v40, %v1963_v23  ;;  %v7586_v48 = vpop.f32.mrf.mxu0  ;;  %v6044_v23 = vld [vmem:[%s9902_s4 + $0x8] sm:$0xff]  ;;  %v1964_v58 = vadd.f32 %v7462_v29, %v1883_v35 }
 0x368   : > { %5557 = vmatmul.msk.f32.gmra.mxu2 %vm1772_vm4, %v7110_v54  ;;  %5573 = vmatmul.msk.f32.vlgmr.msrb.gmra.mxu3 %vm1772_vm4, %v2397_v47  ;;  %v6043_v47 = vld [vmem:[%s9902_s4 + $0x10] sm:$0xff]  ;;  %v2030_v13 = vadd.f32 %v7443_v26, %v1964_v58 }
 0x369   : > { %5641 = vmatmul.msk.f32.gmra.mxu0 %vm1772_vm4, %v10144_v37  ;;  %5676 = vmatmul.msk.f32.gmra.mxu1 %vm1772_vm4, %v7356_v45 }
 0x36a   : > { %2824 = vmatpush.msrb.mxu3 %v6042_v25  ;;  %v1886_v25 = vadd.f32 %v7350_v1, %v7353_v49  ;;  %v7635_v49 = vld [vmem:[%s9902_s4 + $0x38] sm:$0xff] }
 0x36b   : > { %v2080_v60 = vpop.f32.mrf.mxu2  ;;  %v2161_v52 = vpop.f32.mrf.mxu3 }
 0x36c   : > { %v2095_v56 = vadd.f32 %v2080_v60, %v2029_v6  ;;  %2825 = vmatpush.msrb.mxu3 %v6043_v47  ;;  %v2561_v6 = vrot.slane %v7224_v22, 1  ;;  %v10149_v60 = vld [vmem:[#allocation30_spill] sm:$0xff]  ;;  %v1965_v26 = vadd.f32 %v7481_v63, %v1886_v25 }
 0x36e   : > { %v7588_v40 = vadd.f32 %v2155_v53, %v2095_v56  ;;  %2826 = vmatpush.msrb.mxu3 %v6044_v23  ;;  %v7609_v53 = vpop.f32.mrf.mxu1  ;;  %v2560_v56 = vrot.slane %v10149_v60, 1  ;;  %v7618_v35 = vpop.f32.mrf.mxu0  ;;  %v10151_v23 = vld [vmem:[#allocation33_spill] sm:$0xff]  ;;  %v2031_v1 = vadd.f32 %v7458_v51, %v1965_v26  ;;  %v1889_v51 = vadd.f32 %v7371_v33, %v7373_v3  ;;  %v10156_v3 = vld [vmem:[#allocation6_spill] sm:$0xff] }
 0x36f   : > { %10148 = vst [vmem:[#allocation36_spill] sm:$0xff] %v7609_v53  ;;  %v2567_v53 = vrot.slane %v7311_v19, 1 }
 0x370   : > { %5558 = vmatmul.msk.f32.gmra.mxu2 %vm1772_vm4, %v6827_v28  ;;  %5574 = vmatmul.msk.f32.gmra.mxu3 %vm1772_vm4, %v10147_v12  ;;  %10150 = vst [vmem:[#allocation31_spill] sm:$0xff] %v7618_v35  ;;  %v7625_v58 = vsel %vm1892_vm5, %v2560_v56, %v2561_v6  ;;  %v7656_v56 = vld [vmem:[%s9902_s4 + $0x28] sm:$0xff]  ;;  %v1966_v26 = vadd.f32 %v7508_v34, %v1889_v51  ;;  %v7678_v34 = vld [vmem:[%s9902_s4 + $0x20] sm:$0xff]  ;;  %v10170_v35 = vld [vmem:[#allocation24_spill] sm:$0xff] }
 0x371   : > { %5642 = vmatmul.msk.f32.gmra.mxu0 %vm1772_vm4, %v7183_v10  ;;  %5677 = vmatmul.msk.f32.gmra.mxu1 %vm1772_vm4, %v7594_v4  ;;  %v10164_v28 = vld [vmem:[#allocation2_spill] sm:$0xff] }
 0x372   : > { %2827 = vmatpush.msrb.mxu3 %v6045_v11  ;;  %v2563_v11 = vrot.slane %v7249_v50, 1 }
 0x373   : > { %v2083_v27 = vpop.f32.mrf.mxu2  ;;  %v2164_v29 = vpop.f32.mrf.mxu3 }
 0x374   : > { %v2096_v32 = vadd.f32 %v2083_v27, %v2030_v13  ;;  %v10152_v13 = vld [vmem:[#allocation7_spill] sm:$0xff]  ;;  %v7643_v27 = vld [vmem:[%s9902_s4 + $0x30] sm:$0xff]  ;;  %v7666_v33 = vsel %vm1892_vm5, %v2561_v6, %v2563_v11 }
 0x375   : > { %10155 = vst [vmem:[#allocation33_spill] sm:$0xff] %v7666_v33 }
 0x376   : > { %v7615_v47 = vadd.f32 %v2158_v24, %v2096_v32  ;;  %v7649_v32 = vpop.f32.mrf.mxu1 }
 0x377   : > { %10153 = vst [vmem:[#allocation30_spill] sm:$0xff] %v7649_v32 }
 0x378   : > { %5566 = vmatmul.msk.f32.vlgmr.msrb.gmra.mxu2 %vm1772_vm4, %v10140_v59  ;;  %5575 = vmatmul.msk.f32.gmra.mxu3 %vm1772_vm4, %v10151_v23 }
 0x379   : > { %5664 = vmatmul.msk.f32.vlgmr.msrb.gmra.mxu0 %vm1772_vm4, %v10152_v13  ;;  %5699 = vmatmul.msk.f32.vlgmr.msra.gmra.mxu1 %vm1772_vm4, %v7625_v58 }
 0x37a   : > { %2786 = vmatpush.msrb.mxu2 %v7635_v49  ;;  %3397 = vmatpush.msrb.mxu0 %v7058_v16 }
 0x37b   : > { %v2086_v63 = vpop.f32.mrf.mxu2  ;;  %v2241_v24 = vpop.f32.mrf.mxu3 }
 0x37c   : > { %v2097_v59 = vadd.f32 %v2086_v63, %v2031_v1  ;;  %2787 = vmatpush.msrb.mxu2 %v7643_v27  ;;  %3398 = vmatpush.msrb.mxu0 %v7063_v15  ;;  %v10154_v1 = vld [vmem:[#allocation35_spill] sm:$0xff]  ;;  %v7673_v63 = vpop.f32.mrf.mxu0 }
 0x37d   : > { %10157 = vst [vmem:[#allocation7_spill] sm:$0xff] %v7673_v63 }
 0x37e   : > { %v7651_v25 = vadd.f32 %v2161_v52, %v2097_v59  ;;  %2788 = vmatpush.msrb.mxu2 %v7656_v56  ;;  %3399 = vmatpush.msrb.mxu0 %v7074_v44  ;;  %v2032_v52 = vadd.f32 %v7475_v21, %v1966_v26  ;;  %v7685_v37 = vpop.f32.mrf.mxu1  ;;  %v7692_v21 = vsel %vm1892_vm5, %v2563_v11, %v2565_v14  ;;  %v10160_v26 = vld [vmem:[#allocation12_spill] sm:$0xff]  ;;  %v10162_v11 = vld [vmem:[#allocation38_spill] sm:$0xff] }
 0x37f   : > { %10158 = vst [vmem:[#allocation35_spill] sm:$0xff] %v7685_v37  ;;  %v7709_v37 = vsel %vm1892_vm5, %v2565_v14, %v2567_v53 }
 0x380   : > { %5567 = vmatmul.msk.f32.gmra.mxu2 %vm1772_vm4, %v6843_v42  ;;  %5576 = vmatmul.msk.f32.gmra.mxu3 %vm1772_vm4, %v10154_v1  ;;  %10159 = vst [vmem:[#allocation6_spill] sm:$0xff] %v7692_v21 }
 0x381   : > { %5665 = vmatmul.msk.f32.gmra.mxu0 %vm1772_vm4, %v10156_v3  ;;  %5700 = vmatmul.msk.f32.gmra.mxu1 %vm1772_vm4, %v7666_v33  ;;  %10163 = vst [vmem:[#allocation38_spill] sm:$0xff] %v7709_v37 }
 0x382   : > { %2789 = vmatpush.msrb.mxu2 %v7678_v34  ;;  %3400 = vmatpush.msrb.mxu0 %v7085_v57 }
 0x383   : > { %v2089_v6 = vpop.f32.mrf.mxu2  ;;  %v2244_v59 = vpop.f32.mrf.mxu3 }
 0x384   : > { %v2098_v51 = vadd.f32 %v2089_v6, %v2032_v52  ;;  %v7698_v6 = vpop.f32.mrf.mxu0 }
 0x385   : > { %10161 = vst [vmem:[#allocation12_spill] sm:$0xff] %v7698_v6  ;;  %v2569_v6 = vrot.slane %v7335_v7, 1 }
 0x386   : > { %v7683_v10 = vadd.f32 %v2164_v29, %v2098_v51 }
 0x387   : > { %v7728_v14 = vsel %vm1892_vm5, %v2567_v53, %v2569_v6 }
 0x388   : > { %5568 = vmatmul.msk.f32.gmra.mxu2 %vm1772_vm4, %v6854_v18  ;;  %5577 = vmatmul.msk.f32.gmra.mxu3 %vm1772_vm4, %v7301_v55  ;;  %10167 = vst [vmem:[#allocation46_spill] sm:$0xff] %v7728_v14 }
 0x389   : > { %5666 = vmatmul.msk.f32.gmra.mxu0 %vm1772_vm4, %v10160_v26  ;;  %5701 = vmatmul.msk.f32.gmra.mxu1 %vm1772_vm4, %v7692_v21 }
 0x38b   : > { %v2193_v52 = vpop.f32.mrf.mxu2  ;;  %v2247_v29 = vpop.f32.mrf.mxu3 }
 0x38c   : > { %v2214_v51 = vadd.f32 %v2193_v52, %v7529_v9  ;;  %v7715_v9 = vpop.f32.mrf.mxu1  ;;  %v7719_v63 = vpop.f32.mrf.mxu0 }
 0x38d   : > { %10165 = vst [vmem:[#allocation2_spill] sm:$0xff] %v7715_v9  ;;  %v10168_v9 = vld [vmem:[#allocation20_spill] sm:$0xff] }
 0x38e   : > { %v7702_v46 = vadd.f32 %v2241_v24, %v2214_v51  ;;  %10166 = vst [vmem:[#allocation45_spill] sm:$0xff] %v7719_v63 }
 0x390   : > { %5569 = vmatmul.msk.f32.gmra.mxu2 %vm1772_vm4, %v6884_v41  ;;  %5578 = vmatmul.msk.f32.gmra.mxu3 %vm1772_vm4, %v10162_v11 }
 0x391   : > { %5667 = vmatmul.msk.f32.gmra.mxu0 %vm1772_vm4, %v10164_v28  ;;  %5702 = vmatmul.msk.f32.gmra.mxu1 %vm1772_vm4, %v7709_v37 }
 0x393   : > { %v2196_v52 = vpop.f32.mrf.mxu2  ;;  %v2250_v24 = vpop.f32.mrf.mxu3 }
 0x394   : > { %v2215_v51 = vadd.f32 %v2196_v52, %v7543_v31  ;;  %v7734_v63 = vpop.f32.mrf.mxu1  ;;  %v7740_v54 = vpop.f32.mrf.mxu0 }
 0x395   : > { %10169 = vst [vmem:[#allocation20_spill] sm:$0xff] %v7740_v54 }
 0x396   : > { %v7721_v17 = vadd.f32 %v2244_v59, %v2215_v51  ;;  %v2571_v51 = vrot.slane %v7356_v45, 1 }
 0x398   : > { %5570 = vmatmul.msk.f32.gmra.mxu2 %vm1772_vm4, %v6904_v38  ;;  %5579 = vmatmul.msk.f32.gmra.mxu3 %vm1772_vm4, %v7344_v30  ;;  %v7747_v53 = vsel %vm1892_vm5, %v2569_v6, %v2571_v51 }
 0x399   : > { %5668 = vmatmul.msk.f32.gmra.mxu0 %vm1772_vm4, %v10168_v9  ;;  %5703 = vmatmul.msk.f32.gmra.mxu1 %vm1772_vm4, %v7728_v14 }
 0x39b   : > { %v2199_v31 = vpop.f32.mrf.mxu2  ;;  %v2253_v52 = vpop.f32.mrf.mxu3 }
 0x39c   : > { %v2216_v59 = vadd.f32 %v2199_v31, %v7562_v61  ;;  %v9970_v31 = vrot.slane %v7594_v4, 1  ;;  %v7757_v54 = vpop.f32.mrf.mxu1 }
 0x39d   : > { %10171 = vst [vmem:[#allocation24_spill] sm:$0xff] %v7757_v54 }
 0x39e   : > { %v7738_v32 = vadd.f32 %v2247_v29, %v2216_v59 }
 0x3a0   : > { %5571 = vmatmul.msk.f32.gmra.mxu2 %vm1772_vm4, %v6934_v0  ;;  %5601 = vmatmul.msk.f32.vlgmr.msra.gmra.mxu3 %vm1772_vm4, %v6843_v42 }
 0x3a1   : > { %5669 = vmatmul.msk.f32.gmra.mxu0 %vm1772_vm4, %v10170_v35  ;;  %5704 = vmatmul.msk.f32.gmra.mxu1 %vm1772_vm4, %v7747_v53 }
 0x3a2   : > { %2997 = vmatpush.msra.mxu3 %v7058_v16  ;;  %v7769_v16 = vsel %vm1892_vm5, %v2571_v51, %v9970_v31  ;;  %v10176_v31 = vld [vmem:[#allocation10_spill] sm:$0xff] }
 0x3a3   : > { %v2202_v61 = vpop.f32.mrf.mxu2  ;;  %v2256_v29 = vpop.f32.mrf.mxu3  ;;  %10172 = vst [vmem:[#allocation47_spill] sm:$0xff] %v7769_v16 }
 0x3a4   : > { %v2217_v59 = vadd.f32 %v2202_v61, %v7588_v40  ;;  %2998 = vmatpush.msra.mxu3 %v7063_v15  ;;  %v10173_v40 = vld [vmem:[#allocation26_spill] sm:$0xff]  ;;  %v7775_v15 = vpop.f32.mrf.mxu0  ;;  %v7781_v54 = vpop.f32.mrf.mxu1 }
 0x3a6   : > { %v7759_v6 = vadd.f32 %v2250_v24, %v2217_v59  ;;  %2999 = vmatpush.msra.mxu3 %v7074_v44 }
 0x3a8   : > { %5572 = vmatmul.msk.f32.gmra.mxu2 %vm1772_vm4, %v6954_v5  ;;  %5602 = vmatmul.msk.f32.gmra.mxu3 %vm1772_vm4, %v6854_v18 }
 0x3a9   : > { %5670 = vmatmul.msk.f32.gmra.mxu0 %vm1772_vm4, %v10173_v40  ;;  %5705 = vmatmul.msk.f32.gmra.mxu1 %vm1772_vm4, %v7769_v16 }
 0x3aa   : > { %3000 = vmatpush.msra.mxu3 %v7085_v57  ;;  %v10174_v57 = vld [vmem:[#allocation17_spill] sm:$0xff] }
 0x3ab   : > { %v2205_v44 = vpop.f32.mrf.mxu2  ;;  %v2259_v24 = vpop.f32.mrf.mxu3 }
 0x3ac   : > { %v2218_v61 = vadd.f32 %v2205_v44, %v7615_v47 }
 0x3ae   : > { %v7779_v59 = vadd.f32 %v2253_v52, %v2218_v61  ;;  %v7794_v52 = vpop.f32.mrf.mxu0  ;;  %v10175_v61 = vld [vmem:[#allocation11_spill] sm:$0xff] }
 0x3b0   : > { %5594 = vmatmul.msk.f32.vlgmr.msra.gmra.mxu2 %vm1772_vm4, %v7625_v58  ;;  %5603 = vmatmul.msk.f32.gmra.mxu3 %vm1772_vm4, %v6884_v41 }
 0x3b1   : > { %5692 = vmatmul.msk.f32.vlgmr.msra.gmra.mxu0 %vm1772_vm4, %v10149_v60  ;;  %5727 = vmatmul.msk.f32.vlgmr.msrb.gmra.mxu1 %vm1772_vm4, %v7224_v22 }
 0x3b2   : > { %2952 = vmatpush.msra.mxu2 %v10174_v57  ;;  %v7809_v57 = vpop.f32.mrf.mxu1 }
 0x3b3   : > { %v2208_v51 = vpop.f32.mrf.mxu2  ;;  %v7792_v47 = vpop.f32.mrf.mxu3  ;;  %10177 = vst [vmem:[#allocation17_spill] sm:$0xff] %v7809_v57 }
 0x3b4   : > { %v2219_v44 = vadd.f32 %v2208_v51, %v7651_v25  ;;  %2953 = vmatpush.msra.mxu2 %v10175_v61  ;;  %v10178_v25 = vld [vmem:[#allocation16_spill] sm:$0xff] }
 0x3b6   : > { %v7798_v58 = vadd.f32 %v2256_v29, %v2219_v44  ;;  %2954 = vmatpush.msra.mxu2 %v10176_v31  ;;  %v7815_v44 = vpop.f32.mrf.mxu0 }
 0x3b8   : > { %5595 = vmatmul.msk.f32.gmra.mxu2 %vm1772_vm4, %v7666_v33  ;;  %5604 = vmatmul.msk.f32.gmra.mxu3 %vm1772_vm4, %v6904_v38 }
 0x3b9   : > { %5693 = vmatmul.msk.f32.gmra.mxu0 %vm1772_vm4, %v7224_v22  ;;  %5728 = vmatmul.msk.f32.gmra.mxu1 %vm1772_vm4, %v7249_v50 }
 0x3ba   : > { %2955 = vmatpush.msra.mxu2 %v10178_v25 }
 0x3bb   : > { %v2211_v29 = vpop.f32.mrf.mxu2  ;;  %v7812_v51 = vpop.f32.mrf.mxu3 }
 0x3bc   : > { %v2220_v31 = vadd.f32 %v2211_v29, %v7683_v10  ;;  %v7829_v10 = vpop.f32.mrf.mxu1 }
 0x3bd   : > { %10179 = vst [vmem:[#allocation11_spill] sm:$0xff] %v7829_v10 }
 0x3be   : > { %v7817_v61 = vadd.f32 %v2259_v24, %v2220_v31  ;;  %v7834_v29 = vpop.f32.mrf.mxu0 }
 0x3c0   : > { %5596 = vmatmul.msk.f32.gmra.mxu2 %vm1772_vm4, %v7692_v21  ;;  %5605 = vmatmul.msk.f32.gmra.mxu3 %vm1772_vm4, %v6934_v0 }
 0x3c1   : > { %5694 = vmatmul.msk.f32.gmra.mxu0 %vm1772_vm4, %v7249_v50  ;;  %5729 = vmatmul.msk.f32.gmra.mxu1 %vm1772_vm4, %v7286_v39 }
 0x3c3   : > { %v2291_v25 = vpop.f32.mrf.mxu2  ;;  %v7827_v33 = vpop.f32.mrf.mxu3 }
 0x3c4   : > { %v7832_v24 = vadd.f32 %v2291_v25, %v7702_v46  ;;  %v7849_v25 = vpop.f32.mrf.mxu1 }
 0x3c5   : > { %10180 = vst [vmem:[#allocation10_spill] sm:$0xff] %v7849_v25 }
 0x3c8   : > { %5597 = vmatmul.msk.f32.gmra.mxu2 %vm1772_vm4, %v7709_v37  ;;  %5606 = vmatmul.msk.f32.gmra.mxu3 %vm1772_vm4, %v6954_v5  ;;  %v7859_v37 = vpop.f32.mrf.mxu0 }
 0x3c9   : > { %5695 = vmatmul.msk.f32.gmra.mxu0 %vm1772_vm4, %v7286_v39  ;;  %5730 = vmatmul.msk.f32.gmra.mxu1 %vm1772_vm4, %v7311_v19 }
 0x3cb   : > { %v2294_v31 = vpop.f32.mrf.mxu2  ;;  %v7844_v21 = vpop.f32.mrf.mxu3 }
 0x3cc   : > { %v7847_v46 = vadd.f32 %v2294_v31, %v7721_v17  ;;  %v7866_v31 = vpop.f32.mrf.mxu1 }
 0x3d0   : > { %5598 = vmatmul.msk.f32.gmra.mxu2 %vm1772_vm4, %v7728_v14  ;;  %5607 = vmatmul.msk.f32.gmra.mxu3 %vm1772_vm4, %v7318_v62  ;;  %v10182_v14 = vld [vmem:[#allocation15_spill] sm:$0xff] }
 0x3d1   : > { %5696 = vmatmul.msk.f32.gmra.mxu0 %vm1772_vm4, %v7311_v19  ;;  %5731 = vmatmul.msk.f32.gmra.mxu1 %vm1772_vm4, %v7335_v7 }
 0x3d3   : > { %v2297_v10 = vpop.f32.mrf.mxu2  ;;  %v7861_v40 = vpop.f32.mrf.mxu3 }
 0x3d4   : > { %v7864_v17 = vadd.f32 %v2297_v10, %v7738_v32  ;;  %v7879_v32 = vpop.f32.mrf.mxu0 }
 0x3d6   : > { %10181 = vst [vmem:[#allocation16_spill] sm:$0xff] %v7864_v17 }
 0x3d8   : > { %5599 = vmatmul.msk.f32.gmra.mxu2 %vm1772_vm4, %v7747_v53  ;;  %5629 = vmatmul.msk.f32.vlgmr.msrb.gmra.mxu3 %vm1772_vm4, %v10182_v14 }
 0x3d9   : > { %5697 = vmatmul.msk.f32.gmra.mxu0 %vm1772_vm4, %v7335_v7  ;;  %5732 = vmatmul.msk.f32.gmra.mxu1 %vm1772_vm4, %v7356_v45 }
 0x3da   : > { %3186 = vmatpush.msrb.mxu3 %v7635_v49  ;;  %v7893_v49 = vpop.f32.mrf.mxu1 }
 0x3db   : > { %v2300_v25 = vpop.f32.mrf.mxu2  ;;  %v7877_v57 = vpop.f32.mrf.mxu3 }
 0x3dc   : > { %v7882_v10 = vadd.f32 %v2300_v25, %v7759_v6  ;;  %3187 = vmatpush.msrb.mxu3 %v7643_v27  ;;  %v7902_v6 = vpop.f32.mrf.mxu0 }
 0x3de   : > { %10183 = vst [vmem:[#allocation15_spill] sm:$0xff] %v7882_v10  ;;  %3188 = vmatpush.msrb.mxu3 %v7656_v56 }
 0x3e0   : > { %5600 = vmatmul.msk.f32.gmra.mxu2 %vm1772_vm4, %v7769_v16  ;;  %5630 = vmatmul.msk.f32.gmra.mxu3 %vm1772_vm4, %v10152_v13  ;;  %v10185_v13 = vld [vmem:[#allocation4_spill] sm:$0xff]  ;;  %v10189_v16 = vld [vmem:[#allocation21_spill] sm:$0xff] }
 0x3e1   : > { %5698 = vmatmul.msk.f32.gmra.mxu0 %vm1772_vm4, %v7356_v45  ;;  %3189 = vmatpush.msrb.mxu3 %v7678_v34 }
 0x3e2   : > { %5733 = vmatmul.msk.f32.gmra.mxu1 %vm1772_vm4, %v7594_v4  ;;  %v10186_v4 = vld [vmem:[#allocation5_spill] sm:$0xff] }
 0x3e3   : > { %v2303_v14 = vpop.f32.mrf.mxu2  ;;  %v7897_v27 = vpop.f32.mrf.mxu3 }
 0x3e4   : > { %v7900_v56 = vadd.f32 %v2303_v14, %v7779_v59  ;;  %v10188_v14 = vld [vmem:[#allocation19_spill] sm:$0xff] }
 0x3e6   : > { %10184 = vst [vmem:[#allocation48_spill] sm:$0xff] %v7900_v56 }
 0x3e8   : > { %5622 = vmatmul.msk.f32.vlgmr.msrb.gmra.mxu2 %vm1772_vm4, %v10149_v60  ;;  %5631 = vmatmul.msk.f32.gmra.mxu3 %vm1772_vm4, %v10156_v3  ;;  %v7917_v60 = vpop.f32.mrf.mxu0 }
 0x3e9   : > { %5720 = vmatmul.msk.f32.vlgmr.msrb.gmra.mxu0 %vm1772_vm4, %v10147_v12  ;;  %3141 = vmatpush.msrb.mxu2 %v10185_v13 }
 0x3eb   : > { %v2306_v34 = vpop.f32.mrf.mxu2  ;;  %v2441_v25 = vpop.f32.mrf.mxu3  ;;  %3142 = vmatpush.msrb.mxu2 %v10186_v4 }
 0x3ec   : > { %v7913_v59 = vadd.f32 %v2306_v34, %v7798_v58 }
 0x3ed   : > { %3143 = vmatpush.msrb.mxu2 %v10188_v14 }
 0x3ee   : > { %10187 = vst [vmem:[#allocation4_spill] sm:$0xff] %v7913_v59 }
 0x3ef   : > { %3144 = vmatpush.msrb.mxu2 %v10189_v16 }
 0x3f0   : > { %5623 = vmatmul.msk.f32.gmra.mxu2 %vm1772_vm4, %v7224_v22  ;;  %5632 = vmatmul.msk.f32.gmra.mxu3 %vm1772_vm4, %v10160_v26  ;;  %v7934_v22 = vpop.f32.mrf.mxu0 }
 0x3f1   : > { %5721 = vmatmul.msk.f32.gmra.mxu0 %vm1772_vm4, %v10151_v23 }
 0x3f3   : > { %v2309_v12 = vpop.f32.mrf.mxu2  ;;  %v2444_v4 = vpop.f32.mrf.mxu3 }
 0x3f4   : > { %v7926_v3 = vadd.f32 %v2309_v12, %v7817_v61 }
 0x3f6   : > { %10190 = vst [vmem:[#allocation5_spill] sm:$0xff] %v7926_v3 }
 0x3f8   : > { %5624 = vmatmul.msk.f32.gmra.mxu2 %vm1772_vm4, %v7249_v50  ;;  %5633 = vmatmul.msk.f32.gmra.mxu3 %vm1772_vm4, %v10164_v28  ;;  %v7944_v61 = vpop.f32.mrf.mxu0 }
 0x3f9   : > { %5722 = vmatmul.msk.f32.gmra.mxu0 %vm1772_vm4, %v10154_v1 }
 0x3fb   : > { %v2374_v26 = vpop.f32.mrf.mxu2  ;;  %v2447_v16 = vpop.f32.mrf.mxu3 }
 0x3fc   : > { %v2375_v23 = vadd.f32 %v2374_v26, %v7792_v47 }
 0x3fe   : > { %v2462_v58 = vadd.f32 %v2441_v25, %v2375_v23  ;;  %v6053_v25 = vld [vmem:[%s9902_s4 + $0x80] sm:$0xff] }
 0x400   : > { %5625 = vmatmul.msk.f32.gmra.mxu2 %vm1772_vm4, %v7286_v39  ;;  %5634 = vmatmul.msk.f32.gmra.mxu3 %vm1772_vm4, %v10168_v9  ;;  %v7955_v34 = vpop.f32.mrf.mxu0 }
 0x401   : > { %5723 = vmatmul.msk.f32.gmra.mxu0 %vm1772_vm4, %v7301_v55 }
 0x403   : > { %v2377_v28 = vpop.f32.mrf.mxu2  ;;  %v2450_v50 = vpop.f32.mrf.mxu3 }
 0x404   : > { %v2378_v1 = vadd.f32 %v2377_v28, %v7812_v51  ;;  %v6052_v51 = vld [vmem:[%s9902_s4 + $0x88] sm:$0xff] }
 0x406   : > { %v2463_v13 = vadd.f32 %v2444_v4, %v2378_v1  ;;  %v6056_v1 = vld [vmem:[%s9902_s4 + $0x68] sm:$0xff] }
 0x408   : > { %5626 = vmatmul.msk.f32.gmra.mxu2 %vm1772_vm4, %v7311_v19  ;;  %5635 = vmatmul.msk.f32.gmra.mxu3 %vm1772_vm4, %v10170_v35  ;;  %v6050_v19 = vld [vmem:[%s9902_s4 + $0x98] sm:$0xff]  ;;  %v7980_v14 = vpop.f32.mrf.mxu0 }
 0x409   : > { %5724 = vmatmul.msk.f32.gmra.mxu0 %vm1772_vm4, %v10162_v11  ;;  %v6051_v11 = vld [vmem:[%s9902_s4 + $0x90] sm:$0xff] }
 0x40b   : > { %v2380_v39 = vpop.f32.mrf.mxu2  ;;  %v2453_v9 = vpop.f32.mrf.mxu3 }
 0x40c   : > { %v2381_v55 = vadd.f32 %v2380_v39, %v7827_v33 }
 0x40e   : > { %v7953_v47 = vadd.f32 %v2447_v16, %v2381_v55 }
 0x410   : > { %5627 = vmatmul.msk.f32.gmra.mxu2 %vm1772_vm4, %v7335_v7  ;;  %5657 = vmatmul.msk.f32.vlgmr.msra.gmra.mxu3 %vm1772_vm4, %v7007_v36 }
 0x411   : > { %5725 = vmatmul.msk.f32.gmra.mxu0 %vm1772_vm4, %v7344_v30  ;;  %3352 = vmatpush.msra.mxu3 %v6050_v19 }
 0x413   : > { %v2383_v35 = vpop.f32.mrf.mxu2  ;;  %v2456_v33 = vpop.f32.mrf.mxu3  ;;  %3353 = vmatpush.msra.mxu3 %v6051_v11  ;;  %v10192_v11 = vld [vmem:[#allocation41_spill] sm:$0xff] }
 0x414   : > { %v2384_v7 = vadd.f32 %v2383_v35, %v7844_v21  ;;  %v10191_v21 = vld [vmem:[#allocation39_spill] sm:$0xff] }
 0x415   : > { %3354 = vmatpush.msra.mxu3 %v6052_v51 }
 0x416   : > { %v2465_v30 = vadd.f32 %v2450_v50, %v2384_v7  ;;  %v6055_v50 = vld [vmem:[%s9902_s4 + $0x70] sm:$0xff] }
 0x417   : > { %3355 = vmatpush.msra.mxu3 %v6053_v25 }
 0x418   : > { %5628 = vmatmul.msk.f32.gmra.mxu2 %vm1772_vm4, %v7356_v45  ;;  %5658 = vmatmul.msk.f32.gmra.mxu3 %vm1772_vm4, %v7022_v8  ;;  %v6054_v45 = vld [vmem:[%s9902_s4 + $0x78] sm:$0xff] }
 0x419   : > { %5726 = vmatmul.msk.f32.gmra.mxu0 %vm1772_vm4, %v10191_v21 }
 0x41b   : > { %v2386_v12 = vpop.f32.mrf.mxu2  ;;  %v2459_v4 = vpop.f32.mrf.mxu3 }
 0x41c   : > { %v2387_v26 = vadd.f32 %v2386_v12, %v7861_v40 }
 0x41e   : > { %v7985_v16 = vadd.f32 %v2453_v9, %v2387_v26  ;;  %v6057_v9 = vld [vmem:[%s9902_s4 + $0x60] sm:$0xff]  ;;  %v10193_v26 = vld [vmem:[#allocation31_spill] sm:$0xff] }
 0x420   : > { %5650 = vmatmul.msk.f32.vlgmr.msra.gmra.mxu2 %vm1772_vm4, %v6843_v42  ;;  %5659 = vmatmul.msk.f32.gmra.mxu3 %vm1772_vm4, %v7036_v20 }
 0x421   : > { %3307 = vmatpush.msra.mxu2 %v6054_v45  ;;  %v2508_v45 = vadd.f32 %v10193_v26, %v2463_v13 }
 0x423   : > { %v2389_v23 = vpop.f32.mrf.mxu2  ;;  %v2651_v28 = vpop.f32.mrf.mxu3  ;;  %3308 = vmatpush.msra.mxu2 %v6055_v50 }
 0x424   : > { %v2390_v40 = vadd.f32 %v2389_v23, %v7877_v57  ;;  %v10196_v23 = vld [vmem:[#allocation42_spill] sm:$0xff] }
 0x425   : > { %3309 = vmatpush.msra.mxu2 %v6056_v1  ;;  %v2553_v50 = vadd.f32 %v10196_v23, %v2508_v45  ;;  %v10202_v23 = vld [vmem:[#allocation13_spill] sm:$0xff] }
 0x426   : > { %v8001_v39 = vadd.f32 %v2456_v33, %v2390_v40  ;;  %v2507_v33 = vadd.f32 %v7586_v48, %v2462_v58  ;;  %v10194_v48 = vld [vmem:[#allocation9_spill] sm:$0xff]  ;;  %v10195_v58 = vld [vmem:[#allocation30_spill] sm:$0xff] }
 0x427   : > { %3310 = vmatpush.msra.mxu2 %v6057_v9 }
 0x428   : > { %5651 = vmatmul.msk.f32.gmra.mxu2 %vm1772_vm4, %v6854_v18  ;;  %5660 = vmatmul.msk.f32.gmra.mxu3 %vm1772_vm4, %v7053_v2  ;;  %v2552_v7 = vadd.f32 %v10192_v11, %v2507_v33  ;;  %v10198_v33 = vld [vmem:[#allocation14_spill] sm:$0xff]  ;;  %v10199_v11 = vld [vmem:[#allocation35_spill] sm:$0xff] }
 0x42b   : > { %v2392_v55 = vpop.f32.mrf.mxu2  ;;  %v2654_v57 = vpop.f32.mrf.mxu3 }
 0x42c   : > { %v2393_v19 = vadd.f32 %v2392_v55, %v7897_v27 }
 0x42e   : > { %v8011_v35 = vadd.f32 %v2459_v4, %v2393_v19 }
 0x430   : > { %5652 = vmatmul.msk.f32.gmra.mxu2 %vm1772_vm4, %v6884_v41  ;;  %5661 = vmatmul.msk.f32.gmra.mxu3 %vm1772_vm4, %v7092_v43 }
 0x433   : > { %v2606_v51 = vpop.f32.mrf.mxu2  ;;  %v2657_v25 = vpop.f32.mrf.mxu3 }
 0x434   : > { %v2627_v21 = vadd.f32 %v2606_v51, %v2552_v7  ;;  %v10200_v51 = vld [vmem:[#allocation43_spill] sm:$0xff] }
 0x436   : > { %v2672_v12 = vadd.f32 %v2651_v28, %v2627_v21 }
 0x438   : > { %v2717_v27 = vadd.f32 %v7794_v52, %v2672_v12  ;;  %5653 = vmatmul.msk.f32.gmra.mxu2 %vm1772_vm4, %v6904_v38  ;;  %5662 = vmatmul.msk.f32.gmra.mxu3 %vm1772_vm4, %v10194_v48  ;;  %v10197_v52 = vld [vmem:[#allocation7_spill] sm:$0xff] }
 0x439   : > { %v2509_v55 = vadd.f32 %v10197_v52, %v7953_v47 }
 0x43a   : > { %v8026_v4 = vadd.f32 %v10195_v58, %v2717_v27  ;;  %v10201_v27 = vld [vmem:[#allocation12_spill] sm:$0xff] }
 0x43b   : > { %v2609_v40 = vpop.f32.mrf.mxu2  ;;  %v2660_v1 = vpop.f32.mrf.mxu3  ;;  %v2554_v21 = vadd.f32 %v10200_v51, %v2509_v55 }
 0x43c   : > { %v2628_v9 = vadd.f32 %v2609_v40, %v2553_v50  ;;  %v6058_v50 = vld [vmem:[%s9902_s4 + $0x118] sm:$0xff]  ;;  %v10203_v40 = vld [vmem:[#allocation2_spill] sm:$0xff] }
 0x43e   : > { %v2673_v13 = vadd.f32 %v2654_v57, %v2628_v9 }
 0x440   : > { %v2718_v19 = vadd.f32 %v7815_v44, %v2673_v13  ;;  %5654 = vmatmul.msk.f32.gmra.mxu2 %vm1772_vm4, %v6934_v0  ;;  %5663 = vmatmul.msk.f32.gmra.mxu3 %vm1772_vm4, %v10198_v33  ;;  %v2510_v44 = vadd.f32 %v10201_v27, %v2465_v30  ;;  %v10205_v13 = vld [vmem:[#allocation32_spill] sm:$0xff]  ;;  %v10207_v27 = vld [vmem:[#allocation3_spill] sm:$0xff] }
 0x442   : > { %v8039_v7 = vadd.f32 %v10199_v11, %v2718_v19  ;;  %v6060_v11 = vld [vmem:[%s9902_s4 + $0x108] sm:$0xff] }
 0x443   : > { %v2612_v12 = vpop.f32.mrf.mxu2  ;;  %v2663_v26 = vpop.f32.mrf.mxu3 }
 0x444   : > { %v2629_v45 = vadd.f32 %v2612_v12, %v2554_v21  ;;  %v10206_v21 = vld [vmem:[#allocation45_spill] sm:$0xff] }
 0x445   : > { %v2511_v12 = vadd.f32 %v10206_v21, %v7985_v16 }
 0x446   : > { %v2674_v47 = vadd.f32 %v2657_v25, %v2629_v45  ;;  %v2555_v25 = vadd.f32 %v10205_v13, %v2510_v44  ;;  %v6061_v45 = vld [vmem:[%s9902_s4 + $0x100] sm:$0xff] }
 0x448   : > { %v2719_v58 = vadd.f32 %v7834_v29, %v2674_v47  ;;  %5655 = vmatmul.msk.f32.gmra.mxu2 %vm1772_vm4, %v6954_v5  ;;  %5685 = vmatmul.msk.f32.vlgmr.msrb.gmra.mxu3 %vm1772_vm4, %v10202_v23  ;;  %v6059_v29 = vld [vmem:[%s9902_s4 + $0x110] sm:$0xff] }
 0x449   : > { %3537 = vmatpush.msrb.mxu3 %v6058_v50 }
 0x44a   : > { %v8054_v9 = vadd.f32 %v10203_v40, %v2719_v58  ;;  %v10252_v40 = vld [vmem:[#allocation37_spill] sm:$0xff] }
 0x44b   : > { %v2615_v52 = vpop.f32.mrf.mxu2  ;;  %v2666_v30 = vpop.f32.mrf.mxu3  ;;  %3538 = vmatpush.msrb.mxu3 %v6059_v29  ;;  %v10211_v29 = vld [vmem:[#allocation8_spill] sm:$0xff]  ;;  %v10253_v19 = vrot.slane %v10252_v40, 1 }
 0x44c   : > { %10204 = vst [vmem:[#allocation19_spill] sm:$0xff] %v8054_v9  ;;  %v2630_v55 = vadd.f32 %v2615_v52, %v2555_v25 }
 0x44d   : > { %3539 = vmatpush.msrb.mxu3 %v6060_v11 }
 0x44e   : > { %v2675_v51 = vadd.f32 %v2660_v1, %v2630_v55  ;;  %v10209_v1 = vld [vmem:[#allocation34_spill] sm:$0xff]  ;;  %v10212_v55 = vld [vmem:[#allocation24_spill] sm:$0xff] }
 0x44f   : > { %3540 = vmatpush.msrb.mxu3 %v6061_v45  ;;  %v2556_v58 = vadd.f32 %v10209_v1, %v2511_v12 }
 0x450   : > { %v2720_v47 = vadd.f32 %v7859_v37, %v2675_v51  ;;  %5656 = vmatmul.msk.f32.gmra.mxu2 %vm1772_vm4, %v7318_v62  ;;  %5686 = vmatmul.msk.f32.gmra.mxu3 %vm1772_vm4, %v10207_v27  ;;  %v10210_v37 = vld [vmem:[#allocation20_spill] sm:$0xff] }
 0x451   : > { %v2512_v25 = vadd.f32 %v10210_v37, %v8001_v39 }
 0x452   : > { %v8076_v44 = vadd.f32 %v7734_v63, %v2720_v47  ;;  %v6062_v63 = vld [vmem:[%s9902_s4 + $0xf8] sm:$0xff]  ;;  %v6064_v47 = vld [vmem:[%s9902_s4 + $0xe8] sm:$0xff] }
 0x453   : > { %v2618_v23 = vpop.f32.mrf.mxu2  ;;  %v2669_v16 = vpop.f32.mrf.mxu3 }
 0x454   : > { %10208 = vst [vmem:[#allocation21_spill] sm:$0xff] %v8076_v44  ;;  %v2631_v50 = vadd.f32 %v2618_v23, %v2556_v58  ;;  %v2513_v58 = vadd.f32 %v7775_v15, %v8011_v35  ;;  %v6065_v23 = vld [vmem:[%s9902_s4 + $0xe0] sm:$0xff] }
 0x456   : > { %v2676_v13 = vadd.f32 %v2663_v26, %v2631_v50  ;;  %v10214_v26 = vld [vmem:[#allocation18_spill] sm:$0xff] }
 0x457   : > { %v2557_v51 = vadd.f32 %v10214_v26, %v2512_v25  ;;  %v10218_v26 = vld [vmem:[#allocation25_spill] sm:$0xff] }
 0x458   : > { %v2721_v52 = vadd.f32 %v7879_v32, %v2676_v13  ;;  %5678 = vmatmul.msk.f32.vlgmr.msrb.gmra.mxu2 %vm1772_vm4, %v10207_v27  ;;  %5687 = vmatmul.msk.f32.gmra.mxu3 %vm1772_vm4, %v10211_v29  ;;  %v6063_v32 = vld [vmem:[%s9902_s4 + $0xf0] sm:$0xff]  ;;  %v10215_v13 = vld [vmem:[#allocation22_spill] sm:$0xff] }
 0x459   : > { %3487 = vmatpush.msrb.mxu2 %v6062_v63 }
 0x45a   : > { %v8092_v11 = vadd.f32 %v10212_v55, %v2721_v52 }
 0x45b   : > { %v2621_v21 = vpop.f32.mrf.mxu2  ;;  %v2829_v39 = vpop.f32.mrf.mxu3  ;;  %3488 = vmatpush.msrb.mxu2 %v6063_v32 }
 0x45c   : > { %10213 = vst [vmem:[#allocation39_spill] sm:$0xff] %v8092_v11  ;;  %v2632_v12 = vadd.f32 %v2621_v21, %v2557_v51  ;;  %v10219_v51 = vld [vmem:[#allocation17_spill] sm:$0xff] }
 0x45d   : > { %3489 = vmatpush.msrb.mxu2 %v6064_v47 }
 0x45e   : > { %v2677_v1 = vadd.f32 %v2666_v30, %v2632_v12  ;;  %v10217_v30 = vld [vmem:[#allocation36_spill] sm:$0xff] }
 0x45f   : > { %3490 = vmatpush.msrb.mxu2 %v6065_v23  ;;  %v2558_v25 = vadd.f32 %v10217_v30, %v2513_v58  ;;  %v10222_v23 = vld [vmem:[#allocation29_spill] sm:$0xff] }
 0x460   : > { %v2722_v50 = vadd.f32 %v7902_v6, %v2677_v1  ;;  %5679 = vmatmul.msk.f32.gmra.mxu2 %vm1772_vm4, %v10211_v29  ;;  %5688 = vmatmul.msk.f32.gmra.mxu3 %vm1772_vm4, %v10215_v13 }
 0x462   : > { %v8114_v37 = vadd.f32 %v7781_v54, %v2722_v50 }
 0x463   : > { %v2624_v52 = vpop.f32.mrf.mxu2  ;;  %v2832_v15 = vpop.f32.mrf.mxu3 }
 0x464   : > { %10216 = vst [vmem:[#allocation41_spill] sm:$0xff] %v8114_v37  ;;  %v2633_v35 = vadd.f32 %v2624_v52, %v2558_v25  ;;  %v10223_v25 = vld [vmem:[#allocation23_spill] sm:$0xff]  ;;  %v10224_v52 = vld [vmem:[#allocation28_spill] sm:$0xff] }
 0x466   : > { %v2678_v55 = vadd.f32 %v2669_v16, %v2633_v35  ;;  %v10221_v16 = vld [vmem:[#allocation27_spill] sm:$0xff]  ;;  %v1698_v35 = vadd.f32 %v10224_v52, %v10223_v25 }
 0x468   : > { %v2723_v6 = vadd.f32 %v7917_v60, %v2678_v55  ;;  %5680 = vmatmul.msk.f32.gmra.mxu2 %vm1772_vm4, %v10215_v13  ;;  %5689 = vmatmul.msk.f32.gmra.mxu3 %vm1772_vm4, %v10218_v26  ;;  %v3125_v55 = vrot.slane %v1698_v35, 1 }
 0x46a   : > { %v8125_v54 = vadd.f32 %v10219_v51, %v2723_v6 }
 0x46b   : > { %v2791_v21 = vpop.f32.mrf.mxu2  ;;  %v2835_v32 = vpop.f32.mrf.mxu3 }
 0x46c   : > { %10220 = vst [vmem:[#allocation31_spill] sm:$0xff] %v8125_v54  ;;  %v2830_v12 = vadd.f32 %v2829_v39, %v2791_v21  ;;  %v10225_v21 = vld [vmem:[#allocation26_spill] sm:$0xff] }
 0x470   : > { %5681 = vmatmul.msk.f32.gmra.mxu2 %vm1772_vm4, %v10218_v26  ;;  %5690 = vmatmul.msk.f32.gmra.mxu3 %vm1772_vm4, %v10221_v16 }
 0x473   : > { %v2794_v60 = vpop.f32.mrf.mxu2  ;;  %v2838_v1 = vpop.f32.mrf.mxu3 }
 0x474   : > { %v2833_v58 = vadd.f32 %v2832_v15, %v2794_v60  ;;  %v10226_v60 = vrot.slane %v10225_v21, 1 }
 0x476   : > { %v8146_v47 = vsel %vm1892_vm5, %v10226_v60, %v3125_v55 }
 0x478   : > { %5682 = vmatmul.msk.f32.gmra.mxu2 %vm1772_vm4, %v10221_v16  ;;  %5691 = vmatmul.msk.f32.gmra.mxu3 %vm1772_vm4, %v10222_v23 }
 0x47b   : > { %v2797_v50 = vpop.f32.mrf.mxu2  ;;  %v2841_v39 = vpop.f32.mrf.mxu3 }
 0x47c   : > { %v2836_v30 = vadd.f32 %v2835_v32, %v2797_v50 }
 0x480   : > { %5683 = vmatmul.msk.f32.gmra.mxu2 %vm1772_vm4, %v10222_v23  ;;  %5713 = vmatmul.msk.f32.vlgmr.msra.gmra.mxu3 %vm1772_vm4, %v7007_v36  ;;  %v8154_v36 = vpop.f32.mrf.mxu0 }
 0x483   : > { %v2800_v15 = vpop.f32.mrf.mxu2  ;;  %v2844_v6 = vpop.f32.mrf.mxu3 }
 0x484   : > { %v2839_v51 = vadd.f32 %v2838_v1, %v2800_v15  ;;  %v8160_v1 = vpop.f32.mrf.mxu1 }
 0x488   : > { %5684 = vmatmul.msk.f32.gmra.mxu2 %vm1772_vm4, %v8146_v47  ;;  %5714 = vmatmul.msk.f32.gmra.mxu3 %vm1772_vm4, %v7022_v8  ;;  %v8164_v15 = vpop.f32.mrf.mxu0 }
 0x489   : > { %10228 = vst [vmem:[#allocation30_spill] sm:$0xff] %v8164_v15 }
 0x48b   : > { %v2803_v32 = vpop.f32.mrf.mxu2  ;;  %v2847_v50 = vpop.f32.mrf.mxu3 }
 0x48c   : > { %v8152_v25 = vadd.f32 %v2841_v39, %v2803_v32 }
 0x490   : > { %5706 = vmatmul.msk.f32.vlgmr.msra.gmra.mxu2 %vm1772_vm4, %v6843_v42  ;;  %5715 = vmatmul.msk.f32.gmra.mxu3 %vm1772_vm4, %v7036_v20  ;;  %v8170_v42 = vpop.f32.mrf.mxu1  ;;  %v2888_v20 = vadd.f32 %v7934_v22, %v2830_v12 }
 0x491   : > { %10229 = vst [vmem:[#allocation42_spill] sm:$0xff] %v8170_v42 }
 0x493   : > { %v2806_v52 = vpop.f32.mrf.mxu2  ;;  %v3002_v35 = vpop.f32.mrf.mxu3 }
 0x494   : > { %v8162_v55 = vadd.f32 %v2844_v6, %v2806_v52  ;;  %v8179_v6 = vpop.f32.mrf.mxu0 }
 0x495   : > { %10231 = vst [vmem:[#allocation14_spill] sm:$0xff] %v8179_v6 }
 0x496   : > { %10227 = vst [vmem:[#allocation9_spill] sm:$0xff] %v8162_v55 }
 0x498   : > { %5707 = vmatmul.msk.f32.gmra.mxu2 %vm1772_vm4, %v6854_v18  ;;  %5716 = vmatmul.msk.f32.gmra.mxu3 %vm1772_vm4, %v7053_v2  ;;  %v10232_v18 = vld [vmem:[#allocation11_spill] sm:$0xff]  ;;  %v8182_v63 = vpop.f32.mrf.mxu1 }
 0x499   : > { %v2933_v60 = vadd.f32 %v10232_v18, %v2888_v20  ;;  %10233 = vst [vmem:[#allocation35_spill] sm:$0xff] %v8182_v63 }
 0x49b   : > { %v2809_v8 = vpop.f32.mrf.mxu2  ;;  %v3005_v39 = vpop.f32.mrf.mxu3 }
 0x49c   : > { %v8172_v21 = vadd.f32 %v2847_v50, %v2809_v8  ;;  %v2889_v50 = vadd.f32 %v7944_v61, %v2833_v58  ;;  %v8192_v20 = vpop.f32.mrf.mxu0 }
 0x49e   : > { %10230 = vst [vmem:[#allocation7_spill] sm:$0xff] %v8172_v21 }
 0x4a0   : > { %5708 = vmatmul.msk.f32.gmra.mxu2 %vm1772_vm4, %v6884_v41  ;;  %5717 = vmatmul.msk.f32.gmra.mxu3 %vm1772_vm4, %v7092_v43  ;;  %v10234_v41 = vld [vmem:[#allocation10_spill] sm:$0xff]  ;;  %v8197_v61 = vpop.f32.mrf.mxu1 }
 0x4a1   : > { %v2934_v43 = vadd.f32 %v10234_v41, %v2889_v50 }
 0x4a3   : > { %v2957_v32 = vpop.f32.mrf.mxu2  ;;  %v3008_v2 = vpop.f32.mrf.mxu3 }
 0x4a4   : > { %v2978_v52 = vadd.f32 %v2957_v32, %v2933_v60  ;;  %v2890_v60 = vadd.f32 %v7955_v34, %v2836_v30  ;;  %v2891_v34 = vadd.f32 %v7980_v14, %v2839_v51  ;;  %v10238_v14 = vld [vmem:[#allocation6_spill] sm:$0xff] }
 0x4a6   : > { %v8185_v8 = vadd.f32 %v3002_v35, %v2978_v52  ;;  %v8206_v52 = vpop.f32.mrf.mxu0 }
 0x4a8   : > { %5709 = vmatmul.msk.f32.gmra.mxu2 %vm1772_vm4, %v6904_v38  ;;  %5718 = vmatmul.msk.f32.gmra.mxu3 %vm1772_vm4, %v10194_v48  ;;  %v2935_v38 = vadd.f32 %v7866_v31, %v2890_v60  ;;  %v2936_v31 = vadd.f32 %v7893_v49, %v2891_v34  ;;  %v10240_v49 = vld [vmem:[#allocation38_spill] sm:$0xff] }
 0x4ab   : > { %v2960_v22 = vpop.f32.mrf.mxu2  ;;  %v3011_v12 = vpop.f32.mrf.mxu3 }
 0x4ac   : > { %v2979_v18 = vadd.f32 %v2960_v22, %v2934_v43 }
 0x4ae   : > { %v8195_v32 = vadd.f32 %v3005_v39, %v2979_v18  ;;  %v10236_v39 = vld [vmem:[#allocation33_spill] sm:$0xff]  ;;  %v8222_v22 = vpop.f32.mrf.mxu0 }
 0x4b0   : > { %5710 = vmatmul.msk.f32.gmra.mxu2 %vm1772_vm4, %v6934_v0  ;;  %5719 = vmatmul.msk.f32.gmra.mxu3 %vm1772_vm4, %v10198_v33  ;;  %v8215_v0 = vpop.f32.mrf.mxu1 }
 0x4b3   : > { %v2963_v48 = vpop.f32.mrf.mxu2  ;;  %v8204_v58 = vpop.f32.mrf.mxu3 }
 0x4b4   : > { %10235 = vst [vmem:[#allocation43_spill] sm:$0xff] %v8204_v58  ;;  %v2980_v35 = vadd.f32 %v2963_v48, %v2935_v38  ;;  %v10243_v38 = vld [vmem:[#allocation46_spill] sm:$0xff] }
 0x4b6   : > { %v8209_v30 = vadd.f32 %v3008_v2, %v2980_v35 }
 0x4b8   : > { %5711 = vmatmul.msk.f32.gmra.mxu2 %vm1772_vm4, %v6954_v5  ;;  %5741 = vmatmul.msk.f32.vlgmr.msrb.gmra.mxu3 %vm1772_vm4, %v10236_v39  ;;  %v8232_v2 = vpop.f32.mrf.mxu1 }
 0x4bb   : > { %v2966_v33 = vpop.f32.mrf.mxu2  ;;  %v8218_v50 = vpop.f32.mrf.mxu3 }
 0x4bc   : > { %10237 = vst [vmem:[#allocation12_spill] sm:$0xff] %v8218_v50  ;;  %v2981_v41 = vadd.f32 %v2966_v33, %v2936_v31  ;;  %v10248_v33 = vld [vmem:[#allocation44_spill] sm:$0xff] }
 0x4be   : > { %v8220_v43 = vadd.f32 %v3011_v12, %v2981_v41  ;;  %v8238_v12 = vpop.f32.mrf.mxu0  ;;  %v10249_v41 = vld [vmem:[#allocation40_spill] sm:$0xff] }
 0x4c0   : > { %5712 = vmatmul.msk.f32.gmra.mxu2 %vm1772_vm4, %v7318_v62  ;;  %5742 = vmatmul.msk.f32.gmra.mxu3 %vm1772_vm4, %v10238_v14  ;;  %v8242_v60 = vpop.f32.mrf.mxu1  ;;  %v1725_v14 = vadd.f32 %v10249_v41, %v10248_v33 }
 0x4c1   : > { %10242 = vst [vmem:[#allocation32_spill] sm:$0xff] %v8242_v60 }
 0x4c3   : > { %v8228_v5 = vpop.f32.mrf.mxu2  ;;  %v8230_v51 = vpop.f32.mrf.mxu3 }
 0x4c4   : > { %10239 = vst [vmem:[#allocation13_spill] sm:$0xff] %v8230_v51 }
 0x4c8   : > { %5734 = vmatmul.msk.f32.vlgmr.msrb.gmra.mxu2 %vm1772_vm4, %v10207_v27  ;;  %5743 = vmatmul.msk.f32.gmra.mxu3 %vm1772_vm4, %v10240_v49  ;;  %v8250_v27 = vpop.f32.mrf.mxu0  ;;  %v8252_v34 = vpop.f32.mrf.mxu1  ;;  %v10250_v49 = vld [vmem:[#allocation47_spill] sm:$0xff] }
 0x4c9   : > { %10245 = vst [vmem:[#allocation3_spill] sm:$0xff] %v8250_v27 }
 0x4ca   : > { %10246 = vst [vmem:[#allocation34_spill] sm:$0xff] %v8252_v34 }
 0x4cb   : > { %v8240_v18 = vpop.f32.mrf.mxu2  ;;  %v3191_v62 = vpop.f32.mrf.mxu3 }
 0x4cc   : > { %10241 = vst [vmem:[#allocation2_spill] sm:$0xff] %v8240_v18 }
 0x4d0   : > { %5735 = vmatmul.msk.f32.gmra.mxu2 %vm1772_vm4, %v10211_v29  ;;  %5744 = vmatmul.msk.f32.gmra.mxu3 %vm1772_vm4, %v10243_v38  ;;  %v8262_v29 = vpop.f32.mrf.mxu0  ;;  %v8270_v38 = vpop.f32.mrf.mxu1 }
 0x4d1   : > { %10247 = vst [vmem:[#allocation20_spill] sm:$0xff] %v8262_v29 }
 0x4d2   : > { %10251 = vst [vmem:[#allocation8_spill] sm:$0xff] %v8270_v38 }
 0x4d3   : > { %v8248_v48 = vpop.f32.mrf.mxu2  ;;  %v3194_v35 = vpop.f32.mrf.mxu3 }
 0x4d4   : > { %10244 = vst [vmem:[#allocation45_spill] sm:$0xff] %v8248_v48 }
 0x4d8   : > { %5736 = vmatmul.msk.f32.gmra.mxu2 %vm1772_vm4, %v10215_v13  ;;  %5745 = vmatmul.msk.f32.gmra.mxu3 %vm1772_vm4, %v7747_v53  ;;  %v3521_v13 = vrot.slane %v1725_v14, 1  ;;  %v8279_v28 = vpop.f32.mrf.mxu0  ;;  %v8288_v41 = vpop.f32.mrf.mxu1 }
 0x4d9   : > { %10254 = vst [vmem:[#allocation24_spill] sm:$0xff] %v8279_v28 }
 0x4da   : > { %v3522_v57 = vsel %vm1892_vm5, %v10253_v19, %v3521_v13  ;;  %10255 = vst [vmem:[#allocation18_spill] sm:$0xff] %v8288_v41 }
 0x4db   : > { %v8258_v39 = vpop.f32.mrf.mxu2  ;;  %v8260_v31 = vpop.f32.mrf.mxu3 }
 0x4e0   : > { %5737 = vmatmul.msk.f32.gmra.mxu2 %vm1772_vm4, %v10218_v26  ;;  %5746 = vmatmul.msk.f32.gmra.mxu3 %vm1772_vm4, %v10250_v49  ;;  %v3229_v14 = vpop.f32.mrf.mxu0  ;;  %v3267_v49 = vpop.f32.mrf.mxu1 }
 0x4e1   : > { %v3230_v27 = vadd.f32 %v3229_v14, %v3191_v62 }
 0x4e3   : > { %v8272_v45 = vpop.f32.mrf.mxu2  ;;  %v8274_v53 = vpop.f32.mrf.mxu3  ;;  %v3288_v42 = vadd.f32 %v3267_v49, %v3230_v27 }
 0x4e8   : > { %5738 = vmatmul.msk.f32.gmra.mxu2 %vm1772_vm4, %v10221_v16  ;;  %5747 = vmatmul.msk.f32.gmra.mxu3 %vm1772_vm4, %v3522_v57  ;;  %v3232_v13 = vpop.f32.mrf.mxu0  ;;  %v3270_v54 = vpop.f32.mrf.mxu1 }
 0x4e9   : > { %v3233_v9 = vadd.f32 %v3232_v13, %v3194_v35 }
 0x4eb   : > { %v8284_v26 = vpop.f32.mrf.mxu2  ;;  %v8286_v33 = vpop.f32.mrf.mxu3 }
 0x4f0   : > { %5739 = vmatmul.msk.f32.gmra.mxu2 %vm1772_vm4, %v10222_v23  ;;  %v3235_v37 = vpop.f32.mrf.mxu0  ;;  %v3273_v23 = vpop.f32.mrf.mxu1 }
 0x4f1   : > { %v3236_v62 = vadd.f32 %v3235_v37, %v8260_v31 }
 0x4f3   : > { %v8292_v40 = vpop.f32.mrf.mxu2  ;;  %v8294_v19 = vpop.f32.mrf.mxu3 }
 0x4f4   : > { %10256 = vst [vmem:[#allocation22_spill] sm:$0xff] %v8292_v40 }
 0x4f8   : > { %5740 = vmatmul.msk.f32.gmra.mxu2 %vm1772_vm4, %v8146_v47  ;;  %v3238_v38 = vpop.f32.mrf.mxu0  ;;  %v3276_v56 = vpop.f32.mrf.mxu1 }
 0x4fb   : > { %v8298_v16 = vpop.f32.mrf.mxu2  ;;  %v8300_v57 = vpop.f32.mrf.mxu3 }
 0x4fc   : > { %10257 = vst [vmem:[#allocation36_spill] sm:$0xff] %v8298_v16 }
 0x4fd   : > { %10258 = vst [vmem:[#allocation25_spill] sm:$0xff] %v8300_v57 }
 0x500   : > { %v3241_v29 = vpop.f32.mrf.mxu0  ;;  %v8306_v16 = vpop.f32.mrf.mxu1 }
 0x503   : > { %v8302_v3 = vpop.f32.mrf.mxu2  ;;  %v3357_v41 = vpop.f32.mrf.mxu3 }
 0x504   : > { %10259 = vst [vmem:[#allocation17_spill] sm:$0xff] %v8302_v3 }
 0x508   : > { %v8310_v50 = vpop.f32.mrf.mxu0  ;;  %v8312_v3 = vpop.f32.mrf.mxu1 }
 0x509   : > { %10262 = vst [vmem:[#allocation23_spill] sm:$0xff] %v8312_v3 }
 0x50b   : > { %v8304_v59 = vpop.f32.mrf.mxu2  ;;  %v3360_v28 = vpop.f32.mrf.mxu3 }
 0x50c   : > { %10260 = vst [vmem:[#allocation27_spill] sm:$0xff] %v8304_v59 }
 0x510   : > { %v8316_v59 = vpop.f32.mrf.mxu0  ;;  %v8318_v6 = vpop.f32.mrf.mxu1 }
 0x511   : > { %10264 = vst [vmem:[#allocation26_spill] sm:$0xff] %v8316_v59 }
 0x512   : > { %10265 = vst [vmem:[#allocation11_spill] sm:$0xff] %v8318_v6 }
 0x513   : > { %v3312_v51 = vpop.f32.mrf.mxu2  ;;  %v3363_v11 = vpop.f32.mrf.mxu3 }
 0x514   : > { %v3333_v58 = vadd.f32 %v3312_v51, %v3288_v42  ;;  %v3290_v51 = vadd.f32 %v3273_v23, %v3236_v62  ;;  %v10271_v62 = vld [vmem:[#allocation30_spill] sm:$0xff] }
 0x516   : > { %v3378_v3 = vadd.f32 %v3357_v41, %v3333_v58 }
 0x518   : > { %v3402_v18 = vpop.f32.mrf.mxu0  ;;  %v3447_v60 = vpop.f32.mrf.mxu1 }
 0x519   : > { %v3423_v55 = vadd.f32 %v3402_v18, %v3378_v3 }
 0x51b   : > { %v3315_v47 = vpop.f32.mrf.mxu2  ;;  %v3366_v48 = vpop.f32.mrf.mxu3 }
 0x520   : > { %v3450_v6 = vpop.f32.mrf.mxu1 }
 0x523   : > { %v3318_v63 = vpop.f32.mrf.mxu2  ;;  %v8308_v34 = vpop.f32.mrf.mxu3 }
 0x524   : > { %10261 = vst [vmem:[#allocation29_spill] sm:$0xff] %v8308_v34  ;;  %v3405_v34 = vpop.f32.mrf.mxu0 }
 0x52b   : > { %v3321_v44 = vpop.f32.mrf.mxu2  ;;  %v8314_v10 = vpop.f32.mrf.mxu3 }
 0x52c   : > { %10263 = vst [vmem:[#allocation28_spill] sm:$0xff] %v8314_v10  ;;  %v3289_v10 = vadd.f32 %v3270_v54, %v3233_v9  ;;  %v3408_v35 = vpop.f32.mrf.mxu0  ;;  %v3335_v9 = vadd.f32 %v3318_v63, %v3290_v51  ;;  %v3071_v54 = vadd.f32 %v8206_v52, %v8195_v32 }
 0x52e   : > { %v3334_v59 = vadd.f32 %v3315_v47, %v3289_v10 }
 0x530   : > { %v3379_v14 = vadd.f32 %v3360_v28, %v3334_v59  ;;  %v3453_v59 = vpop.f32.mrf.mxu1  ;;  %v3380_v28 = vadd.f32 %v3363_v11, %v3335_v9  ;;  %v3072_v11 = vadd.f32 %v8222_v22, %v8209_v30 }
 0x532   : > { %v3424_v3 = vadd.f32 %v3405_v34, %v3379_v14  ;;  %v3425_v31 = vadd.f32 %v3408_v35, %v3380_v28 }
 0x533   : > { %v3324_v21 = vpop.f32.mrf.mxu2  ;;  %v8320_v57 = vpop.f32.mrf.mxu3 }
 0x534   : > { %10266 = vst [vmem:[#allocation10_spill] sm:$0xff] %v8320_v57  ;;  %v3070_v57 = vadd.f32 %v8192_v20, %v8185_v8  ;;  %v3239_v8 = vadd.f32 %v3238_v38, %v8274_v53  ;;  %v10268_v20 = vmax.f32 %v7832_v24, %v8026_v4  ;;  %v3411_v38 = vpop.f32.mrf.mxu0  ;;  %v2892_v4 = vadd.f32 %v8154_v36, %v8152_v25 }
 0x536   : > { %v3117_v42 = vadd.f32 %v8197_v61, %v3070_v57  ;;  %v3291_v63 = vadd.f32 %v3276_v56, %v3239_v8  ;;  %v10269_v56 = vmax.f32 %v7847_v46, %v8039_v7  ;;  %v3119_v57 = vadd.f32 %v8232_v2, %v3072_v11 }
 0x537   : > { %v2937_v22 = vadd.f32 %v8160_v1, %v2892_v4  ;;  %v3073_v46 = vadd.f32 %v8238_v12, %v8220_v43  ;;  %v3245_v7 = vadd.f32 %v8310_v50, %v8294_v19  ;;  %v10272_v1 = vld [vmem:[#allocation29_spill] sm:$0xff]  ;;  %v10277_v43 = vld [vmem:[#allocation32_spill] sm:$0xff] }
 0x538   : > { %v3167_v41 = vadd.f32 %v8258_v39, %v3117_v42  ;;  %v3336_v32 = vadd.f32 %v3321_v44, %v3291_v63  ;;  %v3456_v44 = vpop.f32.mrf.mxu1 }
 0x539   : > { %v2982_v23 = vadd.f32 %v8228_v5, %v2937_v22  ;;  %v3120_v12 = vadd.f32 %v10277_v43, %v3073_v46  ;;  %v10293_v22 = vld [vmem:[#allocation34_spill] sm:$0xff]  ;;  %v10296_v46 = vld [vmem:[#allocation36_spill] sm:$0xff] }
 0x53a   : > { %v3381_v53 = vadd.f32 %v3366_v48, %v3336_v32 }
 0x53b   : > { %v8322_v40 = vpop.f32.mrf.mxu2  ;;  %v3542_v17 = vpop.f32.mrf.mxu3 }
 0x53c   : > { %10267 = vst [vmem:[#allocation33_spill] sm:$0xff] %v8322_v40  ;;  %v3468_v40 = vadd.f32 %v3447_v60, %v3423_v55  ;;  %v3469_v55 = vadd.f32 %v3450_v6, %v3424_v3  ;;  %v3118_v60 = vadd.f32 %v8215_v0, %v3071_v54  ;;  %v3242_v6 = vadd.f32 %v3241_v29, %v8286_v33  ;;  %v3414_v47 = vpop.f32.mrf.mxu0  ;;  %v10280_v54 = vld [vmem:[#allocation22_spill] sm:$0xff] }
 0x53d   : > { %v3470_v0 = vadd.f32 %v3453_v59, %v3425_v31  ;;  %v3169_v29 = vadd.f32 %v8284_v26, %v3119_v57  ;;  %v3426_v36 = vadd.f32 %v3411_v38, %v3381_v53  ;;  %v3170_v8 = vadd.f32 %v10280_v54, %v3120_v12  ;;  %v10287_v31 = vld [vmem:[#allocation14_spill] sm:$0xff]  ;;  %v10289_v53 = vld [vmem:[#allocation15_spill] sm:$0xff] }
 0x53e   : > { %v3168_v39 = vadd.f32 %v8272_v45, %v3118_v60  ;;  %v3292_v13 = vadd.f32 %v8306_v16, %v3242_v6  ;;  %v10270_v16 = vld [vmem:[#allocation9_spill] sm:$0xff]  ;;  %v10283_v60 = vld [vmem:[#allocation3_spill] sm:$0xff]  ;;  %v10288_v6 = vld [vmem:[#allocation28_spill] sm:$0xff] }
 0x53f   : > { %v2893_v14 = vadd.f32 %v10271_v62, %v10270_v16  ;;  %v3471_v26 = vadd.f32 %v3456_v44, %v3426_v36 }
 0x540   : > { %v3337_v33 = vadd.f32 %v3324_v21, %v3292_v13  ;;  %v10273_v21 = vld [vmem:[#allocation16_spill] sm:$0xff]  ;;  %v3459_v9 = vpop.f32.mrf.mxu1 }
 0x541   : > { %v10292_v13 = vld [vmem:[#allocation12_spill] sm:$0xff] }
 0x543   : > { %v8324_v15 = vpop.f32.mrf.mxu2  ;;  %v3545_v27 = vpop.f32.mrf.mxu3 }
 0x548   : > { %v3462_v62 = vpop.f32.mrf.mxu1 }
 0x54b   : > { %v3492_v49 = vpop.f32.mrf.mxu2  ;;  %v3548_v34 = vpop.f32.mrf.mxu3 }
 0x54c   : > { %v3513_v58 = vadd.f32 %v3492_v49, %v3468_v40  ;;  %v10274_v49 = vld [vmem:[#allocation19_spill] sm:$0xff] }
 0x54d   : > { %v10275_v42 = vmax.f32 %v10273_v21, %v10274_v49  ;;  %v10299_v49 = vld [vmem:[#allocation10_spill] sm:$0xff] }
 0x54e   : > { %v3563_v10 = vadd.f32 %v3542_v17, %v3513_v58  ;;  %v10276_v58 = vld [vmem:[#allocation43_spill] sm:$0xff] }
 0x54f   : > { %v3027_v35 = vadd.f32 %v10276_v58, %v2982_v23  ;;  %v10300_v58 = vld [vmem:[#allocation48_spill] sm:$0xff] }
 0x550   : > { %v3577_v37 = vmax.f32 %v3167_v41, %v3563_v10  ;;  %v10278_v41 = vld [vmem:[#allocation23_spill] sm:$0xff]  ;;  %v10279_v10 = vld [vmem:[#allocation42_spill] sm:$0xff] }
 0x551   : > { %v3293_v50 = vadd.f32 %v10278_v41, %v3245_v7  ;;  %v2938_v3 = vadd.f32 %v10279_v10, %v2893_v14  ;;  %v3074_v63 = vadd.f32 %v10283_v60, %v3027_v35  ;;  %v10297_v14 = vld [vmem:[#allocation45_spill] sm:$0xff]  ;;  %v10301_v35 = vld [vmem:[#allocation39_spill] sm:$0xff]  ;;  %v3465_v60 = vpop.f32.mrf.mxu1 }
 0x552   : > { %v8337_v61 = vmax.f32 %v10268_v20, %v3577_v37  ;;  %v10281_v37 = vld [vmem:[#allocation33_spill] sm:$0xff]  ;;  %v10282_v20 = vld [vmem:[#allocation2_spill] sm:$0xff]  ;;  %v10302_v43 = vmax.f32 %v10300_v58, %v10301_v35 }
 0x553   : > { %v3495_v18 = vpop.f32.mrf.mxu2  ;;  %v3551_v48 = vpop.f32.mrf.mxu3  ;;  %v3338_v59 = vadd.f32 %v10281_v37, %v3293_v50  ;;  %v3619_v58 = vld [vmem:[%s9904_s6 + $0x58] sm:$0xff] }
 0x554   : > { %v3514_v17 = vadd.f32 %v3495_v18, %v3469_v55  ;;  %v2983_v18 = vadd.f32 %v10282_v20, %v2938_v3  ;;  %v8465_v35 = vld [vmem:[%s9905_s7 + $0x1f8] sm:$0xff] }
 0x555   : > { %10315 = vst [vmem:[#allocation6_spill] sm:$0xff] %v8465_v35 }
 0x556   : > { %v3564_v52 = vadd.f32 %v3545_v27, %v3514_v17  ;;  %v3382_v27 = vadd.f32 %v10272_v1, %v3337_v33  ;;  %v10284_v17 = vld [vmem:[#allocation25_spill] sm:$0xff]  ;;  %v10294_v33 = vld [vmem:[#allocation11_spill] sm:$0xff] }
 0x558   : > { %v3578_v24 = vmax.f32 %v3168_v39, %v3564_v52  ;;  %v3427_v55 = vadd.f32 %v3414_v47, %v3382_v27  ;;  %v10286_v52 = vld [vmem:[#allocation7_spill] sm:$0xff]  ;;  %v10298_v27 = vld [vmem:[#allocation20_spill] sm:$0xff] }
 0x559   : > { %v2894_v38 = vadd.f32 %v10287_v31, %v10286_v52  ;;  %v10310_v31 = vld [vmem:[#allocation18_spill] sm:$0xff] }
 0x55a   : > { %v8349_v40 = vmax.f32 %v10269_v56, %v3578_v24  ;;  %v3383_v24 = vadd.f32 %v10288_v6, %v3338_v59  ;;  %v3472_v4 = vadd.f32 %v3459_v9, %v3427_v55  ;;  %v10306_v55 = vld [vmem:[#allocation24_spill] sm:$0xff] }
 0x55b   : > { %v3498_v45 = vpop.f32.mrf.mxu2  ;;  %v3554_v11 = vpop.f32.mrf.mxu3 }
 0x55c   : > { %v3515_v30 = vadd.f32 %v3498_v45, %v3470_v0  ;;  %v10290_v0 = vld [vmem:[#allocation21_spill] sm:$0xff]  ;;  %v3417_v45 = vpop.f32.mrf.mxu0 }
 0x55d   : > { %v10291_v56 = vmax.f32 %v10289_v53, %v10290_v0  ;;  %v3428_v16 = vadd.f32 %v3417_v45, %v3383_v24  ;;  %v10311_v24 = vld [vmem:[#allocation27_spill] sm:$0xff] }
 0x55e   : > { %v3565_v25 = vadd.f32 %v3548_v34, %v3515_v30  ;;  %v10285_v34 = vld [vmem:[#allocation26_spill] sm:$0xff]  ;;  %v3028_v30 = vadd.f32 %v10292_v13, %v2983_v18  ;;  %v10313_v45 = vld [vmem:[#allocation31_spill] sm:$0xff] }
 0x55f   : > { %v3248_v39 = vadd.f32 %v10285_v34, %v10284_v17  ;;  %v10307_v17 = vld [vmem:[#allocation4_spill] sm:$0xff]  ;;  %v10308_v34 = vld [vmem:[#allocation41_spill] sm:$0xff] }
 0x560   : > { %v3579_v2 = vmax.f32 %v3169_v29, %v3565_v25  ;;  %v3121_v29 = vadd.f32 %v10293_v22, %v3074_v63 }
 0x561   : > { %v3294_v25 = vadd.f32 %v10294_v33, %v3248_v39  ;;  %v10309_v39 = vmax.f32 %v10307_v17, %v10308_v34  ;;  %v8581_v17 = vld [vmem:[%s9905_s7 + $0x20] sm:$0xff]  ;;  %v8586_v34 = vld [vmem:[%s9905_s7 + $0x18] sm:$0xff] }
 0x562   : > { %v8366_v51 = vmax.f32 %v10275_v42, %v3579_v2  ;;  %v3171_v7 = vadd.f32 %v10296_v46, %v3121_v29 }
 0x563   : > { %v3501_v5 = vpop.f32.mrf.mxu2  ;;  %v3339_v2 = vadd.f32 %v8324_v15, %v3294_v25  ;;  %v3557_v41 = vpop.f32.mrf.mxu3  ;;  %v10304_v15 = vld [vmem:[#allocation8_spill] sm:$0xff] }
 0x564   : > { %v3516_v19 = vadd.f32 %v3501_v5, %v3471_v26  ;;  %v3075_v26 = vadd.f32 %v10298_v27, %v3028_v30  ;;  %v3473_v5 = vadd.f32 %v3462_v62, %v3428_v16  ;;  %v3420_v54 = vpop.f32.mrf.mxu0  ;;  %v6040_v30 = vld [vmem:[%s9903_s5] ss:$0 sm:$0xff]  ;;  %v3613_v27 = vld [vmem:[%s9904_s6 + $0x28] sm:$0xff] }
 0x565   : > { %v3384_v42 = vadd.f32 %v10299_v49, %v3339_v2  ;;  %v3596_v46 = vadd.f32 %v6040_v30, %v8366_v51  ;;  %v3595_v2 = vadd.f32 %v6040_v30, %v8349_v40  ;;  %v3594_v16 = vadd.f32 %v6040_v30, %v8337_v61  ;;  %v3609_v40 = vld [vmem:[%s9904_s6 + $0x8] sm:$0xff]  ;;  %v3610_v61 = vld [vmem:[%s9904_s6 + $0x10] sm:$0xff]  ;;  %v3611_v51 = vld [vmem:[%s9904_s6 + $0x18] sm:$0xff] }
 0x566   : > { %v3566_v28 = vadd.f32 %v3551_v48, %v3516_v19  ;;  %v10295_v48 = vld [vmem:[#allocation35_spill] sm:$0xff]  ;;  %v10303_v19 = vld [vmem:[#allocation13_spill] sm:$0xff]  ;;  %v3122_v10 = vadd.f32 %v10304_v15, %v3075_v26  ;;  %v3614_v26 = vld [vmem:[%s9904_s6 + $0x30] sm:$0xff] }
 0x567   : > { %v2939_v23 = vadd.f32 %v10295_v48, %v2894_v38  ;;  %v3602_v62 = vmax.f32 %v3595_v2, 0.0  ;;  %v3616_v49 = vld [vmem:[%s9904_s6 + $0x40] sm:$0xff]  ;;  %v8505_v15 = vld [vmem:[%s9905_s7 + $0x70] sm:$0xff] }
 0x568   : > { %v3580_v32 = vmax.f32 %v3170_v8, %v3566_v28  ;;  %v10305_v8 = vld [vmem:[#allocation17_spill] sm:$0xff]  ;;  %v3429_v28 = vadd.f32 %v3420_v54, %v3384_v42  ;;  %v3617_v42 = vld [vmem:[%s9904_s6 + $0x48] sm:$0xff]  ;;  %v8524_v54 = vld [vmem:[%s9905_s7 + $0x1c0] sm:$0xff] }
 0x569   : > { %v2984_v1 = vadd.f32 %v10297_v14, %v2939_v23  ;;  %v3172_v37 = vadd.f32 %v10305_v8, %v3122_v10  ;;  %v3601_v14 = vmax.f32 %v3594_v16, 0.0  ;;  %v8512_v10 = vld [vmem:[%s9905_s7 + $0x1c8] sm:$0xff]  ;;  %v8531_v8 = vld [vmem:[%s9905_s7 + $0x60] sm:$0xff] }
 0x56a   : > { %v3587_v44 = vmax.f32 %v10291_v56, %v3580_v32  ;;  %v3474_v63 = vadd.f32 %v3465_v60, %v3429_v28  ;;  %v10312_v56 = vld [vmem:[#allocation5_spill] sm:$0xff]  ;;  %v8548_v28 = vld [vmem:[%s9905_s7 + $0x48] sm:$0xff]  ;;  %v8716_v16 = vld [vmem:[%s9905_s7 + $0x80] sm:$0xff] }
 0x56b   : > { %v3504_v57 = vpop.f32.mrf.mxu2  ;;  %v3029_v9 = vadd.f32 %v10303_v19, %v2984_v1  ;;  %v3560_v6 = vpop.f32.mrf.mxu3  ;;  %v3612_v1 = vld [vmem:[%s9904_s6 + $0x20] sm:$0xff]  ;;  %v8495_v19 = vld [vmem:[%s9905_s7 + $0x1d0] sm:$0xff]  ;;  %v8572_v60 = vld [vmem:[%s9905_s7 + $0x28] sm:$0xff]  ;;  %10329 = vst [vmem:[#allocation23_spill] sm:$0xff] %v8716_v16 }
 0x56c   : > { %v3517_v36 = vadd.f32 %v3504_v57, %v3472_v4  ;;  %v10314_v57 = vmax.f32 %v10312_v56, %v10313_v45  ;;  %v3597_v48 = vadd.f32 %v6040_v30, %v3587_v44  ;;  %v3608_v44 = vld [vmem:[%s9904_s6] sm:$0xff] }
 0x56d   : > { %v3076_v20 = vadd.f32 %v10306_v55, %v3029_v9  ;;  %v8500_v9 = vld [vmem:[%s9905_s7 + $0x78] sm:$0xff]  ;;  %v8555_v55 = vld [vmem:[%s9905_s7 + $0x40] sm:$0xff] }
 0x56e   : > { %v3567_v47 = vadd.f32 %v3554_v11, %v3517_v36  ;;  %3806 = vmatpush.msra.mxu1 %v8500_v9  ;;  %v8646_v45 = vld [vmem:[%s9905_s7 + $0xa0] sm:$0xff] }
 0x56f   : > { %v3123_v38 = vadd.f32 %v10310_v31, %v3076_v20  ;;  %v8560_v20 = vld [vmem:[%s9905_s7 + $0x38] sm:$0xff]  ;;  %10323 = vst [vmem:[#allocation30_spill] sm:$0xff] %v8646_v45 }
 0x570   : > { %v3581_v21 = vmax.f32 %v3171_v7, %v3567_v47  ;;  %v3604_v7 = vmax.f32 %v3597_v48, 0.0  ;;  %v3603_v47 = vmax.f32 %v3596_v46, 0.0  ;;  %3807 = vmatpush.msra.mxu1 %v8505_v15  ;;  %v8681_v48 = vld [vmem:[%s9905_s7 + $0x90] sm:$0xff]  ;;  %v8695_v46 = vld [vmem:[%s9905_s7 + $0x88] sm:$0xff] }
 0x571   : > { %v3173_v4 = vadd.f32 %v10311_v24, %v3123_v38  ;;  %10325 = vst [vmem:[#allocation16_spill] sm:$0xff] %v8681_v48 }
 0x572   : > { %v3588_v12 = vmax.f32 %v10302_v43, %v3581_v21  ;;  %v3615_v21 = vld [vmem:[%s9904_s6 + $0x38] sm:$0xff]  ;;  %v8471_v43 = vld [vmem:[%s9905_s7 + $0x1f0] sm:$0xff]  ;;  %10326 = vst [vmem:[#allocation19_spill] sm:$0xff] %v8695_v46 }
 0x573   : > { %v3507_v50 = vpop.f32.mrf.mxu2  ;;  %10316 = vst [vmem:[#allocation38_spill] sm:$0xff] %v8471_v43 }
 0x574   : > { %v3518_v3 = vadd.f32 %v3507_v50, %v3473_v5  ;;  %v3598_v25 = vadd.f32 %v6040_v30, %v3588_v12  ;;  %v3618_v5 = vld [vmem:[%s9904_s6 + $0x50] sm:$0xff]  ;;  %v8477_v12 = vld [vmem:[%s9905_s7 + $0x1e8] sm:$0xff]  ;;  %v8489_v50 = vld [vmem:[%s9905_s7 + $0x1d8] sm:$0xff] }
 0x575   : > { %10317 = vst [vmem:[#allocation46_spill] sm:$0xff] %v8477_v12 }
 0x576   : > { %v3568_v59 = vadd.f32 %v3557_v41, %v3518_v3  ;;  %v3605_v23 = vmax.f32 %v3598_v25, 0.0  ;;  %v8483_v41 = vld [vmem:[%s9905_s7 + $0x1e0] sm:$0xff]  ;;  %10319 = vst [vmem:[#allocation40_spill] sm:$0xff] %v8489_v50  ;;  %v8517_v3 = vld [vmem:[%s9905_s7 + $0x68] sm:$0xff] }
 0x577   : > { %10318 = vst [vmem:[#allocation44_spill] sm:$0xff] %v8483_v41  ;;  %3808 = vmatpush.msra.mxu1 %v8517_v3 }
 0x578   : > { %v3582_v18 = vmax.f32 %v3172_v37, %v3568_v59  ;;  %v8536_v37 = vld [vmem:[%s9905_s7 + $0x58] sm:$0xff]  ;;  %v8542_v59 = vld [vmem:[%s9905_s7 + $0x50] sm:$0xff] }
 0x579   : > { %3809 = vmatpush.msra.mxu1 %v8531_v8 }
 0x57a   : > { %v3589_v32 = vmax.f32 %v10309_v39, %v3582_v18  ;;  %v8566_v18 = vld [vmem:[%s9905_s7 + $0x30] sm:$0xff] }
 0x57b   : > { %v3510_v52 = vpop.f32.mrf.mxu2  ;;  %3810 = vmatpush.msra.mxu1 %v8536_v37  ;;  %v8592_v39 = vld [vmem:[%s9905_s7 + $0x10] sm:$0xff] }
 0x57c   : > { %v3519_v11 = vadd.f32 %v3510_v52, %v3474_v63  ;;  %v3599_v29 = vadd.f32 %v6040_v30, %v3589_v32  ;;  %v8598_v32 = vld [vmem:[%s9905_s7 + $0x8] sm:$0xff]  ;;  %v8604_v52 = vld [vmem:[%s9905_s7] sm:$0xff] }
 0x57d   : > { %3811 = vmatpush.msra.mxu1 %v8542_v59 }
 0x57e   : > { %v3569_v53 = vadd.f32 %v3560_v6, %v3519_v11  ;;  %v3606_v36 = vmax.f32 %v3599_v29, 0.0  ;;  %v8614_v6 = vld [vmem:[%s9905_s7 + $0xb8] sm:$0xff] }
 0x57f   : > { %3812 = vmatpush.msra.mxu1 %v8548_v28  ;;  %10320 = vst [vmem:[#allocation47_spill] sm:$0xff] %v8614_v6  ;;  %v8661_v29 = vld [vmem:[%s9905_s7 + $0x98] sm:$0xff] }
 0x580   : > { %v3583_v0 = vmax.f32 %v3173_v4, %v3569_v53  ;;  %v8624_v4 = vld [vmem:[%s9905_s7 + $0xb0] sm:$0xff]  ;;  %v8632_v53 = vld [vmem:[%s9905_s7 + $0xa8] sm:$0xff]  ;;  %10324 = vst [vmem:[#allocation29_spill] sm:$0xff] %v8661_v29 }
 0x581   : > { %3813 = vmatpush.msra.mxu1 %v8555_v55  ;;  %10321 = vst [vmem:[#allocation37_spill] sm:$0xff] %v8624_v4 }
 0x582   : > { %v3590_v13 = vmax.f32 %v10314_v57, %v3583_v0  ;;  %10322 = vst [vmem:[#allocation9_spill] sm:$0xff] %v8632_v53  ;;  %v8637_v0 = vld [vmem:[%s9905_s7 + $0x178] sm:$0xff]  ;;  %v8651_v57 = vld [vmem:[%s9905_s7 + $0x170] sm:$0xff] }
 0x583   : > { %3835 = vmatpush.msrb.mxu1 %v8560_v20  ;;  %3965 = vmatpush.msra.mxu3 %v8637_v0 }
 0x584   : > { %v3600_v22 = vadd.f32 %v6040_v30, %v3590_v13 }
 0x585   : > { %3836 = vmatpush.msrb.mxu1 %v8566_v18  ;;  %3966 = vmatpush.msra.mxu3 %v8651_v57 }
 0x586   : > { %v3607_v33 = vmax.f32 %v3600_v22, 0.0 }
 0x587   : > { %3837 = vmatpush.msrb.mxu1 %v8572_v60 }
 0x588   : > { %3666 = vmatpush.msra.mxu0 %v3607_v33  ;;  %v8666_v33 = vld [vmem:[%s9905_s7 + $0x168] sm:$0xff] }
 0x589   : > { %3838 = vmatpush.msrb.mxu1 %v8581_v17  ;;  %3967 = vmatpush.msra.mxu3 %v8666_v33 }
 0x58a   : > { %3667 = vmatpush.msra.mxu0 %v3606_v36 }
 0x58b   : > { %3839 = vmatpush.msrb.mxu1 %v8586_v34 }
 0x58c   : > { %3668 = vmatpush.msra.mxu0 %v3605_v23  ;;  %v8686_v23 = vld [vmem:[%s9905_s7 + $0x160] sm:$0xff] }
 0x58d   : > { %3840 = vmatpush.msrb.mxu1 %v8592_v39  ;;  %3968 = vmatpush.msra.mxu3 %v8686_v23 }
 0x58e   : > { %3669 = vmatpush.msra.mxu0 %v3604_v7  ;;  %v8700_v7 = vld [vmem:[%s9905_s7 + $0x158] sm:$0xff] }
 0x58f   : > { %3841 = vmatpush.msrb.mxu1 %v8598_v32  ;;  %10327 = vst [vmem:[#allocation43_spill] sm:$0xff] %v8700_v7  ;;  %3969 = vmatpush.msra.mxu3 %v8700_v7 }
 0x590   : > { %3670 = vmatpush.msra.mxu0 %v3603_v47  ;;  %v8709_v47 = vld [vmem:[%s9905_s7 + $0x150] sm:$0xff] }
 0x591   : > { %3842 = vmatpush.msrb.mxu1 %v8604_v52  ;;  %10328 = vst [vmem:[#allocation32_spill] sm:$0xff] %v8709_v47  ;;  %3970 = vmatpush.msra.mxu3 %v8709_v47  ;;  %v8945_v47 = vld [vmem:[%s9905_s7 + $0xc0] sm:$0xff] }
 0x592   : > { %3671 = vmatpush.msra.mxu0 %v3602_v62  ;;  %v8723_v62 = vld [vmem:[%s9905_s7 + $0x148] sm:$0xff] }
 0x593   : > { %10330 = vst [vmem:[#allocation42_spill] sm:$0xff] %v8723_v62  ;;  %3971 = vmatpush.msra.mxu3 %v8723_v62  ;;  %v8911_v62 = vld [vmem:[%s9905_s7 + $0x180] sm:$0xff] }
 0x594   : > { %3672 = vmatpush.msra.mxu0 %v3601_v14  ;;  %v8730_v14 = vld [vmem:[%s9905_s7 + $0x138] sm:$0xff] }
 0x595   : > { %5748 = vmatmul.msk.f32.vlgmr.msra.gmra.mxu0 %vm3620_vm6, %v3608_v44  ;;  %10331 = vst [vmem:[#allocation22_spill] sm:$0xff] %v8730_v14  ;;  %v8736_v44 = vld [vmem:[%s9905_s7 + $0x140] sm:$0xff]  ;;  %3930 = vmatpush.msra.mxu2 %v8730_v14 }
 0x596   : > { %4284 = vmatpush.msrb.mxu0 %v8465_v35  ;;  %10332 = vst [vmem:[#allocation33_spill] sm:$0xff] %v8736_v44  ;;  %3972 = vmatpush.msra.mxu3 %v8736_v44  ;;  %v8873_v44 = vld [vmem:[%s9905_s7 + $0x208] sm:$0xff] }
 0x597   : > { %10350 = vst [vmem:[#allocation48_spill] sm:$0xff] %v8873_v44 }
 0x598   : > { %4285 = vmatpush.msrb.mxu0 %v8471_v43 }
 0x59a   : > { %4286 = vmatpush.msrb.mxu0 %v8477_v12 }
 0x59c   : > { %4287 = vmatpush.msrb.mxu0 %v8483_v41 }
 0x59d   : > { %5749 = vmatmul.msk.f32.gmra.mxu0 %vm3620_vm6, %v3609_v40  ;;  %v8743_v40 = vld [vmem:[%s9905_s7 + $0x130] sm:$0xff] }
 0x59e   : > { %4288 = vmatpush.msrb.mxu0 %v8489_v50  ;;  %10333 = vst [vmem:[#allocation2_spill] sm:$0xff] %v8743_v40  ;;  %3931 = vmatpush.msra.mxu2 %v8743_v40 }
 0x5a0   : > { %4289 = vmatpush.msrb.mxu0 %v8495_v19 }
 0x5a2   : > { %4290 = vmatpush.msrb.mxu0 %v8512_v10 }
 0x5a4   : > { %4291 = vmatpush.msrb.mxu0 %v8524_v54 }
 0x5a5   : > { %5750 = vmatmul.msk.f32.gmra.mxu0 %vm3620_vm6, %v3610_v61  ;;  %v8749_v61 = vld [vmem:[%s9905_s7 + $0x238] sm:$0xff] }
 0x5a6   : > { %4389 = vmatpush.msra.mxu0 %v8614_v6  ;;  %10334 = vst [vmem:[#allocation3_spill] sm:$0xff] %v8749_v61  ;;  %4069 = vmatpush.msrb.mxu3 %v8749_v61  ;;  %v8854_v61 = vld [vmem:[%s9905_s7 + $0x210] sm:$0xff] }
 0x5a7   : > { %10349 = vst [vmem:[#allocation10_spill] sm:$0xff] %v8854_v61 }
 0x5a8   : > { %4390 = vmatpush.msra.mxu0 %v8624_v4 }
 0x5aa   : > { %4391 = vmatpush.msra.mxu0 %v8632_v53 }
 0x5ac   : > { %4392 = vmatpush.msra.mxu0 %v8646_v45 }
 0x5ad   : > { %5751 = vmatmul.msk.f32.gmra.mxu0 %vm3620_vm6, %v3611_v51  ;;  %v8755_v51 = vld [vmem:[%s9905_s7 + $0x1b8] sm:$0xff] }
 0x5ae   : > { %4393 = vmatpush.msra.mxu0 %v8661_v29  ;;  %10335 = vst [vmem:[#allocation25_spill] sm:$0xff] %v8755_v51 }
 0x5b0   : > { %4394 = vmatpush.msra.mxu0 %v8681_v48 }
 0x5b2   : > { %4395 = vmatpush.msra.mxu0 %v8695_v46 }
 0x5b4   : > { %4396 = vmatpush.msra.mxu0 %v8716_v16 }
 0x5b5   : > { %5752 = vmatmul.msk.f32.gmra.mxu0 %vm3620_vm6, %v3612_v1  ;;  %v8761_v1 = vld [vmem:[%s9905_s7 + $0x128] sm:$0xff] }
 0x5b6   : > { %10336 = vst [vmem:[#allocation26_spill] sm:$0xff] %v8761_v1  ;;  %3932 = vmatpush.msra.mxu2 %v8761_v1 }
 0x5bd   : > { %5753 = vmatmul.msk.f32.gmra.mxu0 %vm3620_vm6, %v3613_v27 }
 0x5c5   : > { %5754 = vmatmul.msk.f32.gmra.mxu0 %vm3620_vm6, %v3614_v26  ;;  %v8770_v26 = vld [vmem:[%s9905_s7 + $0x230] sm:$0xff] }
 0x5c6   : > { %10337 = vst [vmem:[#allocation7_spill] sm:$0xff] %v8770_v26  ;;  %4070 = vmatpush.msrb.mxu3 %v8770_v26 }
 0x5cd   : > { %5755 = vmatmul.msk.f32.gmra.mxu0 %vm3620_vm6, %v3615_v21  ;;  %v8776_v21 = vld [vmem:[%s9905_s7 + $0x1b0] sm:$0xff] }
 0x5ce   : > { %10338 = vst [vmem:[#allocation14_spill] sm:$0xff] %v8776_v21 }
 0x5d5   : > { %5756 = vmatmul.msk.f32.gmra.mxu0 %vm3620_vm6, %v3616_v49  ;;  %v8785_v49 = vld [vmem:[%s9905_s7 + $0x228] sm:$0xff] }
 0x5d6   : > { %10339 = vst [vmem:[#allocation28_spill] sm:$0xff] %v8785_v49  ;;  %4071 = vmatpush.msrb.mxu3 %v8785_v49  ;;  %v8846_v49 = vld [vmem:[%s9905_s7 + $0x108] sm:$0xff] }
 0x5d7   : > { %10348 = vst [vmem:[#allocation20_spill] sm:$0xff] %v8846_v49 }
 0x5dd   : > { %5757 = vmatmul.msk.f32.gmra.mxu0 %vm3620_vm6, %v3617_v42  ;;  %v8790_v42 = vld [vmem:[%s9905_s7 + $0x120] sm:$0xff] }
 0x5de   : > { %10340 = vst [vmem:[#allocation15_spill] sm:$0xff] %v8790_v42  ;;  %3933 = vmatpush.msra.mxu2 %v8790_v42  ;;  %v8885_v42 = vld [vmem:[%s9905_s7 + $0xe8] sm:$0xff] }
 0x5e5   : > { %5758 = vmatmul.msk.f32.gmra.mxu0 %vm3620_vm6, %v3618_v5  ;;  %v8798_v5 = vld [vmem:[%s9905_s7 + $0x118] sm:$0xff] }
 0x5e6   : > { %10341 = vst [vmem:[#allocation21_spill] sm:$0xff] %v8798_v5  ;;  %3934 = vmatpush.msra.mxu2 %v8798_v5  ;;  %v8878_v5 = vld [vmem:[%s9905_s7 + $0x100] sm:$0xff] }
 0x5e7   : > { %10351 = vst [vmem:[#allocation39_spill] sm:$0xff] %v8878_v5 }
 0x5ed   : > { %5759 = vmatmul.msk.f32.gmra.mxu0 %vm3620_vm6, %v3619_v58  ;;  %v8803_v58 = vld [vmem:[%s9905_s7 + $0x1a8] sm:$0xff] }
 0x5ee   : > { %10342 = vst [vmem:[#allocation12_spill] sm:$0xff] %v8803_v58 }
 0x612   : > { %v8576_v63 = vpop.f32.mrf.mxu0 }
 0x613   : > { %v4052_v38 = vrot.slane %v8576_v63, 5 }
 0x61a   : > { %v8606_v31 = vpop.f32.mrf.mxu0 }
 0x61b   : > { %v4053_v11 = vrot.slane %v8606_v31, 5  ;;  %v9987_v13 = vrot.slane %v8606_v31, 4 }
 0x61d   : > { %v8619_v24 = vsel %vm4051_vm7, %v4052_v38, %v4053_v11  ;;  %v8809_v38 = vld [vmem:[%s9905_s7 + $0x220] sm:$0xff] }
 0x61e   : > { %5856 = vmatmul.msk.f32.vlgmr.msrb.gmra.mxu0 %vm3791_vm8, %v8619_v24  ;;  %10343 = vst [vmem:[#allocation34_spill] sm:$0xff] %v8809_v38  ;;  %4072 = vmatpush.msrb.mxu3 %v8809_v38  ;;  %v8839_v38 = vld [vmem:[%s9905_s7 + $0xf8] sm:$0xff] }
 0x61f   : > { %4498 = vmatpush.msrb.mxu0 %v8755_v51 }
 0x621   : > { %4499 = vmatpush.msrb.mxu0 %v8776_v21 }
 0x622   : > { %v8641_v56 = vpop.f32.mrf.mxu0 }
 0x623   : > { %v3985_v30 = vrot.slane %v8641_v56, 4  ;;  %v4055_v22 = vrot.slane %v8641_v56, 5  ;;  %4500 = vmatpush.msrb.mxu0 %v8803_v58 }
 0x625   : > { %v8670_v25 = vsel %vm4051_vm7, %v4053_v11, %v4055_v22  ;;  %v8675_v36 = vsel %vm1473_vm2, %v9987_v13, %v3985_v30  ;;  %v8814_v11 = vld [vmem:[%s9905_s7 + $0x1a0] sm:$0xff]  ;;  %v8822_v30 = vld [vmem:[%s9905_s7 + $0x110] sm:$0xff]  ;;  %v8828_v22 = vld [vmem:[%s9905_s7 + $0x218] sm:$0xff] }
 0x626   : > { %5857 = vmatmul.msk.f32.gmra.mxu0 %vm3791_vm8, %v8670_v25  ;;  %10344 = vst [vmem:[#allocation11_spill] sm:$0xff] %v8814_v11  ;;  %v8833_v13 = vld [vmem:[%s9905_s7 + $0x198] sm:$0xff]  ;;  %4073 = vmatpush.msrb.mxu3 %v8828_v22 }
 0x627   : > { %10345 = vst [vmem:[#allocation35_spill] sm:$0xff] %v8822_v30  ;;  %4501 = vmatpush.msrb.mxu0 %v8814_v11  ;;  %3935 = vmatpush.msra.mxu2 %v8822_v30  ;;  %v8867_v30 = vld [vmem:[%s9905_s7 + $0xf0] sm:$0xff] }
 0x628   : > { %10346 = vst [vmem:[#allocation36_spill] sm:$0xff] %v8828_v22  ;;  %v8859_v22 = vld [vmem:[%s9905_s7 + $0x190] sm:$0xff]  ;;  %4074 = vmatpush.msrb.mxu3 %v8854_v61  ;;  %v8891_v61 = vld [vmem:[%s9905_s7 + $0x188] sm:$0xff] }
 0x629   : > { %10347 = vst [vmem:[#allocation45_spill] sm:$0xff] %v8833_v13  ;;  %4502 = vmatpush.msrb.mxu0 %v8833_v13  ;;  %3936 = vmatpush.msra.mxu2 %v8846_v49  ;;  %v8898_v49 = vld [vmem:[%s9905_s7 + $0x200] sm:$0xff] }
 0x62a   : > { %v8704_v2 = vpop.f32.mrf.mxu0  ;;  %4075 = vmatpush.msrb.mxu3 %v8873_v44  ;;  %10352 = vst [vmem:[#allocation13_spill] sm:$0xff] %v8898_v49  ;;  %v8904_v44 = vld [vmem:[%s9905_s7 + $0xe0] sm:$0xff] }
 0x62b   : > { %5824 = vmatmul.msk.f32.vlgmr.msra.gmra.mxu1 %vm3791_vm8, %v8704_v2  ;;  %4503 = vmatpush.msrb.mxu0 %v8859_v22 }
 0x62c   : > { %3868 = vmatpush.msra.mxu1 %v8614_v6  ;;  %3937 = vmatpush.msra.mxu2 %v8878_v5  ;;  %v8918_v5 = vld [vmem:[%s9905_s7 + $0xd8] sm:$0xff] }
 0x62d   : > { %4076 = vmatpush.msrb.mxu3 %v8898_v49  ;;  %4504 = vmatpush.msrb.mxu0 %v8891_v61  ;;  %v3852_v49 = vrot.slane %v8606_v31, 1 }
 0x62e   : > { %3869 = vmatpush.msra.mxu1 %v8624_v4  ;;  %4034 = vmatpush.msrb.mxu2 %v8465_v35  ;;  %v8930_v35 = vld [vmem:[%s9905_s7 + $0xd0] sm:$0xff] }
 0x62f   : > { %4505 = vmatpush.msrb.mxu0 %v8911_v62 }
 0x630   : > { %3870 = vmatpush.msra.mxu1 %v8632_v53  ;;  %4035 = vmatpush.msrb.mxu2 %v8471_v43  ;;  %v8937_v43 = vld [vmem:[%s9905_s7 + $0xc8] sm:$0xff] }
 0x632   : > { %v8764_v27 = vpop.f32.mrf.mxu0  ;;  %3871 = vmatpush.msra.mxu1 %v8646_v45  ;;  %4036 = vmatpush.msrb.mxu2 %v8477_v12  ;;  %v3851_v12 = vrot.slane %v8576_v63, 1 }
 0x633   : > { %5825 = vmatmul.msk.f32.gmra.mxu1 %vm3791_vm8, %v8764_v27 }
 0x634   : > { %3872 = vmatpush.msra.mxu1 %v8661_v29  ;;  %4037 = vmatpush.msrb.mxu2 %v8483_v41  ;;  %v8953_v41 = vsel %vm1892_vm5, %v3851_v12, %v3852_v49  ;;  %v3854_v12 = vrot.slane %v8641_v56, 1 }
 0x636   : > { %3873 = vmatpush.msra.mxu1 %v8681_v48  ;;  %4038 = vmatpush.msrb.mxu2 %v8489_v50 }
 0x638   : > { %3874 = vmatpush.msra.mxu1 %v8695_v46  ;;  %4039 = vmatpush.msrb.mxu2 %v8495_v19 }
 0x63a   : > { %v8848_v26 = vpop.f32.mrf.mxu0  ;;  %3875 = vmatpush.msra.mxu1 %v8716_v16  ;;  %4040 = vmatpush.msrb.mxu2 %v8512_v10 }
 0x63b   : > { %5826 = vmatmul.msk.f32.vlgmr.msrb.gmra.mxu1 %vm3791_vm8, %v8576_v63 }
 0x63c   : > { %3899 = vmatpush.msrb.mxu1 %v8839_v38  ;;  %4041 = vmatpush.msrb.mxu2 %v8524_v54 }
 0x63e   : > { %3900 = vmatpush.msrb.mxu1 %v8867_v30 }
 0x640   : > { %3901 = vmatpush.msrb.mxu1 %v8885_v42 }
 0x642   : > { %v8921_v1 = vpop.f32.mrf.mxu0  ;;  %3902 = vmatpush.msrb.mxu1 %v8904_v44 }
 0x643   : > { %5827 = vmatmul.msk.f32.gmra.mxu1 %vm3791_vm8, %v8606_v31  ;;  %v3948_v40 = vrot.slane %v8921_v1, 1 }
 0x644   : > { %3903 = vmatpush.msrb.mxu1 %v8918_v5 }
 0x646   : > { %3904 = vmatpush.msrb.mxu1 %v8930_v35 }
 0x648   : > { %3905 = vmatpush.msrb.mxu1 %v8937_v43 }
 0x64a   : > { %v8955_v7 = vpop.f32.mrf.mxu0  ;;  %3906 = vmatpush.msrb.mxu1 %v8945_v47 }
 0x64b   : > { %5828 = vmatmul.msk.f32.vlgmr.msra.gmra.mxu1 %vm3791_vm8, %v8953_v41  ;;  %v3949_v50 = vrot.slane %v8955_v7, 1 }
 0x64c   : > { %3999 = vmatpush.msra.mxu1 %v8755_v51 }
 0x64d   : > { %v8964_v14 = vsel %vm1892_vm5, %v3948_v40, %v3949_v50  ;;  %v8978_v40 = vsel %vm1892_vm5, %v3852_v49, %v3854_v12  ;;  %v4482_v12 = vrot.slane %v8955_v7, 4 }
 0x64e   : > { %5834 = vmatmul.msk.f32.vlgmr.msra.gmra.mxu3 %vm3791_vm8, %v8964_v14  ;;  %4000 = vmatpush.msra.mxu1 %v8776_v21 }
 0x64f   : > { %4149 = vmatpush.msra.mxu3 %v8614_v6  ;;  %5864 = vmatmul.msk.f32.vlgmr.msra.gmra.mxu0 %vm3791_vm8, %v8964_v14 }
 0x650   : > { %4001 = vmatpush.msra.mxu1 %v8803_v58  ;;  %4614 = vmatpush.msra.mxu0 %v8560_v20 }
 0x651   : > { %4150 = vmatpush.msra.mxu3 %v8624_v4  ;;  %v4017_v4 = vrot.slane %v8704_v2, 4 }
 0x652   : > { %v8980_v56 = vpop.f32.mrf.mxu0  ;;  %4002 = vmatpush.msra.mxu1 %v8814_v11  ;;  %4615 = vmatpush.msra.mxu0 %v8566_v18 }
 0x653   : > { %5829 = vmatmul.msk.f32.gmra.mxu1 %vm3791_vm8, %v8978_v40  ;;  %v3951_v6 = vrot.slane %v8980_v56, 1  ;;  %4151 = vmatpush.msra.mxu3 %v8632_v53  ;;  %v4018_v53 = vrot.slane %v8764_v27, 4 }
 0x654   : > { %4003 = vmatpush.msra.mxu1 %v8833_v13  ;;  %4616 = vmatpush.msra.mxu0 %v8572_v60 }
 0x655   : > { %v8991_v49 = vsel %vm1892_vm5, %v3949_v50, %v3951_v6  ;;  %4152 = vmatpush.msra.mxu3 %v8646_v45  ;;  %v4481_v6 = vrot.slane %v8921_v1, 4 }
 0x656   : > { %5835 = vmatmul.msk.f32.gmra.mxu3 %vm3791_vm8, %v8991_v49  ;;  %4004 = vmatpush.msra.mxu1 %v8859_v22 }
 0x657   : > { %4153 = vmatpush.msra.mxu3 %v8661_v29  ;;  %5865 = vmatmul.msk.f32.gmra.mxu0 %vm3791_vm8, %v8991_v49 }
 0x658   : > { %4005 = vmatpush.msra.mxu1 %v8891_v61  ;;  %4617 = vmatpush.msra.mxu0 %v8581_v17 }
 0x659   : > { %4154 = vmatpush.msra.mxu3 %v8681_v48  ;;  %v4483_v48 = vsel %vm1473_vm2, %v4481_v6, %v4482_v12 }
 0x65a   : > { %v9003_v50 = vpop.f32.mrf.mxu0  ;;  %4006 = vmatpush.msra.mxu1 %v8911_v62  ;;  %4618 = vmatpush.msra.mxu0 %v8586_v34 }
 0x65b   : > { %5830 = vmatmul.msk.f32.vlgmr.msrb.gmra.mxu1 %vm3791_vm8, %v8921_v1  ;;  %5832 = vmatmul.msk.f32.vlgmr.msra.gmra.mxu2 %vm3791_vm8, %v9003_v50  ;;  %v4779_v29 = vrot.slane %v9003_v50, 5 }
 0x65c   : > { %4094 = vmatpush.msrb.mxu1 %v8500_v9  ;;  %4155 = vmatpush.msra.mxu3 %v8695_v46  ;;  %v4515_v46 = vrot.slane %v9003_v50, 4 }
 0x65d   : > { %4117 = vmatpush.msra.mxu2 %v8560_v20  ;;  %4619 = vmatpush.msra.mxu0 %v8592_v39 }
 0x65e   : > { %5840 = vmatmul.msk.f32.vlgmr.msrb.gmra.mxu3 %vm3791_vm8, %v8619_v24  ;;  %4095 = vmatpush.msrb.mxu1 %v8505_v15 }
 0x65f   : > { %4156 = vmatpush.msra.mxu3 %v8716_v16  ;;  %4118 = vmatpush.msra.mxu2 %v8566_v18 }
 0x660   : > { %4096 = vmatpush.msrb.mxu1 %v8517_v3  ;;  %5872 = vmatmul.msk.f32.vlgmr.msrb.gmra.mxu0 %vm3791_vm8, %v4483_v48 }
 0x661   : > { %4259 = vmatpush.msrb.mxu3 %v8755_v51  ;;  %4119 = vmatpush.msra.mxu2 %v8572_v60  ;;  %v4484_v51 = vrot.slane %v8980_v56, 4 }
 0x662   : > { %v9029_v45 = vpop.f32.mrf.mxu0  ;;  %4097 = vmatpush.msrb.mxu1 %v8531_v8  ;;  %4620 = vmatpush.msra.mxu0 %v8598_v32 }
 0x663   : > { %4260 = vmatpush.msrb.mxu3 %v8776_v21  ;;  %5831 = vmatmul.msk.f32.gmra.mxu1 %vm3791_vm8, %v8955_v7  ;;  %v4516_v6 = vrot.slane %v9029_v45, 4  ;;  %v4780_v48 = vrot.slane %v9029_v45, 5 }
 0x664   : > { %5833 = vmatmul.msk.f32.gmra.mxu2 %vm3791_vm8, %v9029_v45  ;;  %4098 = vmatpush.msrb.mxu1 %v8536_v37 }
 0x665   : > { %4261 = vmatpush.msrb.mxu3 %v8803_v58  ;;  %4120 = vmatpush.msra.mxu2 %v8581_v17  ;;  %v9045_v21 = vsel %vm1473_vm2, %v4515_v46, %v4516_v6  ;;  %v9048_v16 = vsel %vm4051_vm7, %v4779_v29, %v4780_v48  ;;  %v3982_v58 = vrot.slane %v8576_v63, 4  ;;  %v4133_v29 = vrot.slane %v8764_v27, 1 }
 0x666   : > { %10353 = vst [vmem:[#allocation8_spill] sm:$0xff] %v9045_v21  ;;  %5841 = vmatmul.msk.f32.gmra.mxu3 %vm3791_vm8, %v8670_v25  ;;  %4099 = vmatpush.msrb.mxu1 %v8542_v59  ;;  %v4485_v46 = vsel %vm1473_vm2, %v4482_v12, %v4484_v51  ;;  %v9070_v63 = vsel %vm1473_vm2, %v4017_v4, %v4018_v53  ;;  %v4020_v12 = vrot.slane %v8848_v26, 4 }
 0x667   : > { %10354 = vst [vmem:[#allocation17_spill] sm:$0xff] %v9048_v16  ;;  %4262 = vmatpush.msrb.mxu3 %v8814_v11  ;;  %4121 = vmatpush.msra.mxu2 %v8586_v34  ;;  %v10355_v11 = vrot.slane %v8606_v31, 4 }
 0x668   : > { %4100 = vmatpush.msrb.mxu1 %v8548_v28  ;;  %4621 = vmatpush.msra.mxu0 %v8604_v52 }
 0x669   : > { %4263 = vmatpush.msrb.mxu3 %v8833_v13  ;;  %4122 = vmatpush.msra.mxu2 %v8592_v39  ;;  %v9067_v16 = vsel %vm1473_vm2, %v3982_v58, %v10355_v11  ;;  %v4132_v13 = vrot.slane %v8704_v2, 1 }
 0x66a   : > { %4101 = vmatpush.msrb.mxu1 %v8555_v55  ;;  %v9073_v21 = vpop.f32.mrf.mxu0  ;;  %5873 = vmatmul.msk.f32.gmra.mxu0 %vm3791_vm8, %v4485_v46  ;;  %v4217_v46 = vrot.slane %v9003_v50, 1 }
 0x66b   : > { %5836 = vmatmul.msk.f32.vlgmr.msra.gmra.mxu1 %vm3791_vm8, %v9067_v16  ;;  %v4518_v31 = vrot.slane %v9073_v21, 4  ;;  %v4782_v51 = vrot.slane %v9073_v21, 5  ;;  %4264 = vmatpush.msrb.mxu3 %v8859_v22  ;;  %v4134_v4 = vsel %vm1892_vm5, %v4132_v13, %v4133_v29  ;;  %v4135_v13 = vrot.slane %v8848_v26, 1 }
 0x66c   : > { %5838 = vmatmul.msk.f32.vlgmr.msrb.gmra.mxu2 %vm3791_vm8, %v9070_v63  ;;  %4174 = vmatpush.msra.mxu1 %v8839_v38 }
 0x66d   : > { %4123 = vmatpush.msra.mxu2 %v8598_v32  ;;  %4712 = vmatpush.msrb.mxu0 %v8637_v0  ;;  %v9089_v58 = vsel %vm1473_vm2, %v4516_v6, %v4518_v31  ;;  %v9092_v11 = vsel %vm4051_vm7, %v4780_v48, %v4782_v51  ;;  %v9105_v6 = vsel %vm1473_vm2, %v4018_v53, %v4020_v12  ;;  %v10362_v53 = vld [vmem:[#allocation15_spill] sm:$0xff]  ;;  %v4302_v31 = vrot.slane %v8764_v27, 5 }
 0x66e   : > { %5846 = vmatmul.msk.f32.vlgmr.msra.gmra.mxu3 %vm3791_vm8, %v4134_v4  ;;  %4175 = vmatpush.msra.mxu1 %v8867_v30  ;;  %v4136_v48 = vsel %vm1892_vm5, %v4133_v29, %v4135_v13  ;;  %v10364_v29 = vld [vmem:[#allocation33_spill] sm:$0xff]  ;;  %v10367_v4 = vld [vmem:[#allocation39_spill] sm:$0xff]  ;;  %v4304_v12 = vrot.slane %v8848_v26, 5  ;;  %v10370_v13 = vld [vmem:[#allocation28_spill] sm:$0xff] }
 0x66f   : > { %4265 = vmatpush.msrb.mxu3 %v8891_v61  ;;  %4124 = vmatpush.msra.mxu2 %v8604_v52 }
 0x670   : > { %4176 = vmatpush.msra.mxu1 %v8885_v42  ;;  %4713 = vmatpush.msrb.mxu0 %v8651_v57  ;;  %v4305_v26 = vsel %vm4051_vm7, %v4302_v31, %v4304_v12 }
 0x671   : > { %4234 = vmatpush.msrb.mxu2 %v8637_v0  ;;  %4266 = vmatpush.msrb.mxu3 %v8911_v62 }
 0x672   : > { %4177 = vmatpush.msra.mxu1 %v8904_v44  ;;  %5880 = vmatmul.msk.f32.vlgmr.msra.gmra.mxu0 %vm3791_vm8, %v9003_v50 }
 0x673   : > { %4366 = vmatpush.msra.mxu3 %v8560_v20  ;;  %5837 = vmatmul.msk.f32.gmra.mxu1 %vm3791_vm8, %v8675_v36  ;;  %v10356_v20 = vld [vmem:[#allocation22_spill] sm:$0xff] }
 0x674   : > { %5839 = vmatmul.msk.f32.gmra.mxu2 %vm3791_vm8, %v9105_v6  ;;  %4178 = vmatpush.msra.mxu1 %v8918_v5 }
 0x675   : > { %4367 = vmatpush.msra.mxu3 %v8566_v18  ;;  %4235 = vmatpush.msrb.mxu2 %v8651_v57  ;;  %v10357_v18 = vld [vmem:[#allocation43_spill] sm:$0xff] }
 0x676   : > { %5847 = vmatmul.msk.f32.gmra.mxu3 %vm3791_vm8, %v4136_v48  ;;  %4179 = vmatpush.msra.mxu1 %v8930_v35  ;;  %v10371_v48 = vld [vmem:[#allocation34_spill] sm:$0xff] }
 0x677   : > { %4368 = vmatpush.msra.mxu3 %v8572_v60  ;;  %4236 = vmatpush.msrb.mxu2 %v8666_v33  ;;  %v10358_v60 = vld [vmem:[#allocation2_spill] sm:$0xff] }
 0x678   : > { %4180 = vmatpush.msra.mxu1 %v8937_v43  ;;  %4714 = vmatpush.msrb.mxu0 %v8666_v33 }
 0x679   : > { %4369 = vmatpush.msra.mxu3 %v8581_v17  ;;  %4237 = vmatpush.msrb.mxu2 %v8686_v23  ;;  %v10360_v17 = vld [vmem:[#allocation26_spill] sm:$0xff] }
 0x67a   : > { %4181 = vmatpush.msra.mxu1 %v8945_v47  ;;  %4715 = vmatpush.msrb.mxu0 %v8686_v23 }
 0x67b   : > { %5842 = vmatmul.msk.f32.vlgmr.msrb.gmra.mxu1 %vm3791_vm8, %v8953_v41  ;;  %4370 = vmatpush.msra.mxu3 %v8586_v34  ;;  %v10359_v41 = vld [vmem:[#allocation32_spill] sm:$0xff]  ;;  %v10361_v34 = vld [vmem:[#allocation42_spill] sm:$0xff] }
 0x67c   : > { %5844 = vmatmul.msk.f32.vlgmr.msra.gmra.mxu2 %vm3791_vm8, %v8704_v2  ;;  %4199 = vmatpush.msrb.mxu1 %v10356_v20 }
 0x67d   : > { %4238 = vmatpush.msrb.mxu2 %v10357_v18  ;;  %5881 = vmatmul.msk.f32.gmra.mxu0 %vm3791_vm8, %v9029_v45 }
 0x67e   : > { %5854 = vmatmul.msk.f32.vlgmr.msrb.gmra.mxu3 %vm3791_vm8, %v9070_v63  ;;  %4200 = vmatpush.msrb.mxu1 %v10358_v60 }
 0x67f   : > { %4371 = vmatpush.msra.mxu3 %v8592_v39  ;;  %4239 = vmatpush.msrb.mxu2 %v10359_v41  ;;  %v10363_v39 = vld [vmem:[#allocation21_spill] sm:$0xff] }
 0x680   : > { %4201 = vmatpush.msrb.mxu1 %v10360_v17  ;;  %4716 = vmatpush.msrb.mxu0 %v10357_v18 }
 0x681   : > { %4372 = vmatpush.msra.mxu3 %v8598_v32  ;;  %4240 = vmatpush.msrb.mxu2 %v10361_v34  ;;  %v10365_v32 = vld [vmem:[#allocation35_spill] sm:$0xff] }
 0x682   : > { %4202 = vmatpush.msrb.mxu1 %v10362_v53  ;;  %4717 = vmatpush.msrb.mxu0 %v10359_v41 }
 0x683   : > { %5843 = vmatmul.msk.f32.gmra.mxu1 %vm3791_vm8, %v8978_v40  ;;  %4373 = vmatpush.msra.mxu3 %v8604_v52  ;;  %v4218_v40 = vrot.slane %v9029_v45, 1  ;;  %v10366_v52 = vld [vmem:[#allocation20_spill] sm:$0xff] }
 0x684   : > { %5845 = vmatmul.msk.f32.gmra.mxu2 %vm3791_vm8, %v8764_v27  ;;  %4203 = vmatpush.msrb.mxu1 %v10363_v39  ;;  %v10369_v27 = vld [vmem:[#allocation7_spill] sm:$0xff] }
 0x685   : > { %4241 = vmatpush.msrb.mxu2 %v10364_v29  ;;  %4464 = vmatpush.msrb.mxu3 %v8637_v0  ;;  %v4301_v0 = vrot.slane %v8704_v2, 5  ;;  %v9171_v51 = vsel %vm1892_vm5, %v4217_v46, %v4218_v40  ;;  %v4220_v2 = vrot.slane %v9073_v21, 1  ;;  %v10372_v21 = vld [vmem:[#allocation36_spill] sm:$0xff] }
 0x686   : > { %5855 = vmatmul.msk.f32.gmra.mxu3 %vm3791_vm8, %v9105_v6  ;;  %4204 = vmatpush.msrb.mxu1 %v10365_v32 }
 0x687   : > { %4343 = vmatpush.msra.mxu2 %v8500_v9  ;;  %4465 = vmatpush.msrb.mxu3 %v8651_v57  ;;  %v10368_v57 = vld [vmem:[#allocation3_spill] sm:$0xff] }
 0x688   : > { %4205 = vmatpush.msrb.mxu1 %v10366_v52  ;;  %4718 = vmatpush.msrb.mxu0 %v10361_v34 }
 0x689   : > { %4344 = vmatpush.msra.mxu2 %v8505_v15  ;;  %4466 = vmatpush.msrb.mxu3 %v8666_v33  ;;  %v4303_v33 = vsel %vm4051_vm7, %v4301_v0, %v4302_v31 }
 0x68a   : > { %4206 = vmatpush.msrb.mxu1 %v10367_v4  ;;  %4719 = vmatpush.msrb.mxu0 %v10364_v29 }
 0x68b   : > { %5848 = vmatmul.msk.f32.vlgmr.msra.gmra.mxu1 %vm3791_vm8, %v9003_v50  ;;  %4345 = vmatpush.msra.mxu2 %v8517_v3 }
 0x68c   : > { %5852 = vmatmul.msk.f32.vlgmr.msrb.gmra.mxu2 %vm3791_vm8, %v9171_v51  ;;  %4318 = vmatpush.msra.mxu1 %v10368_v57 }
 0x68d   : > { %4467 = vmatpush.msrb.mxu3 %v8686_v23  ;;  %5888 = vmatmul.msk.f32.vlgmr.msrb.gmra.mxu0 %vm3791_vm8, %v4303_v33  ;;  %v9195_v23 = vsel %vm1892_vm5, %v4218_v40, %v4220_v2  ;;  %v10395_v40 = vld [vmem:[#allocation45_spill] sm:$0xff] }
 0x68e   : > { %5862 = vmatmul.msk.f32.vlgmr.msra.gmra.mxu3 %vm3791_vm8, %v8921_v1  ;;  %4319 = vmatpush.msra.mxu1 %v10369_v27 }
 0x68f   : > { %4346 = vmatpush.msra.mxu2 %v8531_v8  ;;  %4468 = vmatpush.msrb.mxu3 %v10357_v18  ;;  %v10373_v18 = vld [vmem:[#allocation10_spill] sm:$0xff] }
 0x690   : > { %4320 = vmatpush.msra.mxu1 %v10370_v13 }
 0x691   : > { %4347 = vmatpush.msra.mxu2 %v8536_v37  ;;  %4469 = vmatpush.msrb.mxu3 %v10359_v41  ;;  %v10374_v41 = vld [vmem:[#allocation48_spill] sm:$0xff] }
 0x692   : > { %4321 = vmatpush.msra.mxu1 %v10371_v48 }
 0x693   : > { %5849 = vmatmul.msk.f32.gmra.mxu1 %vm3791_vm8, %v9029_v45  ;;  %4348 = vmatpush.msra.mxu2 %v8542_v59 }
 0x694   : > { %5853 = vmatmul.msk.f32.gmra.mxu2 %vm3791_vm8, %v9195_v23  ;;  %4470 = vmatpush.msrb.mxu3 %v10361_v34  ;;  %v10375_v34 = vld [vmem:[#allocation13_spill] sm:$0xff] }
 0x695   : > { %4322 = vmatpush.msra.mxu1 %v10372_v21  ;;  %5889 = vmatmul.msk.f32.gmra.mxu0 %vm3791_vm8, %v4305_v26 }
 0x696   : > { %5863 = vmatmul.msk.f32.gmra.mxu3 %vm3791_vm8, %v8955_v7  ;;  %4349 = vmatpush.msra.mxu2 %v8548_v28 }
 0x697   : > { %4471 = vmatpush.msrb.mxu3 %v10364_v29  ;;  %4323 = vmatpush.msra.mxu1 %v10373_v18  ;;  %v10393_v29 = vld [vmem:[#allocation12_spill] sm:$0xff] }
 0x698   : > { %4350 = vmatpush.msra.mxu2 %v8555_v55 }
 0x699   : > { %4591 = vmatpush.msra.mxu3 %v8500_v9  ;;  %4324 = vmatpush.msra.mxu1 %v10374_v41 }
 0x69a   : > { %4439 = vmatpush.msrb.mxu2 %v10356_v20 }
 0x69b   : > { %4592 = vmatpush.msra.mxu3 %v8505_v15  ;;  %5850 = vmatmul.msk.f32.vlgmr.msrb.gmra.mxu1 %vm3791_vm8, %v8964_v14  ;;  %v10376_v15 = vld [vmem:[#allocation6_spill] sm:$0xff] }
 0x69c   : > { %5860 = vmatmul.msk.f32.vlgmr.msra.gmra.mxu2 %vm3791_vm8, %v9003_v50  ;;  %4325 = vmatpush.msra.mxu1 %v10375_v34  ;;  %v10382_v50 = vld [vmem:[#allocation37_spill] sm:$0xff] }
 0x69d   : > { %4440 = vmatpush.msrb.mxu2 %v10358_v60  ;;  %4593 = vmatpush.msra.mxu3 %v8517_v3 }
 0x69e   : > { %4414 = vmatpush.msrb.mxu1 %v8839_v38  ;;  %5870 = vmatmul.msk.f32.vlgmr.msrb.gmra.mxu3 %vm3791_vm8, %v8619_v24 }
 0x69f   : > { %4441 = vmatpush.msrb.mxu2 %v10360_v17  ;;  %4594 = vmatpush.msra.mxu3 %v8531_v8  ;;  %v10377_v8 = vld [vmem:[#allocation38_spill] sm:$0xff] }
 0x6a0   : > { %4415 = vmatpush.msrb.mxu1 %v8867_v30 }
 0x6a1   : > { %4442 = vmatpush.msrb.mxu2 %v10362_v53  ;;  %4595 = vmatpush.msra.mxu3 %v8536_v37  ;;  %v10378_v37 = vld [vmem:[#allocation46_spill] sm:$0xff] }
 0x6a2   : > { %4416 = vmatpush.msrb.mxu1 %v8885_v42 }
 0x6a3   : > { %4443 = vmatpush.msrb.mxu2 %v10363_v39  ;;  %5851 = vmatmul.msk.f32.gmra.mxu1 %vm3791_vm8, %v8991_v49 }
 0x6a4   : > { %5861 = vmatmul.msk.f32.gmra.mxu2 %vm3791_vm8, %v9029_v45  ;;  %4596 = vmatpush.msra.mxu3 %v8542_v59  ;;  %v10379_v59 = vld [vmem:[#allocation44_spill] sm:$0xff] }
 0x6a5   : > { %4417 = vmatpush.msrb.mxu1 %v8904_v44  ;;  %4444 = vmatpush.msrb.mxu2 %v10365_v32 }
 0x6a6   : > { %5871 = vmatmul.msk.f32.gmra.mxu3 %vm3791_vm8, %v8670_v25 }
 0x6a7   : > { %4418 = vmatpush.msrb.mxu1 %v8918_v5  ;;  %4597 = vmatpush.msra.mxu3 %v8548_v28  ;;  %v4549_v28 = vrot.slane %v8921_v1, 5  ;;  %v10381_v1 = vld [vmem:[#allocation47_spill] sm:$0xff] }
 0x6a8   : > { %4445 = vmatpush.msrb.mxu2 %v10366_v52  ;;  %v9246_v9 = vpop.f32.mrf.mxu1 }
 0x6a9   : > { %4419 = vmatpush.msrb.mxu1 %v8930_v35  ;;  %4598 = vmatpush.msra.mxu3 %v8555_v55  ;;  %v4550_v55 = vrot.slane %v8955_v7, 5 }
 0x6aa   : > { %4446 = vmatpush.msrb.mxu2 %v10367_v4 }
 0x6ab   : > { %4687 = vmatpush.msrb.mxu3 %v10356_v20  ;;  %4420 = vmatpush.msrb.mxu1 %v8937_v43  ;;  %v9293_v7 = vsel %vm4051_vm7, %v4549_v28, %v4550_v55  ;;  %v10387_v20 = vld [vmem:[#allocation8_spill] sm:$0xff] }
 0x6ac   : > { %5858 = vmatmul.msk.f32.vlgmr.msra.gmra.mxu1 %vm3791_vm8, %v4303_v33  ;;  %5868 = vmatmul.msk.f32.vlgmr.msrb.gmra.mxu2 %vm3791_vm8, %v9070_v63 }
 0x6ad   : > { %4566 = vmatpush.msra.mxu2 %v10368_v57  ;;  %4688 = vmatpush.msrb.mxu3 %v10358_v60 }
 0x6ae   : > { %4421 = vmatpush.msrb.mxu1 %v8945_v47  ;;  %5878 = vmatmul.msk.f32.vlgmr.msra.gmra.mxu3 %vm3791_vm8, %v8964_v14  ;;  %v10380_v14 = vld [vmem:[#allocation40_spill] sm:$0xff] }
 0x6af   : > { %4567 = vmatpush.msra.mxu2 %v10369_v27  ;;  %4689 = vmatpush.msrb.mxu3 %v10360_v17  ;;  %v10391_v17 = vld [vmem:[#allocation25_spill] sm:$0xff] }
 0x6b0   : > { %4532 = vmatpush.msra.mxu1 %v10376_v15  ;;  %v9264_v3 = vpop.f32.mrf.mxu1 }
 0x6b1   : > { %4568 = vmatpush.msra.mxu2 %v10370_v13  ;;  %4690 = vmatpush.msrb.mxu3 %v10362_v53 }
 0x6b2   : > { %4533 = vmatpush.msra.mxu1 %v10377_v8 }
 0x6b3   : > { %4569 = vmatpush.msra.mxu2 %v10371_v48  ;;  %4691 = vmatpush.msrb.mxu3 %v10363_v39  ;;  %v10392_v39 = vld [vmem:[#allocation14_spill] sm:$0xff] }
 0x6b4   : > { %5859 = vmatmul.msk.f32.gmra.mxu1 %vm3791_vm8, %v4305_v26  ;;  %5869 = vmatmul.msk.f32.gmra.mxu2 %vm3791_vm8, %v9105_v6 }
 0x6b5   : > { %4534 = vmatpush.msra.mxu1 %v10378_v37  ;;  %4570 = vmatpush.msra.mxu2 %v10372_v21 }
 0x6b6   : > { %4692 = vmatpush.msrb.mxu3 %v10365_v32  ;;  %v10394_v32 = vld [vmem:[#allocation11_spill] sm:$0xff] }
 0x6b7   : > { %5879 = vmatmul.msk.f32.gmra.mxu3 %vm3791_vm8, %v8991_v49  ;;  %4535 = vmatpush.msra.mxu1 %v10379_v59 }
 0x6b8   : > { %4571 = vmatpush.msra.mxu2 %v10373_v18  ;;  %4693 = vmatpush.msrb.mxu3 %v10366_v52  ;;  %v3844_v45 = vpop.f32.mrf.mxu1 }
 0x6b9   : > { %4536 = vmatpush.msra.mxu1 %v10380_v14 }
 0x6ba   : > { %4572 = vmatpush.msra.mxu2 %v10374_v41  ;;  %4694 = vmatpush.msrb.mxu3 %v10367_v4 }
 0x6bb   : > { %4537 = vmatpush.msra.mxu1 %v8495_v19 }
 0x6bc   : > { %4796 = vmatpush.msra.mxu3 %v10368_v57  ;;  %5866 = vmatmul.msk.f32.vlgmr.msrb.gmra.mxu1 %vm3791_vm8, %v9067_v16  ;;  %v4552_v16 = vrot.slane %v8980_v56, 5 }
 0x6bd   : > { %4573 = vmatpush.msra.mxu2 %v10375_v34  ;;  %4538 = vmatpush.msra.mxu1 %v8512_v10 }
 0x6be   : > { %5876 = vmatmul.msk.f32.vlgmr.msra.gmra.mxu2 %vm3791_vm8, %v9293_v7  ;;  %4797 = vmatpush.msra.mxu3 %v10369_v27 }
 0x6bf   : > { %4662 = vmatpush.msrb.mxu2 %v8839_v38  ;;  %5886 = vmatmul.msk.f32.vlgmr.msrb.gmra.mxu3 %vm3791_vm8, %v8619_v24  ;;  %v4553_v24 = vsel %vm4051_vm7, %v4550_v55, %v4552_v16  ;;  %v10383_v38 = vld [vmem:[#allocation9_spill] sm:$0xff] }
 0x6c0   : > { %4539 = vmatpush.msra.mxu1 %v8524_v54  ;;  %v3847_v49 = vpop.f32.mrf.mxu1  ;;  %4798 = vmatpush.msra.mxu3 %v10370_v13 }
 0x6c1   : > { %4663 = vmatpush.msrb.mxu2 %v8867_v30  ;;  %v3845_v30 = vadd.f32 %v3844_v45, %v9246_v9  ;;  %v3848_v60 = vadd.f32 %v3847_v49, %v9264_v3 }
 0x6c2   : > { %4637 = vmatpush.msrb.mxu1 %v10381_v1  ;;  %4799 = vmatpush.msra.mxu3 %v10371_v48  ;;  %v4293_v1 = vpop.f32.mrf.mxu0 }
 0x6c3   : > { %4664 = vmatpush.msrb.mxu2 %v8885_v42  ;;  %v10384_v42 = vld [vmem:[#allocation30_spill] sm:$0xff] }
 0x6c4   : > { %4638 = vmatpush.msrb.mxu1 %v10382_v50  ;;  %4800 = vmatpush.msra.mxu3 %v10372_v21 }
 0x6c5   : > { %5867 = vmatmul.msk.f32.gmra.mxu1 %vm3791_vm8, %v8675_v36  ;;  %4665 = vmatpush.msrb.mxu2 %v8904_v44  ;;  %v10385_v44 = vld [vmem:[#allocation29_spill] sm:$0xff] }
 0x6c6   : > { %5877 = vmatmul.msk.f32.gmra.mxu2 %vm3791_vm8, %v4553_v24  ;;  %4639 = vmatpush.msrb.mxu1 %v10383_v38  ;;  %v4842_v38 = vld [vmem:[%s9907_s9 + $0x78] sm:$0xff] }
 0x6c7   : > { %4666 = vmatpush.msrb.mxu2 %v8918_v5  ;;  %5887 = vmatmul.msk.f32.gmra.mxu3 %vm3791_vm8, %v8670_v25  ;;  %v10386_v5 = vld [vmem:[#allocation16_spill] sm:$0xff]  ;;  %v10389_v25 = vld [vmem:[#allocation23_spill] sm:$0xff] }
 0x6c8   : > { %4640 = vmatpush.msrb.mxu1 %v10384_v42  ;;  %4801 = vmatpush.msra.mxu3 %v10373_v18  ;;  %v3877_v36 = vpop.f32.mrf.mxu1 }
 0x6c9   : > { %4667 = vmatpush.msrb.mxu2 %v8930_v35  ;;  %v3883_v56 = vadd.f32 %v3877_v36, %v3845_v30  ;;  %v10388_v35 = vld [vmem:[#allocation19_spill] sm:$0xff]  ;;  %4843 = vmatpush.msra.mxu0 %v4842_v38  ;;  %v5919_v38 = vld [vmem:[%s9907_s9 + $0x138] sm:$0xff] }
 0x6ca   : > { %4641 = vmatpush.msrb.mxu1 %v10385_v44  ;;  %4802 = vmatpush.msra.mxu3 %v10374_v41 }
 0x6cb   : > { %4668 = vmatpush.msrb.mxu2 %v8937_v43  ;;  %v10390_v43 = vld [vmem:[#allocation17_spill] sm:$0xff] }
 0x6cc   : > { %4642 = vmatpush.msrb.mxu1 %v10386_v5  ;;  %4803 = vmatpush.msra.mxu3 %v10375_v34  ;;  %v4841_v5 = vld [vmem:[%s9907_s9 + $0x70] sm:$0xff] }
 0x6cd   : > { %5874 = vmatmul.msk.f32.vlgmr.msra.gmra.mxu1 %vm3791_vm8, %v10387_v20  ;;  %4669 = vmatpush.msrb.mxu2 %v8945_v47 }
 0x6ce   : > { %5884 = vmatmul.msk.f32.vlgmr.msrb.gmra.mxu2 %vm3791_vm8, %v9070_v63  ;;  %4643 = vmatpush.msrb.mxu1 %v10388_v35 }
 0x6cf   : > { %4762 = vmatpush.msra.mxu2 %v10376_v15  ;;  %5894 = vmatmul.msk.f32.vlgmr.msra.gmra.mxu3 %vm3791_vm8, %v10390_v43 }
 0x6d0   : > { %4644 = vmatpush.msrb.mxu1 %v10389_v25  ;;  %v3880_v47 = vpop.f32.mrf.mxu1  ;;  %v4296_v25 = vpop.f32.mrf.mxu0  ;;  %4844 = vmatpush.msra.mxu0 %v4841_v5  ;;  %v5902_v5 = vld [vmem:[%s9907_s9 + $0xb0] sm:$0xff] }
 0x6d1   : > { %4763 = vmatpush.msra.mxu2 %v10377_v8  ;;  %v3884_v53 = vadd.f32 %v3880_v47, %v3848_v60  ;;  %v3974_v63 = vpop.f32.mrf.mxu3  ;;  %v4839_v60 = vld [vmem:[%s9907_s9 + $0x60] sm:$0xff]  ;;  %v4838_v47 = vld [vmem:[%s9907_s9 + $0x58] sm:$0xff] }
 0x6d2   : > { %4737 = vmatpush.msra.mxu1 %v10391_v17 }
 0x6d3   : > { %4764 = vmatpush.msra.mxu2 %v10378_v37 }
 0x6d4   : > { %4738 = vmatpush.msra.mxu1 %v10392_v39 }
 0x6d5   : > { %5875 = vmatmul.msk.f32.gmra.mxu1 %vm3791_vm8, %v9089_v58  ;;  %4765 = vmatpush.msra.mxu2 %v10379_v59 }
 0x6d6   : > { %5885 = vmatmul.msk.f32.gmra.mxu2 %vm3791_vm8, %v9105_v6  ;;  %4739 = vmatpush.msra.mxu1 %v10393_v29 }
 0x6d7   : > { %4766 = vmatpush.msra.mxu2 %v10380_v14  ;;  %5895 = vmatmul.msk.f32.gmra.mxu3 %vm3791_vm8, %v9092_v11 }
 0x6d8   : > { %4740 = vmatpush.msra.mxu1 %v10394_v32  ;;  %v3908_v46 = vpop.f32.mrf.mxu1  ;;  %v4837_v32 = vld [vmem:[%s9907_s9 + $0x50] sm:$0xff] }
 0x6d9   : > { %4767 = vmatpush.msra.mxu2 %v8495_v19  ;;  %v3914_v31 = vadd.f32 %v3908_v46, %v3883_v56  ;;  %v3977_v52 = vpop.f32.mrf.mxu3  ;;  %v5911_v46 = vld [vmem:[%s9907_s9 + $0xf8] sm:$0xff] }
 0x6da   : > { %4741 = vmatpush.msra.mxu1 %v10395_v40  ;;  %v5927_v40 = vld [vmem:[%s9907_s9 + $0x178] sm:$0xff] }
 0x6db   : > { %4768 = vmatpush.msra.mxu2 %v8512_v10 }
 0x6dc   : > { %4742 = vmatpush.msra.mxu1 %v8859_v22 }
 0x6dd   : > { %5882 = vmatmul.msk.f32.vlgmr.msrb.gmra.mxu1 %vm3791_vm8, %v9171_v51  ;;  %4769 = vmatpush.msra.mxu2 %v8524_v54 }
 0x6de   : > { %5892 = vmatmul.msk.f32.vlgmr.msra.gmra.mxu2 %vm3791_vm8, %v9293_v7  ;;  %4743 = vmatpush.msra.mxu1 %v8891_v61  ;;  %v3939_v19 = vpop.f32.mrf.mxu2 }
 0x6df   : > { %v3945_v11 = vadd.f32 %v3939_v19, %v3914_v31  ;;  %v5943_v19 = vld [vmem:[%s9907_s9 + $0x1f8] sm:$0xff]  ;;  %4924 = vmatpush.msrb.mxu2 %v5927_v40  ;;  %v5916_v40 = vld [vmem:[%s9907_s9 + $0x120] sm:$0xff] }
 0x6e0   : > { %4744 = vmatpush.msra.mxu1 %v8911_v62  ;;  %v3911_v6 = vpop.f32.mrf.mxu1  ;;  %4964 = vmatpush.msrb.mxu3 %v5943_v19  ;;  %v5958_v19 = vld [vmem:[%s9907_s9 + $0x270] sm:$0xff] }
 0x6e1   : > { %v3915_v0 = vadd.f32 %v3911_v6, %v3884_v53  ;;  %v4078_v4 = vpop.f32.mrf.mxu3  ;;  %v3980_v10 = vadd.f32 %v3974_v63, %v3945_v11  ;;  %v4836_v11 = vld [vmem:[%s9907_s9 + $0x48] sm:$0xff]  ;;  %v5910_v6 = vld [vmem:[%s9907_s9 + $0xf0] sm:$0xff] }
 0x6e2   : > { %4884 = vmatpush.msrb.mxu1 %v5911_v46 }
 0x6e4   : > { %4885 = vmatpush.msrb.mxu1 %v5910_v6  ;;  %v5915_v6 = vld [vmem:[%s9907_s9 + $0x118] sm:$0xff] }
 0x6e5   : > { %5883 = vmatmul.msk.f32.gmra.mxu1 %vm3791_vm8, %v9195_v23 }
 0x6e6   : > { %5893 = vmatmul.msk.f32.gmra.mxu2 %vm3791_vm8, %v4553_v24 }
 0x6e7   : > { %v3942_v22 = vpop.f32.mrf.mxu2 }
 0x6e8   : > { %v3946_v54 = vadd.f32 %v3942_v22, %v3915_v0  ;;  %v4008_v51 = vpop.f32.mrf.mxu1  ;;  %v4835_v22 = vld [vmem:[%s9907_s9 + $0x40] sm:$0xff] }
 0x6e9   : > { %v4081_v57 = vpop.f32.mrf.mxu3  ;;  %v4014_v2 = vadd.f32 %v4008_v51, %v3980_v10  ;;  %v5942_v10 = vld [vmem:[%s9907_s9 + $0x1f0] sm:$0xff]  ;;  %v5925_v51 = vld [vmem:[%s9907_s9 + $0x168] sm:$0xff] }
 0x6ea   : > { %v3981_v33 = vadd.f32 %v3977_v52, %v3946_v54  ;;  %v9408_v52 = vpop.f32.mrf.mxu0  ;;  %v5909_v54 = vld [vmem:[%s9907_s9 + $0xe8] sm:$0xff]  ;;  %4965 = vmatpush.msrb.mxu3 %v5942_v10 }
 0x6eb   : > { %4886 = vmatpush.msrb.mxu1 %v5909_v54  ;;  %v5957_v54 = vld [vmem:[%s9907_s9 + $0x268] sm:$0xff] }
 0x6ed   : > { %5890 = vmatmul.msk.f32.vlgmr.msra.gmra.mxu1 %vm3791_vm8, %v10387_v20  ;;  %v4840_v20 = vld [vmem:[%s9907_s9 + $0x68] sm:$0xff] }
 0x6ee   : > { %4845 = vmatpush.msra.mxu0 %v4840_v20 }
 0x6ef   : > { %v4043_v62 = vpop.f32.mrf.mxu2 }
 0x6f0   : > { %v4049_v61 = vadd.f32 %v4043_v62, %v4014_v2  ;;  %v4011_v27 = vpop.f32.mrf.mxu1  ;;  %4846 = vmatpush.msra.mxu0 %v4839_v60  ;;  %v4834_v2 = vld [vmem:[%s9907_s9 + $0x38] sm:$0xff]  ;;  %v5908_v62 = vld [vmem:[%s9907_s9 + $0xe0] sm:$0xff] }
 0x6f1   : > { %v4015_v13 = vadd.f32 %v4011_v27, %v3981_v33  ;;  %v4158_v48 = vpop.f32.mrf.mxu3  ;;  %v5940_v27 = vld [vmem:[%s9907_s9 + $0x1e0] sm:$0xff]  ;;  %4887 = vmatpush.msrb.mxu1 %v5908_v62 }
 0x6f2   : > { %v9370_v12 = vadd.f32 %v4078_v4, %v4049_v61  ;;  %4847 = vmatpush.msra.mxu0 %v4838_v47  ;;  %v5926_v4 = vld [vmem:[%s9907_s9 + $0x170] sm:$0xff]  ;;  %v5924_v61 = vld [vmem:[%s9907_s9 + $0x160] sm:$0xff]  ;;  %v5917_v47 = vld [vmem:[%s9907_s9 + $0x128] sm:$0xff] }
 0x6f3   : > { %4925 = vmatpush.msrb.mxu2 %v5926_v4  ;;  %v4827_v60 = vld [vmem:[%s9907_s9] sm:$0xff] }
 0x6f4   : > { %4848 = vmatpush.msra.mxu0 %v4837_v32  ;;  %v5900_v32 = vld [vmem:[%s9907_s9 + $0xa0] sm:$0xff] }
 0x6f5   : > { %5891 = vmatmul.msk.f32.gmra.mxu1 %vm3791_vm8, %v9089_v58  ;;  %4926 = vmatpush.msrb.mxu2 %v5925_v51  ;;  %v5898_v51 = vld [vmem:[%s9907_s9 + $0x90] sm:$0xff]  ;;  %v5956_v62 = vld [vmem:[%s9907_s9 + $0x260] sm:$0xff] }
 0x6f6   : > { %4849 = vmatpush.msra.mxu0 %v4836_v11  ;;  %v5899_v11 = vld [vmem:[%s9907_s9 + $0x98] sm:$0xff] }
 0x6f7   : > { %v4046_v23 = vpop.f32.mrf.mxu2  ;;  %4927 = vmatpush.msrb.mxu2 %v5924_v61 }
 0x6f8   : > { %v4050_v26 = vadd.f32 %v4046_v23, %v4015_v13  ;;  %v4103_v21 = vpop.f32.mrf.mxu1  ;;  %4850 = vmatpush.msra.mxu0 %v4835_v22  ;;  %v4833_v13 = vld [vmem:[%s9907_s9 + $0x30] sm:$0xff]  ;;  %v5931_v22 = vld [vmem:[%s9907_s9 + $0x198] sm:$0xff] }
 0x6f9   : > { %v4161_v41 = vpop.f32.mrf.mxu3 }
 0x6fa   : > { %v9374_v18 = vadd.f32 %v4081_v57, %v4050_v26  ;;  %v5941_v57 = vld [vmem:[%s9907_s9 + $0x1e8] sm:$0xff]  ;;  %4851 = vmatpush.msra.mxu0 %v4834_v2  ;;  %v5930_v2 = vld [vmem:[%s9907_s9 + $0x190] sm:$0xff] }
 0x6fb   : > { %4966 = vmatpush.msrb.mxu3 %v5941_v57  ;;  %v5914_v57 = vld [vmem:[%s9907_s9 + $0x110] sm:$0xff] }
 0x6fc   : > { %4852 = vmatpush.msra.mxu0 %v4833_v13  ;;  %v5913_v13 = vld [vmem:[%s9907_s9 + $0x108] sm:$0xff] }
 0x6fd   : > { %4967 = vmatpush.msrb.mxu3 %v5940_v27  ;;  %v5897_v27 = vld [vmem:[%s9907_s9 + $0x88] sm:$0xff] }
 0x6ff   : > { %v4126_v34 = vpop.f32.mrf.mxu2 }
 0x700   : > { %v4127_v9 = vadd.f32 %v4126_v34, %v4103_v21  ;;  %v4106_v15 = vpop.f32.mrf.mxu1  ;;  %v5923_v21 = vld [vmem:[%s9907_s9 + $0x158] sm:$0xff]  ;;  %v4832_v34 = vld [vmem:[%s9907_s9 + $0x28] sm:$0xff] }
 0x701   : > { %v4268_v8 = vpop.f32.mrf.mxu3  ;;  %4928 = vmatpush.msrb.mxu2 %v5923_v21  ;;  %4853 = vmatpush.msra.mxu0 %v4832_v34  ;;  %v5955_v21 = vld [vmem:[%s9907_s9 + $0x258] sm:$0xff]  ;;  %v5912_v34 = vld [vmem:[%s9907_s9 + $0x100] sm:$0xff] }
 0x702   : > { %v4164_v3 = vadd.f32 %v4158_v48, %v4127_v9  ;;  %v5907_v48 = vld [vmem:[%s9907_s9 + $0xd8] sm:$0xff]  ;;  %v5906_v9 = vld [vmem:[%s9907_s9 + $0xd0] sm:$0xff] }
 0x703   : > { %4888 = vmatpush.msrb.mxu1 %v5907_v48  ;;  %v5929_v48 = vld [vmem:[%s9907_s9 + $0x188] sm:$0xff] }
 0x705   : > { %4889 = vmatpush.msrb.mxu1 %v5906_v9  ;;  %v5928_v9 = vld [vmem:[%s9907_s9 + $0x180] sm:$0xff] }
 0x707   : > { %v4129_v37 = vpop.f32.mrf.mxu2 }
 0x708   : > { %v4130_v59 = vadd.f32 %v4129_v37, %v4106_v15  ;;  %v4183_v28 = vpop.f32.mrf.mxu1 }
 0x709   : > { %v4189_v45 = vadd.f32 %v4183_v28, %v4164_v3  ;;  %v4271_v16 = vpop.f32.mrf.mxu3  ;;  %v5922_v3 = vld [vmem:[%s9907_s9 + $0x150] sm:$0xff]  ;;  %v5905_v28 = vld [vmem:[%s9907_s9 + $0xc8] sm:$0xff] }
 0x70a   : > { %v4165_v55 = vadd.f32 %v4161_v41, %v4130_v59  ;;  %v5939_v41 = vld [vmem:[%s9907_s9 + $0x1d8] sm:$0xff]  ;;  %v4831_v59 = vld [vmem:[%s9907_s9 + $0x20] sm:$0xff]  ;;  %4929 = vmatpush.msrb.mxu2 %v5922_v3  ;;  %4890 = vmatpush.msrb.mxu1 %v5905_v28  ;;  %v5954_v3 = vld [vmem:[%s9907_s9 + $0x250] sm:$0xff] }
 0x70b   : > { %4968 = vmatpush.msrb.mxu3 %v5939_v41  ;;  %4854 = vmatpush.msra.mxu0 %v4831_v59  ;;  %v5896_v41 = vld [vmem:[%s9907_s9 + $0x80] sm:$0xff]  ;;  %v5991_v59 = vld [vmem:[%s9907_s9 + $0x378] sm:$0xff] }
 0x70f   : > { %v4243_v14 = vpop.f32.mrf.mxu2 }
 0x710   : > { %v4186_v7 = vpop.f32.mrf.mxu1 }
 0x711   : > { %v4190_v58 = vadd.f32 %v4186_v7, %v4165_v55  ;;  %v9379_v42 = vpop.f32.mrf.mxu3  ;;  %v9489_v55 = vpop.f32.mrf.mxu0 }
 0x717   : > { %v4246_v49 = vpop.f32.mrf.mxu2 }
 0x718   : > { %v4208_v50 = vpop.f32.mrf.mxu1 }
 0x719   : > { %v4214_v24 = vadd.f32 %v4208_v50, %v4189_v45  ;;  %v9395_v53 = vpop.f32.mrf.mxu3  ;;  %v5921_v45 = vld [vmem:[%s9907_s9 + $0x148] sm:$0xff]  ;;  %v4829_v50 = vld [vmem:[%s9907_s9 + $0x10] sm:$0xff]  ;;  %v9559_v46 = vpop.f32.mrf.mxu0 }
 0x71a   : > { %4930 = vmatpush.msrb.mxu2 %v5921_v45  ;;  %v6007_v45 = vld [vmem:[%s9907_s9 + $0x3f8] sm:$0xff] }
 0x71b   : > { %v4249_v30 = vadd.f32 %v4243_v14, %v4214_v24  ;;  %v5937_v14 = vld [vmem:[%s9907_s9 + $0x1c8] sm:$0xff]  ;;  %v5903_v24 = vld [vmem:[%s9907_s9 + $0xb8] sm:$0xff] }
 0x71d   : > { %v4274_v36 = vadd.f32 %v4268_v8, %v4249_v30  ;;  %v5938_v8 = vld [vmem:[%s9907_s9 + $0x1d0] sm:$0xff]  ;;  %v5935_v30 = vld [vmem:[%s9907_s9 + $0x1b8] sm:$0xff] }
 0x71e   : > { %4969 = vmatpush.msrb.mxu3 %v5938_v8  ;;  %v5975_v8 = vld [vmem:[%s9907_s9 + $0x2f8] sm:$0xff] }
 0x71f   : > { %v9381_v44 = vpop.f32.mrf.mxu2  ;;  %v4299_v56 = vadd.f32 %v4293_v1, %v4274_v36  ;;  %v5920_v1 = vld [vmem:[%s9907_s9 + $0x140] sm:$0xff] }
 0x720   : > { %v4211_v35 = vpop.f32.mrf.mxu1  ;;  %4970 = vmatpush.msrb.mxu3 %v5937_v14  ;;  %4931 = vmatpush.msrb.mxu2 %v5920_v1  ;;  %v5953_v14 = vld [vmem:[%s9907_s9 + $0x248] sm:$0xff]  ;;  %v6006_v1 = vld [vmem:[%s9907_s9 + $0x3f0] sm:$0xff] }
 0x721   : > { %v4215_v43 = vadd.f32 %v4211_v35, %v4190_v58  ;;  %v9459_v23 = vpop.f32.mrf.mxu3  ;;  %v5904_v58 = vld [vmem:[%s9907_s9 + $0xc0] sm:$0xff] }
 0x722   : > { %4891 = vmatpush.msrb.mxu1 %v5904_v58  ;;  %4932 = vmatpush.msrb.mxu2 %v5919_v38  ;;  %v5990_v58 = vld [vmem:[%s9907_s9 + $0x370] sm:$0xff]  ;;  %v5989_v38 = vld [vmem:[%s9907_s9 + $0x368] sm:$0xff] }
 0x723   : > { %v4250_v17 = vadd.f32 %v4246_v49, %v4215_v43  ;;  %v5936_v49 = vld [vmem:[%s9907_s9 + $0x1c0] sm:$0xff]  ;;  %v5934_v43 = vld [vmem:[%s9907_s9 + $0x1b0] sm:$0xff] }
 0x724   : > { %4971 = vmatpush.msrb.mxu3 %v5936_v49  ;;  %4892 = vmatpush.msrb.mxu1 %v5903_v24  ;;  %v5952_v49 = vld [vmem:[%s9907_s9 + $0x240] sm:$0xff]  ;;  %v5973_v24 = vld [vmem:[%s9907_s9 + $0x2e8] sm:$0xff] }
 0x725   : > { %v4275_v63 = vadd.f32 %v4271_v16, %v4250_v17  ;;  %v4830_v16 = vld [vmem:[%s9907_s9 + $0x18] sm:$0xff]  ;;  %v5901_v17 = vld [vmem:[%s9907_s9 + $0xa8] sm:$0xff] }
 0x726   : > { %4855 = vmatpush.msra.mxu0 %v4830_v16  ;;  %4972 = vmatpush.msrb.mxu3 %v5935_v30  ;;  %v5974_v16 = vld [vmem:[%s9907_s9 + $0x2f0] sm:$0xff]  ;;  %v6005_v30 = vld [vmem:[%s9907_s9 + $0x3e8] sm:$0xff] }
 0x727   : > { %v9397_v39 = vpop.f32.mrf.mxu2  ;;  %v4300_v29 = vadd.f32 %v4296_v25, %v4275_v63  ;;  %v5918_v25 = vld [vmem:[%s9907_s9 + $0x130] sm:$0xff]  ;;  %4893 = vmatpush.msrb.mxu1 %v5902_v5  ;;  %v5933_v63 = vld [vmem:[%s9907_s9 + $0x1a8] sm:$0xff]  ;;  %v5972_v5 = vld [vmem:[%s9907_s9 + $0x2e0] sm:$0xff] }
 0x728   : > { %4856 = vmatpush.msra.mxu0 %v4829_v50  ;;  %4933 = vmatpush.msrb.mxu2 %v5918_v25 }
 0x729   : > { %v4327_v31 = vpop.f32.mrf.mxu1  ;;  %v9531_v20 = vpop.f32.mrf.mxu3  ;;  %4973 = vmatpush.msrb.mxu3 %v5934_v43  ;;  %4894 = vmatpush.msrb.mxu1 %v5901_v17  ;;  %v5988_v43 = vld [vmem:[%s9907_s9 + $0x360] sm:$0xff]  ;;  %v5950_v17 = vld [vmem:[%s9907_s9 + $0x230] sm:$0xff] }
 0x72a   : > { %v9419_v0 = vadd.f32 %v4327_v31, %v4299_v56  ;;  %v4828_v56 = vld [vmem:[%s9907_s9 + $0x8] sm:$0xff]  ;;  %v5932_v31 = vld [vmem:[%s9907_s9 + $0x1a0] sm:$0xff]  ;;  %4934 = vmatpush.msrb.mxu2 %v5917_v47  ;;  %v5971_v47 = vld [vmem:[%s9907_s9 + $0x2d8] sm:$0xff] }
 0x72b   : > { %4857 = vmatpush.msra.mxu0 %v4828_v56  ;;  %4974 = vmatpush.msrb.mxu3 %v5933_v63  ;;  %v5951_v56 = vld [vmem:[%s9907_s9 + $0x238] sm:$0xff] }
 0x72c   : > { %v4813_v33 = vmax.f32 %v9370_v12, %v9419_v0  ;;  %4895 = vmatpush.msrb.mxu1 %v5900_v32  ;;  %4935 = vmatpush.msrb.mxu2 %v5916_v40  ;;  %v5987_v63 = vld [vmem:[%s9907_s9 + $0x358] sm:$0xff]  ;;  %v6022_v12 = vld [vmem:[%s9907_s9 + $0x470] sm:$0xff] }
 0x72d   : > { %4858 = vmatpush.msra.mxu0 %v4827_v60  ;;  %4975 = vmatpush.msrb.mxu3 %v5932_v31  ;;  %v6004_v60 = vld [vmem:[%s9907_s9 + $0x3e0] sm:$0xff]  ;;  %v4376_v31 = vadd.f32 %v9379_v42, %v9381_v44  ;;  %v6002_v42 = vld [vmem:[%s9907_s9 + $0x3d0] sm:$0xff] }
 0x72e   : > { %4896 = vmatpush.msrb.mxu1 %v5899_v11  ;;  %4936 = vmatpush.msrb.mxu2 %v5915_v6  ;;  %v5949_v11 = vld [vmem:[%s9907_s9 + $0x228] sm:$0xff]  ;;  %v5970_v6 = vld [vmem:[%s9907_s9 + $0x2d0] sm:$0xff]  ;;  %v5948_v44 = vld [vmem:[%s9907_s9 + $0x220] sm:$0xff] }
 0x72f   : > { %v9461_v26 = vpop.f32.mrf.mxu2  ;;  %4976 = vmatpush.msrb.mxu3 %v5931_v22  ;;  %v5986_v22 = vld [vmem:[%s9907_s9 + $0x350] sm:$0xff] }
 0x730   : > { %4897 = vmatpush.msrb.mxu1 %v5898_v51  ;;  %4937 = vmatpush.msrb.mxu2 %v5914_v57  ;;  %v5969_v51 = vld [vmem:[%s9907_s9 + $0x2c8] sm:$0xff] }
 0x731   : > { %v4330_v15 = vpop.f32.mrf.mxu1  ;;  %v9598_v61 = vpop.f32.mrf.mxu3  ;;  %4977 = vmatpush.msrb.mxu3 %v5930_v2  ;;  %v5985_v57 = vld [vmem:[%s9907_s9 + $0x348] sm:$0xff] }
 0x732   : > { %v9481_v37 = vadd.f32 %v4330_v15, %v4300_v29  ;;  %v5959_v29 = vld [vmem:[%s9907_s9 + $0x278] sm:$0xff]  ;;  %4898 = vmatpush.msrb.mxu1 %v5897_v27  ;;  %4938 = vmatpush.msrb.mxu2 %v5913_v13  ;;  %v9621_v15 = vpop.f32.mrf.mxu0  ;;  %v6001_v2 = vld [vmem:[%s9907_s9 + $0x3c8] sm:$0xff]  ;;  %v4404_v27 = vadd.f32 %v9408_v52, %v4376_v31  ;;  %v5946_v52 = vld [vmem:[%s9907_s9 + $0x210] sm:$0xff] }
 0x733   : > { %5004 = vmatpush.msrb.mxu0 %v5959_v29  ;;  %4978 = vmatpush.msrb.mxu3 %v5929_v48  ;;  %v6003_v29 = vld [vmem:[%s9907_s9 + $0x3d8] sm:$0xff]  ;;  %v5968_v48 = vld [vmem:[%s9907_s9 + $0x2c0] sm:$0xff] }
 0x734   : > { %v4814_v7 = vmax.f32 %v9374_v18, %v9481_v37  ;;  %4899 = vmatpush.msrb.mxu1 %v5896_v41  ;;  %4939 = vmatpush.msrb.mxu2 %v5912_v34  ;;  %v6000_v41 = vld [vmem:[%s9907_s9 + $0x3c0] sm:$0xff]  ;;  %v6019_v18 = vld [vmem:[%s9907_s9 + $0x458] sm:$0xff] }
 0x735   : > { %5005 = vmatpush.msrb.mxu0 %v5958_v19  ;;  %4979 = vmatpush.msrb.mxu3 %v5928_v9  ;;  %v5967_v9 = vld [vmem:[%s9907_s9 + $0x2b8] sm:$0xff] }
 0x736   : > { %5044 = vmatpush.msra.mxu1 %v5975_v8  ;;  %5082 = vmatpush.msra.mxu2 %v5991_v59  ;;  %v5983_v59 = vld [vmem:[%s9907_s9 + $0x338] sm:$0xff] }
 0x737   : > { %v9523_v36 = vpop.f32.mrf.mxu2  ;;  %5006 = vmatpush.msrb.mxu0 %v5957_v54  ;;  %5123 = vmatpush.msra.mxu3 %v6007_v45 }
 0x738   : > { %5045 = vmatpush.msra.mxu1 %v5974_v16  ;;  %5083 = vmatpush.msra.mxu2 %v5990_v58 }
 0x739   : > { %v9533_v35 = vpop.f32.mrf.mxu1  ;;  %5007 = vmatpush.msrb.mxu0 %v5956_v62  ;;  %5124 = vmatpush.msra.mxu3 %v6006_v1  ;;  %v5947_v62 = vld [vmem:[%s9907_s9 + $0x218] sm:$0xff]  ;;  %v5945_v1 = vld [vmem:[%s9907_s9 + $0x208] sm:$0xff] }
 0x73a   : > { %v9669_v25 = vpop.f32.mrf.mxu3  ;;  %5046 = vmatpush.msra.mxu1 %v5973_v24  ;;  %5084 = vmatpush.msra.mxu2 %v5989_v38  ;;  %v4623_v32 = vpop.f32.mrf.mxu0  ;;  %v5982_v24 = vld [vmem:[%s9907_s9 + $0x330] sm:$0xff] }
 0x73b   : > { %5008 = vmatpush.msrb.mxu0 %v5955_v21  ;;  %5125 = vmatpush.msra.mxu3 %v6005_v30  ;;  %v5984_v21 = vld [vmem:[%s9907_s9 + $0x340] sm:$0xff]  ;;  %v4624_v34 = vadd.f32 %v4623_v32, %v9598_v61  ;;  %v5999_v61 = vld [vmem:[%s9907_s9 + $0x3b8] sm:$0xff]  ;;  %v5965_v30 = vld [vmem:[%s9907_s9 + $0x2a8] sm:$0xff] }
 0x73c   : > { %5047 = vmatpush.msra.mxu1 %v5972_v5  ;;  %5085 = vmatpush.msra.mxu2 %v5988_v43  ;;  %v5981_v43 = vld [vmem:[%s9907_s9 + $0x328] sm:$0xff] }
 0x73d   : > { %5009 = vmatpush.msrb.mxu0 %v5954_v3  ;;  %5126 = vmatpush.msra.mxu3 %v6004_v60  ;;  %v4429_v3 = vadd.f32 %v9533_v35, %v4404_v27  ;;  %v5997_v60 = vld [vmem:[%s9907_s9 + $0x3a8] sm:$0xff] }
 0x73e   : > { %5048 = vmatpush.msra.mxu1 %v5971_v47  ;;  %5086 = vmatpush.msra.mxu2 %v5987_v63  ;;  %v5996_v47 = vld [vmem:[%s9907_s9 + $0x3a0] sm:$0xff]  ;;  %v5993_v27 = vld [vmem:[%s9907_s9 + $0x388] sm:$0xff] }
 0x73f   : > { %5010 = vmatpush.msrb.mxu0 %v5953_v14  ;;  %5127 = vmatpush.msra.mxu3 %v6003_v29  ;;  %v4379_v14 = vadd.f32 %v9395_v53, %v9397_v39  ;;  %v4454_v35 = vadd.f32 %v9461_v26, %v4429_v3  ;;  %v5998_v39 = vld [vmem:[%s9907_s9 + $0x3b0] sm:$0xff]  ;;  %v5944_v26 = vld [vmem:[%s9907_s9 + $0x200] sm:$0xff] }
 0x740   : > { %5049 = vmatpush.msra.mxu1 %v5970_v6  ;;  %5087 = vmatpush.msra.mxu2 %v5986_v22  ;;  %v5978_v22 = vld [vmem:[%s9907_s9 + $0x310] sm:$0xff] }
 0x741   : > { %v9578_v10 = vpop.f32.mrf.mxu2  ;;  %5011 = vmatpush.msrb.mxu0 %v5952_v49  ;;  %5128 = vmatpush.msra.mxu3 %v6002_v42  ;;  %v5966_v49 = vld [vmem:[%s9907_s9 + $0x2b0] sm:$0xff] }
 0x742   : > { %v9576_v4 = vpop.f32.mrf.mxu1  ;;  %v9702_v54 = vpop.f32.mrf.mxu3  ;;  %5050 = vmatpush.msra.mxu1 %v5969_v51  ;;  %5088 = vmatpush.msra.mxu2 %v5985_v57  ;;  %v5961_v57 = vld [vmem:[%s9907_s9 + $0x288] sm:$0xff] }
 0x743   : > { %5012 = vmatpush.msrb.mxu0 %v5951_v56  ;;  %5129 = vmatpush.msra.mxu3 %v6001_v2  ;;  %v4626_v8 = vpop.f32.mrf.mxu0  ;;  %v4405_v56 = vadd.f32 %v9489_v55, %v4379_v14  ;;  %v5964_v55 = vld [vmem:[%s9907_s9 + $0x2a0] sm:$0xff] }
 0x744   : > { %5051 = vmatpush.msra.mxu1 %v5968_v48  ;;  %5089 = vmatpush.msra.mxu2 %v5984_v21  ;;  %v4627_v5 = vadd.f32 %v4626_v8, %v9669_v25  ;;  %v5980_v25 = vld [vmem:[%s9907_s9 + $0x320] sm:$0xff] }
 0x745   : > { %5013 = vmatpush.msrb.mxu0 %v5950_v17  ;;  %5130 = vmatpush.msra.mxu3 %v6000_v41  ;;  %v4479_v17 = vadd.f32 %v9459_v23, %v4454_v35  ;;  %v4430_v63 = vadd.f32 %v9576_v4, %v4405_v56  ;;  %v5963_v23 = vld [vmem:[%s9907_s9 + $0x298] sm:$0xff]  ;;  %v5962_v4 = vld [vmem:[%s9907_s9 + $0x290] sm:$0xff]  ;;  %v5960_v48 = vld [vmem:[%s9907_s9 + $0x280] sm:$0xff] }
 0x746   : > { %5052 = vmatpush.msra.mxu1 %v5967_v9  ;;  %5090 = vmatpush.msra.mxu2 %v5983_v59  ;;  %v5976_v41 = vld [vmem:[%s9907_s9 + $0x300] sm:$0xff] }
 0x747   : > { %5014 = vmatpush.msrb.mxu0 %v5949_v11  ;;  %5131 = vmatpush.msra.mxu3 %v5999_v61  ;;  %v5995_v11 = vld [vmem:[%s9907_s9 + $0x398] sm:$0xff]  ;;  %v4513_v6 = vadd.f32 %v9559_v46, %v4479_v17  ;;  %v4455_v42 = vadd.f32 %v9523_v36, %v4430_v63  ;;  %v6041_v35 = vld [vmem:[%s9906_s8] ss:$0 sm:$0xff] }
 0x748   : > { %5053 = vmatpush.msra.mxu1 %v5966_v49  ;;  %5091 = vmatpush.msra.mxu2 %v5982_v24  ;;  %v6015_v63 = vld [vmem:[%s9907_s9 + $0x438] sm:$0xff] }
 0x749   : > { %v9652_v50 = vpop.f32.mrf.mxu2  ;;  %5015 = vmatpush.msrb.mxu0 %v5948_v44  ;;  %5132 = vmatpush.msra.mxu3 %v5998_v39 }
 0x74a   : > { %v9632_v28 = vpop.f32.mrf.mxu1  ;;  %v4699_v38 = vpop.f32.mrf.mxu3  ;;  %5054 = vmatpush.msra.mxu1 %v5965_v30  ;;  %5092 = vmatpush.msra.mxu2 %v5981_v43  ;;  %v6020_v43 = vld [vmem:[%s9907_s9 + $0x460] sm:$0xff] }
 0x74b   : > { %5016 = vmatpush.msrb.mxu0 %v5947_v62  ;;  %5133 = vmatpush.msra.mxu3 %v5997_v60  ;;  %v4721_v31 = vpop.f32.mrf.mxu0  ;;  %v5977_v62 = vld [vmem:[%s9907_s9 + $0x308] sm:$0xff]  ;;  %v4547_v36 = vadd.f32 %v9632_v28, %v4513_v6 }
 0x74c   : > { %5055 = vmatpush.msra.mxu1 %v5964_v55  ;;  %5093 = vmatpush.msra.mxu2 %v5980_v25  ;;  %v6018_v55 = vld [vmem:[%s9907_s9 + $0x450] sm:$0xff]  ;;  %v6017_v25 = vld [vmem:[%s9907_s9 + $0x448] sm:$0xff] }
 0x74d   : > { %5017 = vmatpush.msrb.mxu0 %v5946_v52  ;;  %5134 = vmatpush.msra.mxu3 %v5996_v47  ;;  %v4480_v52 = vadd.f32 %v9531_v20, %v4455_v42  ;;  %v4581_v3 = vadd.f32 %v9578_v10, %v4547_v36  ;;  %v6016_v47 = vld [vmem:[%s9907_s9 + $0x440] sm:$0xff] }
 0x74e   : > { %5056 = vmatpush.msra.mxu1 %v5963_v23  ;;  %v6012_v23 = vld [vmem:[%s9907_s9 + $0x420] sm:$0xff] }
 0x74f   : > { %5018 = vmatpush.msrb.mxu0 %v5945_v1  ;;  %5135 = vmatpush.msra.mxu3 %v5995_v11  ;;  %v4514_v61 = vadd.f32 %v9621_v15, %v4480_v52  ;;  %v6009_v11 = vld [vmem:[%s9907_s9 + $0x408] sm:$0xff] }
 0x750   : > { %5057 = vmatpush.msra.mxu1 %v5962_v4  ;;  %v6008_v4 = vld [vmem:[%s9907_s9 + $0x400] sm:$0xff] }
 0x751   : > { %v4671_v19 = vpop.f32.mrf.mxu2  ;;  %5019 = vmatpush.msrb.mxu0 %v5944_v26  ;;  %v6023_v26 = vld [vmem:[%s9907_s9 + $0x478] sm:$0xff] }
 0x752   : > { %v9689_v40 = vpop.f32.mrf.mxu1  ;;  %v4805_v21 = vpop.f32.mrf.mxu3  ;;  %5058 = vmatpush.msra.mxu1 %v5961_v57 }
 0x753   : > { %v4724_v59 = vpop.f32.mrf.mxu0 }
 0x754   : > { %5059 = vmatpush.msra.mxu1 %v5960_v48 }
 0x759   : > { %v4674_v16 = vpop.f32.mrf.mxu2 }
 0x75a   : > { %v4646_v13 = vpop.f32.mrf.mxu1 }
 0x75b   : > { %v4652_v45 = vadd.f32 %v4646_v13, %v4624_v34  ;;  %v5992_v34 = vld [vmem:[%s9907_s9 + $0x380] sm:$0xff] }
 0x75d   : > { %v4677_v58 = vadd.f32 %v4671_v19, %v4652_v45  ;;  %v5979_v19 = vld [vmem:[%s9907_s9 + $0x318] sm:$0xff] }
 0x75e   : > { %5094 = vmatpush.msra.mxu2 %v5979_v19  ;;  %v6010_v19 = vld [vmem:[%s9907_s9 + $0x410] sm:$0xff] }
 0x75f   : > { %v4702_v29 = vadd.f32 %v9702_v54, %v4677_v58  ;;  %v5994_v54 = vld [vmem:[%s9907_s9 + $0x390] sm:$0xff] }
 0x760   : > { %5095 = vmatpush.msra.mxu2 %v5978_v22  ;;  %5136 = vmatpush.msra.mxu3 %v5994_v54  ;;  %v4826_v22 = vld [vmem:[%s9908_s10] sm:$0x1] }
 0x761   : > { %v4727_v44 = vadd.f32 %v4721_v31, %v4702_v29  ;;  %v4771_v2 = vpop.f32.mrf.mxu2  ;;  %v6014_v29 = vld [vmem:[%s9907_s9 + $0x430] sm:$0xff]  ;;  %v6011_v31 = vld [vmem:[%s9907_s9 + $0x418] sm:$0xff] }
 0x762   : > { %v4649_v53 = vpop.f32.mrf.mxu1  ;;  %5096 = vmatpush.msra.mxu2 %v5977_v62  ;;  %5137 = vmatpush.msra.mxu3 %v5993_v27 }
 0x763   : > { %v4653_v32 = vadd.f32 %v4649_v53, %v4627_v5 }
 0x764   : > { %5097 = vmatpush.msra.mxu2 %v5976_v41  ;;  %5138 = vmatpush.msra.mxu3 %v5992_v34 }
 0x765   : > { %v4678_v51 = vadd.f32 %v4674_v16, %v4653_v32  ;;  %v4548_v16 = vadd.f32 %v9689_v40, %v4514_v61  ;;  %v6013_v32 = vld [vmem:[%s9907_s9 + $0x428] sm:$0xff] }
 0x767   : > { %v4703_v28 = vadd.f32 %v4699_v38, %v4678_v51  ;;  %v4808_v38 = vpop.f32.mrf.mxu3  ;;  %v4582_v15 = vadd.f32 %v9652_v50, %v4548_v16 }
 0x769   : > { %v4728_v45 = vadd.f32 %v4724_v59, %v4703_v28  ;;  %v4774_v1 = vpop.f32.mrf.mxu2 }
 0x76a   : > { %v4746_v46 = vpop.f32.mrf.mxu1 }
 0x76b   : > { %v4752_v13 = vadd.f32 %v4746_v46, %v4727_v44 }
 0x76d   : > { %v4777_v9 = vadd.f32 %v4771_v2, %v4752_v13 }
 0x76f   : > { %v4811_v8 = vadd.f32 %v4805_v21, %v4777_v9 }
 0x771   : > { %v4815_v14 = vmax.f32 %v4581_v3, %v4811_v8 }
 0x772   : > { %v4749_v20 = vpop.f32.mrf.mxu1 }
 0x773   : > { %v4817_v58 = vmax.f32 %v4813_v33, %v4815_v14  ;;  %v4753_v10 = vadd.f32 %v4749_v20, %v4728_v45  ;;  %v6021_v33 = vld [vmem:[%s9907_s9 + $0x468] sm:$0xff] }
 0x775   : > { %v4822_v49 = vadd.f32 %v6041_v35, %v4817_v58  ;;  %v4778_v24 = vadd.f32 %v4774_v1, %v4753_v10 }
 0x777   : > { %v4824_v53 = vmax.f32 %v4822_v49, 0.0  ;;  %v4812_v39 = vadd.f32 %v4808_v38, %v4778_v24 }
 0x779   : > { %v4816_v30 = vmax.f32 %v4582_v15, %v4812_v39  ;;  %4859 = vmatmul.f32.vlgmr.msra.gmra.mxu0 %v4824_v53  ;;  %v4882_v40 = vrot.slane %v4824_v53, 1  ;;  %v4922_v56 = vrot.slane %v4824_v53, 2  ;;  %v4962_v5 = vrot.slane %v4824_v53, 4 }
 0x77a   : > { %5163 = vmatpush.msra.mxu0 %v6023_v26  ;;  %v5002_v17 = vrot.slane %v4824_v53, 5 }
 0x77b   : > { %v4818_v0 = vmax.f32 %v4814_v7, %v4816_v30  ;;  %4900 = vmatmul.f32.vlgmr.msrb.gmra.mxu1 %v4882_v40  ;;  %4940 = vmatmul.f32.vlgmr.msrb.gmra.mxu2 %v4922_v56  ;;  %v5042_v7 = vrot.slane %v4824_v53, 6 }
 0x77c   : > { %4980 = vmatmul.f32.vlgmr.msrb.gmra.mxu3 %v4962_v5  ;;  %5164 = vmatpush.msra.mxu0 %v6022_v12 }
 0x77d   : > { %v4823_v50 = vadd.f32 %v6041_v35, %v4818_v0 }
 0x77e   : > { %5165 = vmatpush.msra.mxu0 %v6021_v33 }
 0x77f   : > { %v4825_v60 = vmax.f32 %v4823_v50, 0.0 }
 0x780   : > { %5166 = vmatpush.msra.mxu0 %v6020_v43 }
 0x781   : > { %v5121_v37 = vrot.slane %v4825_v60, 1  ;;  %5020 = vmatmul.f32.vlgmr.msrb.gmra.mxu0 %v5002_v17  ;;  %v5161_v6 = vrot.slane %v4825_v60, 2 }
 0x782   : > { %5167 = vmatpush.msra.mxu0 %v6019_v18 }
 0x783   : > { %5060 = vmatmul.f32.vlgmr.msra.gmra.mxu1 %v5042_v7  ;;  %5098 = vmatmul.f32.vlgmr.msra.gmra.mxu2 %v4825_v60 }
 0x784   : > { %5139 = vmatmul.f32.vlgmr.msra.gmra.mxu3 %v5121_v37  ;;  %5168 = vmatpush.msra.mxu0 %v6018_v55 }
 0x786   : > { %5169 = vmatpush.msra.mxu0 %v6017_v25 }
 0x788   : > { %5170 = vmatpush.msra.mxu0 %v6016_v47 }
 0x78a   : > { %5171 = vmatpush.msra.mxu0 %v6015_v63 }
 0x78c   : > { %5172 = vmatpush.msra.mxu0 %v6014_v29 }
 0x78e   : > { %5173 = vmatpush.msra.mxu0 %v6013_v32 }
 0x790   : > { %5174 = vmatpush.msra.mxu0 %v6012_v23 }
 0x792   : > { %5175 = vmatpush.msra.mxu0 %v6011_v31 }
 0x794   : > { %5176 = vmatpush.msra.mxu0 %v6010_v19 }
 0x796   : > { %5177 = vmatpush.msra.mxu0 %v6009_v11 }
 0x798   : > { %5178 = vmatpush.msra.mxu0 %v6008_v4 }
 0x799   : > { %5179 = vmatmul.f32.vlgmr.msra.gmra.mxu0 %v5161_v6 }
 0x7f6   : > { %v4860_v54 = vpop.f32.mrf.mxu0 }
 0x7f7   : > { %v4863_v42 = vadd.f32 %v4860_v54, %v4826_v22 }
 0x7f8   : > { %v4901_v44 = vpop.f32.mrf.mxu1 }
 0x7f9   : > { %v4904_v57 = vadd.f32 %v4901_v44, %v4863_v42 }
 0x7fe   : > { %v4941_v51 = vpop.f32.mrf.mxu2  ;;  %v5021_v27 = vpop.f32.mrf.mxu0 }
 0x7ff   : > { %v4944_v46 = vadd.f32 %v4941_v51, %v4904_v57  ;;  %v4981_v2 = vpop.f32.mrf.mxu3 }
 0x800   : > { %v5061_v13 = vpop.f32.mrf.mxu1 }
 0x801   : > { %v4984_v62 = vadd.f32 %v4981_v2, %v4944_v46 }
 0x803   : > { %v5024_v36 = vadd.f32 %v5021_v27, %v4984_v62 }
 0x805   : > { %v5064_v48 = vadd.f32 %v5061_v13, %v5024_v36 }
 0x806   : > { %v5099_v21 = vpop.f32.mrf.mxu2 }
 0x807   : > { %v5102_v41 = vadd.f32 %v5099_v21, %v5064_v48  ;;  %v5140_v34 = vpop.f32.mrf.mxu3 }
 0x809   : > { %v5143_v52 = vadd.f32 %v5140_v34, %v5102_v41 }
 0x816   : > { %v5180_v28 = vpop.f32.mrf.mxu0 }
 0x817   : > { %v5183_v9 = vadd.f32 %v5180_v28, %v5143_v52 }
 0x819   : > { %v5185_v3 = vperm.slane %v5183_v9, 0 }
 0x81b   : > { %5187 = vst [vmem:[%s384_s27] sm:$0xff] %v5185_v3 }
 0x81c PF: > { %s21_s17 = sadd.s32 1, %s6072_s17  }
 0x81d   : > { %p18_p4 = scmp.ge.s32.totalorder %s21_s17, 4  }
 0x81f   :  { %20 = sbr.rel (!%p18_p4) target bundleno = 1 (0x1), region = 121 }

</bundles_post_ra>
